<compile_context>
chip_gen: v5e
topology: v5e:2x2
jax: 0.10.0
libtpu: 0.0.40
codegen_flags: <defaults>
</compile_context>

<pallas_src>
import functools

import jax
import jax.numpy as jnp
from jax.experimental import pallas as pl
from jax.experimental.pallas import tpu as pltpu

EPS = 1e-5
_LANE = 128


def _round_up(x, m):
    return (x + m - 1) // m * m


def _pick_tile(total, target, mult=8):
    """Largest divisor of `total` that is a multiple of `mult` and <= target."""
    best = None
    for d in range(mult, min(total, target) + 1, mult):
        if total % d == 0:
            best = d
    return best if best is not None else total


def _pick_block_h(N, H, W, C, *, target_bytes=4 << 20, min_tiles=4):
    """Row-tile height: largest multiple-of-8 divisor of H whose bf16 main tile
    fits `target_bytes`, preferring >= min_tiles grid steps (v7x has 2 TCs)."""
    cands = [d for d in range(8, H + 1, 8) if H % d == 0]
    if not cands:
        return H
    fitting = [d for d in cands if d * W * C * 2 <= target_bytes] or cands[:1]
    balanced = [d for d in fitting if N * (H // d) >= min_tiles]
    return max(balanced) if balanced else max(fitting)


def _conv_vmem_limit(TH, W, Cin, CP):
    """Double-buffered working-set estimate + headroom, capped well below the
    64 MiB per-core VMEM of v7x (never request the whole physical VMEM)."""
    in_tiles = (TH + 2) * W * Cin * 2                     # bf16 main + halo tiles
    out_tiles = TH * W * CP * 4 + 2 * CP * 4              # y tile + stats tile
    consts = 9 * Cin * CP * 2 + CP * 4 + 2 * Cin * 4      # weights/bias/scale-shift
    temps = (TH + 2) * (W + 2) * Cin * 8 + TH * W * (9 * Cin * 2 + 2 * CP * 4)
    est = 2 * (in_tiles + out_tiles) + consts + 4 * temps
    return int(max(16 << 20, min(est, 48 << 20)))


# ------------------------------------------------------------------ kernels ---

def _conv_stage_kernel(apply_in_bn, TH, W, Cin, Cout,
                       xt_ref, xm_ref, xb_ref, sc_ref, w_ref, b_ref,
                       y_ref, st_ref):
    """One (batch, row-tile) grid step of conv3x3+bias (+ fused input BN/ReLU).

    xt_ref : (1,  W, Cin)   input row above the tile (clamped; zeroed at i==0)
    xm_ref : (TH, W, Cin)   main input rows [i*TH, (i+1)*TH)
    xb_ref : (1,  W, Cin)   input row below the tile (clamped; zeroed at last)
    sc_ref : (2, Cin)       previous stage's BN scale/shift (rows 0 / 1)
    w_ref  : (9*Cin, CP)    bf16 weights, Cout zero-padded to CP (lane multiple)
    b_ref  : (1, CP)        f32 bias, zero padded
    y_ref  : (TH, W*Cout)   conv+bias output tile (pre-BN), lane-dense
    st_ref : (2, CP)        row0 = sum, row1 = sum-of-squares of pre-bias acc
    """
    i = pl.program_id(1)
    last = pl.num_programs(1) - 1

    if apply_in_bn:
        scale = sc_ref[0:1, :].reshape(1, 1, Cin)
        shift = sc_ref[1:2, :].reshape(1, 1, Cin)

    def prep(v):
        # Previous stage's BatchNorm+ReLU, fused right after the tile lands in
        # VMEM (applied in f32), then straight back to the bf16 MXU dtype.
        if apply_in_bn:
            v = jnp.maximum(v.astype(jnp.float32) * scale + shift, 0.0)
        return v.astype(jnp.bfloat16)

    top = prep(xt_ref[...])
    mid = prep(xm_ref[...])
    bot = prep(xb_ref[...])
    # The clamped halo rows of the first/last tile stand in for the conv's zero
    # row padding: zero them (after BN+ReLU, so the padding stays exactly 0).
    top = top * (i > 0).astype(top.dtype)
    bot = bot * (i < last).astype(bot.dtype)
    x = jnp.concatenate([top, mid, bot], axis=0)            # (TH+2, W, Cin)

    # Conv's left/right zero padding, materialized only in VMEM.
    zcol = jnp.zeros((TH + 2, 1, Cin), x.dtype)
    x = jnp.concatenate([zcol, x, zcol], axis=1)             # (TH+2, W+2, Cin)

    # In-VMEM im2col, all bf16: (TH*W, 9*Cin), column order (ky, kx, cin)
    # matching the weight layout.
    # TODO(synk): for Cin >= ~64 replace with 9 tap-wise accumulated matmuls
    # (no patch materialization); for tiny Cin fold W into the lane dim and use
    # pltpu.roll for the kx shifts.
    xw = jnp.concatenate([x[:, kx:kx + W, :] for kx in range(3)], axis=2)
    patches = jnp.concatenate(
        [xw[ky:ky + TH].reshape(TH * W, 3 * Cin) for ky in range(3)], axis=1)

    acc = jnp.dot(patches, w_ref[...],
                  preferred_element_type=jnp.float32)        # (TH*W, CP) f32

    # Per-tile partial BN statistics on the PRE-bias accumulator (the bias is
    # the per-channel pivot against fp32 cancellation; added back in JAX).
    ssum = jnp.sum(acc, axis=0, keepdims=True)
    ssq = jnp.sum(acc * acc, axis=0, keepdims=True)
    st_ref[...] = jnp.concatenate([ssum, ssq], axis=0)       # (2, CP)

    # conv + bias, folded to the lane-dense (TH, W*Cout) layout via a
    # major-dim reshape + static middle slices + lane concat (row-major
    # identical to a (TH*W, Cout) tile, but stores use full-width vst).
    y = (acc + b_ref[...])[:, :Cout].reshape(TH, W, Cout)
    y = jnp.concatenate([y[:, w, :] for w in range(W)], axis=-1)
    y_ref[...] = y.astype(y_ref.dtype)


def _bn_relu_kernel(y_ref, ss_ref, o_ref):
    # y: (TR, W*Cout); ss: (2, W*Cout) -> row0 scale, row1 shift (channel-tiled)
    o_ref[...] = jnp.maximum(y_ref[...] * ss_ref[0:1, :] + ss_ref[1:2, :], 0.0)


# ----------------------------------------------------------------- wrappers ---

def _conv_stage(x_nhwc, in_ss, w_oihw, b, *, block_h, out_dtype):
    """conv3x3(pad=1)+bias, optionally preceded by a fused BN+ReLU given by
    in_ss = (2, Cin) scale/shift rows.  Returns (y, mean, var): y is the
    lane-dense (N*H, W*Cout) pre-BN conv output (dtype out_dtype) and
    train-mode (biased) per-channel batch statistics from the f32 accumulator."""
    N, H, W, Cin = x_nhwc.shape
    Cout = w_oihw.shape[0]
    CP = _round_up(Cout, _LANE)
    TH = block_h
    assert H % TH == 0 and TH % 8 == 0, (H, TH)
    nH = H // TH

    # (Cout,Cin,3,3) -> (ky,kx,Cin,Cout) -> (9*Cin, Cout); pad Cout->CP; bf16.
    # TODO(synk): for production channel counts pad CP to a 256 multiple so the
    # v6e/v7x MXU contraction/width is fully used.
    w2d = jnp.transpose(w_oihw, (2, 3, 1, 0)).reshape(9 * Cin, Cout)
    w2d = jnp.pad(w2d, ((0, 0), (0, CP - Cout))).astype(jnp.bfloat16)
    b2d = jnp.pad(b.reshape(1, Cout).astype(jnp.float32),
                  ((0, 0), (0, CP - Cout)))

    apply_in_bn = in_ss is not None
    insc = (in_ss.astype(jnp.float32) if apply_in_bn
            else jnp.zeros((2, Cin), jnp.float32))

    kernel = functools.partial(_conv_stage_kernel,
                               apply_in_bn, TH, W, Cin, Cout)

    y, st = pl.pallas_call(
        kernel,
        grid=(N, nH),
        in_specs=[
            # 1-row top halo: row i*TH-1, clamped to 0 (zeroed in-kernel at i=0)
            pl.BlockSpec((None, 1, W, Cin),
                         lambda n, i: (n, jnp.maximum(i * TH - 1, 0), 0, 0)),
            # main rows [i*TH, (i+1)*TH)
            pl.BlockSpec((None, TH, W, Cin), lambda n, i: (n, i, 0, 0)),
            # 1-row bottom halo: row (i+1)*TH, clamped (zeroed at the last tile)
            pl.BlockSpec((None, 1, W, Cin),
                         lambda n, i: (n, jnp.minimum((i + 1) * TH, H - 1), 0, 0)),
            pl.BlockSpec((2, Cin), lambda n, i: (0, 0)),
            pl.BlockSpec((9 * Cin, CP), lambda n, i: (0, 0)),
            pl.BlockSpec((1, CP), lambda n, i: (0, 0)),
        ],
        out_specs=(
            pl.BlockSpec((None, TH, W * Cout), lambda n, i: (n * nH + i, 0, 0)),
            pl.BlockSpec((None, None, 2, CP), lambda n, i: (n, i, 0, 0)),
        ),
        out_shape=(
            jax.ShapeDtypeStruct((N * nH, TH, W * Cout), out_dtype),
            jax.ShapeDtypeStruct((N, nH, 2, CP), jnp.float32),
        ),
        compiler_params=pltpu.CompilerParams(
            dimension_semantics=("parallel", "parallel"),
            vmem_limit_bytes=_conv_vmem_limit(TH, W, Cin, CP)),
    )(x_nhwc, x_nhwc, x_nhwc, insc, w2d, b2d)

    M = N * H * W
    ssum = jnp.sum(st[:, :, 0, :Cout], axis=(0, 1))
    ssq = jnp.sum(st[:, :, 1, :Cout], axis=(0, 1))
    mean = ssum / M + b.astype(jnp.float32)               # add the bias pivot back
    var = jnp.maximum(ssq / M - (ssum / M) ** 2, 0.0)     # fp32 cancellation guard
    return y.reshape(N * H, W * Cout), mean, var


def _bn_relu(y2d, ss):
    R, L = y2d.shape
    TR = _pick_tile(R, max(8, (8 << 20) // (L * 4)))       # ~8 MiB blocks
    return pl.pallas_call(
        _bn_relu_kernel,
        grid=(R // TR,),
        in_specs=[pl.BlockSpec((TR, L), lambda r: (r, 0)),
                  pl.BlockSpec((2, L), lambda r: (0, 0))],
        out_specs=pl.BlockSpec((TR, L), lambda r: (r, 0)),
        out_shape=jax.ShapeDtypeStruct((R, L), jnp.float32),
        compiler_params=pltpu.CompilerParams(
            dimension_semantics=("parallel",),
            vmem_limit_bytes=int(max(16 << 20, min(6 * TR * L * 4, 48 << 20)))),
    )(y2d, ss)


def conv_block_forward(x_nchw, params, *, block_h=None):
    x = jnp.transpose(x_nchw, (0, 2, 3, 1))                # NCHW -> NHWC
    N, H, W, Cin = x.shape
    Cout = params['w1'].shape[0]
    assert H % 8 == 0, "H must be a multiple of 8 for the row tiling"
    if block_h is None:
        block_h = _pick_block_h(N, H, W, max(Cin, Cout))

    # Stage 1: conv+bias (+ batch stats).  Its BN+ReLU is fused into stage 2.
    # Input stream and inter-stage activation y1 are bf16 (BN1 statistics come
    # from the in-kernel f32 accumulator, so they are unaffected).
    y1, m1, v1 = _conv_stage(x.astype(jnp.bfloat16), None,
                             params['w1'], params['b1'],
                             block_h=block_h, out_dtype=jnp.bfloat16)
    inv1 = params['g1'] / jnp.sqrt(v1 + EPS)
    sh1 = params['be1'] - m1 * inv1

    # Stage 2: fused [BN1+ReLU on the input tiles] + conv+bias (+ batch stats).
    y1_nhwc = y1.reshape(N, H, W, Cout)                    # free: same bytes
    y2, m2, v2 = _conv_stage(y1_nhwc, jnp.stack([inv1, sh1], axis=0),
                             params['w2'], params['b2'],
                             block_h=block_h, out_dtype=jnp.float32)
    inv2 = params['g2'] / jnp.sqrt(v2 + EPS)
    sh2 = params['be2'] - m2 * inv2

    # Final BN+ReLU: lane-dense layout (last dim = W*Cout) for full-width I/O.
    ss2 = jnp.stack([jnp.tile(inv2, W), jnp.tile(sh2, W)], axis=0)
    z2 = _bn_relu(y2, ss2).reshape(N, H, W, Cout)
    # TODO(synk): for W >= 128 the NHWC->NCHW transpose could be fused into the
    # BN+ReLU kernel's output blocks; at W=16 that would reintroduce masked
    # (sub-128-lane) stores, so it stays a separate XLA transpose here.
    return jnp.transpose(z2, (0, 3, 1, 2))                 # NHWC -> NCHW


# ---------------------------------------------------------------- reference ---

def _bf16_round(v):
    return v.astype(jnp.bfloat16).astype(jnp.float32)


def reference(x, p):
    """Precision-matched pure-JAX reference: bf16-rounded conv operands and
    bf16-rounded inter-stage activation (as stored by the kernel); bias, BN
    statistics, BN apply and ReLU in f32; train-mode (biased) batch stats."""
    def conv(inp, w, b):
        y = jax.lax.conv_general_dilated(
            _bf16_round(inp), _bf16_round(w), window_strides=(1, 1),
            padding='SAME', dimension_numbers=('NCHW', 'OIHW', 'NCHW'),
            precision=jax.lax.Precision.HIGHEST)
        return y + b.reshape(1, -1, 1, 1)

    def bn_scale_shift(y, g, be):
        m = y.mean(axis=(0, 2, 3), keepdims=True)
        v = y.var(axis=(0, 2, 3), keepdims=True)           # biased (train mode)
        inv = g.reshape(1, -1, 1, 1) / jnp.sqrt(v + EPS)
        return inv, be.reshape(1, -1, 1, 1) - m * inv

    y1 = conv(x, p['w1'], p['b1'])
    inv1, sh1 = bn_scale_shift(y1, p['g1'], p['be1'])
    z1 = jnp.maximum(_bf16_round(y1) * inv1 + sh1, 0.0)    # y1 is stored bf16

    y2 = conv(z1, p['w2'], p['b2'])
    inv2, sh2 = bn_scale_shift(y2, p['g2'], p['be2'])
    return jnp.maximum(y2 * inv2 + sh2, 0.0)


# -------------------------------------------------------------------- main ---

if __name__ == "__main__":
    N, Cin, Cout, H, W = 2, 4, 8, 16, 16
    key = jax.random.PRNGKey(0)
    ks = jax.random.split(key, 5)

    x = jax.random.normal(ks[0], (N, Cin, H, W), jnp.float32)
    params = {
        'w1': jax.random.normal(ks[1], (Cout, Cin, 3, 3), jnp.float32) * 0.2,
        'b1': jax.random.normal(ks[2], (Cout,), jnp.float32) * 0.1,
        'g1': jnp.ones((Cout,), jnp.float32),    # BatchNorm weight init = 1
        'be1': jnp.zeros((Cout,), jnp.float32),  # BatchNorm bias init = 0
        'w2': jax.random.normal(ks[3], (Cout, Cout, 3, 3), jnp.float32) * 0.2,
        'b2': jax.random.normal(ks[4], (Cout,), jnp.float32) * 0.1,
        'g2': jnp.ones((Cout,), jnp.float32),
        'be2': jnp.zeros((Cout,), jnp.float32),
    }

    # block_h=8 -> grid (N, 2) per conv stage, exercising the halo row tiling.
    fwd = jax.jit(functools.partial(conv_block_forward, block_h=8))
    out = jax.block_until_ready(fwd(x, params))

    ref = reference(x, params)
    err = float(jnp.max(jnp.abs(out - ref)))

    assert out.shape == (N, Cout, H, W), out.shape
    assert err < 1e-2, f"max abs err too large: {err}"
    print("KERNEL_OK")
</pallas_src>

<mosaic_0001>
module attributes {stable_mosaic.version = 11 : i64} {
  func.func @_conv_stage_kernel(%arg0: i32, %arg1: i32, %arg2: memref<1x1x16x4xbf16, #tpu.memory_space<vmem>>, %arg3: memref<1x8x16x4xbf16, #tpu.memory_space<vmem>>, %arg4: memref<1x1x16x4xbf16, #tpu.memory_space<vmem>>, %arg5: memref<2x4xf32, #tpu.memory_space<vmem>>, %arg6: memref<36x128xbf16, #tpu.memory_space<vmem>>, %arg7: memref<1x128xf32, #tpu.memory_space<vmem>>, %arg8: memref<1x8x128xbf16, #tpu.memory_space<vmem>>, %arg9: memref<1x1x2x128xf32, #tpu.memory_space<vmem>>) attributes {dimension_semantics = [#tpu.dimension_semantics<parallel>, #tpu.dimension_semantics<parallel>], iteration_bounds = array<i64: 2, 2>, scalar_prefetch = 0 : i64, scratch_operands = 0 : i64, tpu.core_type = #tpu.core_type<tc>, window_params = [{transform_indices = @transform_0, window_bounds = array<i64: 1, 1, 16, 4>}, {transform_indices = @transform_1, window_bounds = array<i64: 1, 8, 16, 4>}, {transform_indices = @transform_2, window_bounds = array<i64: 1, 1, 16, 4>}, {pipeline_mode = #tpu.pipeline_mode<synchronous>, transform_indices = @transform_3, window_bounds = array<i64: 2, 4>}, {pipeline_mode = #tpu.pipeline_mode<synchronous>, transform_indices = @transform_4, window_bounds = array<i64: 36, 128>}, {pipeline_mode = #tpu.pipeline_mode<synchronous>, transform_indices = @transform_5, window_bounds = array<i64: 1, 128>}, {transform_indices = @transform_6, window_bounds = array<i64: 1, 8, 128>}, {transform_indices = @transform_7, window_bounds = array<i64: 1, 1, 2, 128>}]} {
    %c0 = arith.constant 0 : index
    %c0_0 = arith.constant 0 : index
    %c0_1 = arith.constant 0 : index
    %c0_2 = arith.constant 0 : index
    %0 = vector.load %arg2[%c0, %c0_0, %c0_1, %c0_2] : memref<1x1x16x4xbf16, #tpu.memory_space<vmem>>, vector<1x1x16x4xbf16>
    %1 = vector.shape_cast %0 : vector<1x1x16x4xbf16> to vector<1x16x4xbf16>
    %c0_3 = arith.constant 0 : index
    %c0_4 = arith.constant 0 : index
    %c0_5 = arith.constant 0 : index
    %c0_6 = arith.constant 0 : index
    %2 = vector.load %arg3[%c0_3, %c0_4, %c0_5, %c0_6] : memref<1x8x16x4xbf16, #tpu.memory_space<vmem>>, vector<1x8x16x4xbf16>
    %3 = vector.shape_cast %2 : vector<1x8x16x4xbf16> to vector<8x16x4xbf16>
    %c0_7 = arith.constant 0 : index
    %c0_8 = arith.constant 0 : index
    %c0_9 = arith.constant 0 : index
    %c0_10 = arith.constant 0 : index
    %4 = vector.load %arg4[%c0_7, %c0_8, %c0_9, %c0_10] : memref<1x1x16x4xbf16, #tpu.memory_space<vmem>>, vector<1x1x16x4xbf16>
    %5 = vector.shape_cast %4 : vector<1x1x16x4xbf16> to vector<1x16x4xbf16>
    %c0_i32 = arith.constant 0 : i32
    %6 = arith.cmpi sgt, %arg1, %c0_i32 : i32
    %7 = arith.extui %6 : i1 to i32
    %8 = arith.sitofp %7 : i32 to f32
    %9 = arith.truncf %8 : f32 to bf16
    %10 = vector.broadcast %9 : bf16 to vector<1x16x4xbf16>
    %11 = arith.mulf %1, %10 : vector<1x16x4xbf16>
    %c1_i32 = arith.constant 1 : i32
    %12 = arith.cmpi slt, %arg1, %c1_i32 : i32
    %13 = arith.extui %12 : i1 to i32
    %14 = arith.sitofp %13 : i32 to f32
    %15 = arith.truncf %14 : f32 to bf16
    %16 = vector.broadcast %15 : bf16 to vector<1x16x4xbf16>
    %17 = arith.mulf %5, %16 : vector<1x16x4xbf16>
    %18 = tpu.concatenate %11, %3, %17 in 0 : vector<1x16x4xbf16>, vector<8x16x4xbf16>, vector<1x16x4xbf16> -> vector<10x16x4xbf16>
    %cst = arith.constant 0.000000e+00 : bf16
    %19 = vector.broadcast %cst : bf16 to vector<10x1x4xbf16>
    %20 = tpu.concatenate %19, %18, %19 in 1 : vector<10x1x4xbf16>, vector<10x16x4xbf16>, vector<10x1x4xbf16> -> vector<10x18x4xbf16>
    %21 = vector.extract_strided_slice %20 {offsets = [0, 0, 0], sizes = [10, 16, 4], strides = [1, 1, 1]} : vector<10x18x4xbf16> to vector<10x16x4xbf16>
    %22 = vector.extract_strided_slice %20 {offsets = [0, 1, 0], sizes = [10, 16, 4], strides = [1, 1, 1]} : vector<10x18x4xbf16> to vector<10x16x4xbf16>
    %23 = vector.extract_strided_slice %20 {offsets = [0, 2, 0], sizes = [10, 16, 4], strides = [1, 1, 1]} : vector<10x18x4xbf16> to vector<10x16x4xbf16>
    %24 = tpu.concatenate %21, %22, %23 in 2 : vector<10x16x4xbf16>, vector<10x16x4xbf16>, vector<10x16x4xbf16> -> vector<10x16x12xbf16>
    %25 = vector.extract_strided_slice %24 {offsets = [0, 0, 0], sizes = [8, 16, 12], strides = [1, 1, 1]} : vector<10x16x12xbf16> to vector<8x16x12xbf16>
    %26 = vector.shape_cast %25 : vector<8x16x12xbf16> to vector<128x12xbf16>
    %27 = vector.extract_strided_slice %24 {offsets = [1, 0, 0], sizes = [8, 16, 12], strides = [1, 1, 1]} : vector<10x16x12xbf16> to vector<8x16x12xbf16>
    %28 = vector.shape_cast %27 : vector<8x16x12xbf16> to vector<128x12xbf16>
    %29 = vector.extract_strided_slice %24 {offsets = [2, 0, 0], sizes = [8, 16, 12], strides = [1, 1, 1]} : vector<10x16x12xbf16> to vector<8x16x12xbf16>
    %30 = vector.shape_cast %29 : vector<8x16x12xbf16> to vector<128x12xbf16>
    %31 = tpu.concatenate %26, %28, %30 in 1 : vector<128x12xbf16>, vector<128x12xbf16>, vector<128x12xbf16> -> vector<128x36xbf16>
    %c0_11 = arith.constant 0 : index
    %c0_12 = arith.constant 0 : index
    %32 = vector.load %arg6[%c0_11, %c0_12] : memref<36x128xbf16, #tpu.memory_space<vmem>>, vector<36x128xbf16>
    %cst_13 = arith.constant dense<0.000000e+00> : vector<128x128xf32>
    %33 = tpu.matmul %31, %32, %cst_13 {dimension_numbers = #tpu.dot_dimension_numbers<[1], [0], [0], [1], [0, 0, 1, 1], [], []>} : vector<128x36xbf16>, vector<36x128xbf16>, vector<128x128xf32> -> vector<128x128xf32>
    %cst_14 = arith.constant dense<0.000000e+00> : vector<128xf32>
    %34 = vector.multi_reduction <add>, %33, %cst_14 [0] : vector<128x128xf32> to vector<128xf32>
    %35 = vector.shape_cast %34 : vector<128xf32> to vector<1x128xf32>
    %36 = arith.mulf %33, %33 : vector<128x128xf32>
    %cst_15 = arith.constant dense<0.000000e+00> : vector<128xf32>
    %37 = vector.multi_reduction <add>, %36, %cst_15 [0] : vector<128x128xf32> to vector<128xf32>
    %38 = vector.shape_cast %37 : vector<128xf32> to vector<1x128xf32>
    %39 = tpu.concatenate %35, %38 in 0 : vector<1x128xf32>, vector<1x128xf32> -> vector<2x128xf32>
    %c0_16 = arith.constant 0 : index
    %c0_17 = arith.constant 0 : index
    %c0_18 = arith.constant 0 : index
    %c0_19 = arith.constant 0 : index
    %40 = vector.load %arg9[%c0_16, %c0_17, %c0_18, %c0_19] : memref<1x1x2x128xf32, #tpu.memory_space<vmem>>, vector<1x1x2x128xf32>
    %41 = vector.shape_cast %40 : vector<1x1x2x128xf32> to vector<2x128xf32>
    %42 = vector.shape_cast %39 : vector<2x128xf32> to vector<1x1x2x128xf32>
    tpu.vector_store %arg9[%c0_16, %c0_17, %c0_18, %c0_19], %42 {strides = array<i32>} : memref<1x1x2x128xf32, #tpu.memory_space<vmem>>, vector<1x1x2x128xf32>,
    %c0_20 = arith.constant 0 : index
    %c0_21 = arith.constant 0 : index
    %43 = vector.load %arg7[%c0_20, %c0_21] : memref<1x128xf32, #tpu.memory_space<vmem>>, vector<1x128xf32>
    %44 = vector.broadcast %43 : vector<1x128xf32> to vector<128x128xf32>
    %45 = arith.addf %33, %44 : vector<128x128xf32>
    %46 = vector.extract_strided_slice %45 {offsets = [0, 0], sizes = [128, 8], strides = [1, 1]} : vector<128x128xf32> to vector<128x8xf32>
    %47 = vector.shape_cast %46 : vector<128x8xf32> to vector<8x16x8xf32>
    %48 = vector.extract_strided_slice %47 {offsets = [0, 0, 0], sizes = [8, 1, 8], strides = [1, 1, 1]} : vector<8x16x8xf32> to vector<8x1x8xf32>
    %49 = vector.shape_cast %48 : vector<8x1x8xf32> to vector<8x8xf32>
    %50 = vector.extract_strided_slice %47 {offsets = [0, 1, 0], sizes = [8, 1, 8], strides = [1, 1, 1]} : vector<8x16x8xf32> to vector<8x1x8xf32>
    %51 = vector.shape_cast %50 : vector<8x1x8xf32> to vector<8x8xf32>
    %52 = vector.extract_strided_slice %47 {offsets = [0, 2, 0], sizes = [8, 1, 8], strides = [1, 1, 1]} : vector<8x16x8xf32> to vector<8x1x8xf32>
    %53 = vector.shape_cast %52 : vector<8x1x8xf32> to vector<8x8xf32>
    %54 = vector.extract_strided_slice %47 {offsets = [0, 3, 0], sizes = [8, 1, 8], strides = [1, 1, 1]} : vector<8x16x8xf32> to vector<8x1x8xf32>
    %55 = vector.shape_cast %54 : vector<8x1x8xf32> to vector<8x8xf32>
    %56 = vector.extract_strided_slice %47 {offsets = [0, 4, 0], sizes = [8, 1, 8], strides = [1, 1, 1]} : vector<8x16x8xf32> to vector<8x1x8xf32>
    %57 = vector.shape_cast %56 : vector<8x1x8xf32> to vector<8x8xf32>
    %58 = vector.extract_strided_slice %47 {offsets = [0, 5, 0], sizes = [8, 1, 8], strides = [1, 1, 1]} : vector<8x16x8xf32> to vector<8x1x8xf32>
    %59 = vector.shape_cast %58 : vector<8x1x8xf32> to vector<8x8xf32>
    %60 = vector.extract_strided_slice %47 {offsets = [0, 6, 0], sizes = [8, 1, 8], strides = [1, 1, 1]} : vector<8x16x8xf32> to vector<8x1x8xf32>
    %61 = vector.shape_cast %60 : vector<8x1x8xf32> to vector<8x8xf32>
    %62 = vector.extract_strided_slice %47 {offsets = [0, 7, 0], sizes = [8, 1, 8], strides = [1, 1, 1]} : vector<8x16x8xf32> to vector<8x1x8xf32>
    %63 = vector.shape_cast %62 : vector<8x1x8xf32> to vector<8x8xf32>
    %64 = vector.extract_strided_slice %47 {offsets = [0, 8, 0], sizes = [8, 1, 8], strides = [1, 1, 1]} : vector<8x16x8xf32> to vector<8x1x8xf32>
    %65 = vector.shape_cast %64 : vector<8x1x8xf32> to vector<8x8xf32>
    %66 = vector.extract_strided_slice %47 {offsets = [0, 9, 0], sizes = [8, 1, 8], strides = [1, 1, 1]} : vector<8x16x8xf32> to vector<8x1x8xf32>
    %67 = vector.shape_cast %66 : vector<8x1x8xf32> to vector<8x8xf32>
    %68 = vector.extract_strided_slice %47 {offsets = [0, 10, 0], sizes = [8, 1, 8], strides = [1, 1, 1]} : vector<8x16x8xf32> to vector<8x1x8xf32>
    %69 = vector.shape_cast %68 : vector<8x1x8xf32> to vector<8x8xf32>
    %70 = vector.extract_strided_slice %47 {offsets = [0, 11, 0], sizes = [8, 1, 8], strides = [1, 1, 1]} : vector<8x16x8xf32> to vector<8x1x8xf32>
    %71 = vector.shape_cast %70 : vector<8x1x8xf32> to vector<8x8xf32>
    %72 = vector.extract_strided_slice %47 {offsets = [0, 12, 0], sizes = [8, 1, 8], strides = [1, 1, 1]} : vector<8x16x8xf32> to vector<8x1x8xf32>
    %73 = vector.shape_cast %72 : vector<8x1x8xf32> to vector<8x8xf32>
    %74 = vector.extract_strided_slice %47 {offsets = [0, 13, 0], sizes = [8, 1, 8], strides = [1, 1, 1]} : vector<8x16x8xf32> to vector<8x1x8xf32>
    %75 = vector.shape_cast %74 : vector<8x1x8xf32> to vector<8x8xf32>
    %76 = vector.extract_strided_slice %47 {offsets = [0, 14, 0], sizes = [8, 1, 8], strides = [1, 1, 1]} : vector<8x16x8xf32> to vector<8x1x8xf32>
    %77 = vector.shape_cast %76 : vector<8x1x8xf32> to vector<8x8xf32>
    %78 = vector.extract_strided_slice %47 {offsets = [0, 15, 0], sizes = [8, 1, 8], strides = [1, 1, 1]} : vector<8x16x8xf32> to vector<8x1x8xf32>
    %79 = vector.shape_cast %78 : vector<8x1x8xf32> to vector<8x8xf32>
    %80 = tpu.concatenate %49, %51, %53, %55, %57, %59, %61, %63, %65, %67, %69, %71, %73, %75, %77, %79 in 1 : vector<8x8xf32>, vector<8x8xf32>, vector<8x8xf32>, vector<8x8xf32>, vector<8x8xf32>, vector<8x8xf32>, vector<8x8xf32>, vector<8x8xf32>, vector<8x8xf32>, vector<8x8xf32>, vector<8x8xf32>, vector<8x8xf32>, vector<8x8xf32>, vector<8x8xf32>, vector<8x8xf32>, vector<8x8xf32> -> vector<8x128xf32>
    %81 = arith.truncf %80 : vector<8x128xf32> to vector<8x128xbf16>
    %c0_22 = arith.constant 0 : index
    %c0_23 = arith.constant 0 : index
    %c0_24 = arith.constant 0 : index
    %82 = vector.load %arg8[%c0_22, %c0_23, %c0_24] : memref<1x8x128xbf16, #tpu.memory_space<vmem>>, vector<1x8x128xbf16>
    %83 = vector.shape_cast %82 : vector<1x8x128xbf16> to vector<8x128xbf16>
    %84 = vector.shape_cast %81 : vector<8x128xbf16> to vector<1x8x128xbf16>
    tpu.vector_store %arg8[%c0_22, %c0_23, %c0_24], %84 {strides = array<i32>} : memref<1x8x128xbf16, #tpu.memory_space<vmem>>, vector<1x8x128xbf16>,
    return
  }
  func.func @transform_0(%arg0: i32, %arg1: i32) -> (i32, i32, i32, i32) {
    %c8_i32 = arith.constant 8 : i32
    %0 = arith.muli %arg1, %c8_i32 : i32
    %c1_i32 = arith.constant 1 : i32
    %1 = arith.subi %0, %c1_i32 : i32
    %c0_i32 = arith.constant 0 : i32
    %2 = arith.maxsi %1, %c0_i32 : i32
    %c0_i32_0 = arith.constant 0 : i32
    %c0_i32_1 = arith.constant 0 : i32
    %c0_i32_2 = arith.constant 0 : i32
    return %arg0, %2, %c0_i32_0, %c0_i32_1 : i32, i32, i32, i32
  }
  func.func @transform_1(%arg0: i32, %arg1: i32) -> (i32, i32, i32, i32) {
    %c0_i32 = arith.constant 0 : i32
    %c0_i32_0 = arith.constant 0 : i32
    %c0_i32_1 = arith.constant 0 : i32
    return %arg0, %arg1, %c0_i32, %c0_i32_0 : i32, i32, i32, i32
  }
  func.func @transform_2(%arg0: i32, %arg1: i32) -> (i32, i32, i32, i32) {
    %c1_i32 = arith.constant 1 : i32
    %0 = arith.addi %arg1, %c1_i32 : i32
    %c8_i32 = arith.constant 8 : i32
    %1 = arith.muli %0, %c8_i32 : i32
    %c15_i32 = arith.constant 15 : i32
    %2 = arith.minsi %1, %c15_i32 : i32
    %c0_i32 = arith.constant 0 : i32
    %c0_i32_0 = arith.constant 0 : i32
    %c0_i32_1 = arith.constant 0 : i32
    return %arg0, %2, %c0_i32, %c0_i32_0 : i32, i32, i32, i32
  }
  func.func @transform_3(%arg0: i32, %arg1: i32) -> (i32, i32) {
    %c0_i32 = arith.constant 0 : i32
    %c0_i32_0 = arith.constant 0 : i32
    %c0_i32_1 = arith.constant 0 : i32
    return %c0_i32, %c0_i32_0 : i32, i32
  }
  func.func @transform_4(%arg0: i32, %arg1: i32) -> (i32, i32) {
    %c0_i32 = arith.constant 0 : i32
    %c0_i32_0 = arith.constant 0 : i32
    %c0_i32_1 = arith.constant 0 : i32
    return %c0_i32, %c0_i32_0 : i32, i32
  }
  func.func @transform_5(%arg0: i32, %arg1: i32) -> (i32, i32) {
    %c0_i32 = arith.constant 0 : i32
    %c0_i32_0 = arith.constant 0 : i32
    %c0_i32_1 = arith.constant 0 : i32
    return %c0_i32, %c0_i32_0 : i32, i32
  }
  func.func @transform_6(%arg0: i32, %arg1: i32) -> (i32, i32, i32) {
    %c2_i32 = arith.constant 2 : i32
    %0 = arith.muli %arg0, %c2_i32 : i32
    %1 = arith.addi %0, %arg1 : i32
    %c0_i32 = arith.constant 0 : i32
    %c0_i32_0 = arith.constant 0 : i32
    %c0_i32_1 = arith.constant 0 : i32
    return %1, %c0_i32, %c0_i32_0 : i32, i32, i32
  }
  func.func @transform_7(%arg0: i32, %arg1: i32) -> (i32, i32, i32, i32) {
    %c0_i32 = arith.constant 0 : i32
    %c0_i32_0 = arith.constant 0 : i32
    %c0_i32_1 = arith.constant 0 : i32
    return %arg0, %arg1, %c0_i32, %c0_i32_0 : i32, i32, i32, i32
  }
}

module attributes {stable_mosaic.version = 11 : i64} {
  func.func @_conv_stage_kernel(%arg0: i32, %arg1: i32, %arg2: memref<1x1x16x8xbf16, #tpu.memory_space<vmem>>, %arg3: memref<1x8x16x8xbf16, #tpu.memory_space<vmem>>, %arg4: memref<1x1x16x8xbf16, #tpu.memory_space<vmem>>, %arg5: memref<2x8xf32, #tpu.memory_space<vmem>>, %arg6: memref<72x128xbf16, #tpu.memory_space<vmem>>, %arg7: memref<1x128xf32, #tpu.memory_space<vmem>>, %arg8: memref<1x8x128xf32, #tpu.memory_space<vmem>>, %arg9: memref<1x1x2x128xf32, #tpu.memory_space<vmem>>) attributes {dimension_semantics = [#tpu.dimension_semantics<parallel>, #tpu.dimension_semantics<parallel>], iteration_bounds = array<i64: 2, 2>, scalar_prefetch = 0 : i64, scratch_operands = 0 : i64, tpu.core_type = #tpu.core_type<tc>, window_params = [{transform_indices = @transform_0, window_bounds = array<i64: 1, 1, 16, 8>}, {transform_indices = @transform_1, window_bounds = array<i64: 1, 8, 16, 8>}, {transform_indices = @transform_2, window_bounds = array<i64: 1, 1, 16, 8>}, {pipeline_mode = #tpu.pipeline_mode<synchronous>, transform_indices = @transform_3, window_bounds = array<i64: 2, 8>}, {pipeline_mode = #tpu.pipeline_mode<synchronous>, transform_indices = @transform_4, window_bounds = array<i64: 72, 128>}, {pipeline_mode = #tpu.pipeline_mode<synchronous>, transform_indices = @transform_5, window_bounds = array<i64: 1, 128>}, {transform_indices = @transform_6, window_bounds = array<i64: 1, 8, 128>}, {transform_indices = @transform_7, window_bounds = array<i64: 1, 1, 2, 128>}]} {
    %c0 = arith.constant 0 : index
    %c0_0 = arith.constant 0 : index
    %0 = vector.load %arg5[%c0, %c0_0] : memref<2x8xf32, #tpu.memory_space<vmem>>, vector<1x8xf32>
    %1 = vector.shape_cast %0 : vector<1x8xf32> to vector<1x1x8xf32>
    %c1 = arith.constant 1 : index
    %c0_1 = arith.constant 0 : index
    %2 = vector.load %arg5[%c1, %c0_1] : memref<2x8xf32, #tpu.memory_space<vmem>>, vector<1x8xf32>
    %3 = vector.shape_cast %2 : vector<1x8xf32> to vector<1x1x8xf32>
    %c0_2 = arith.constant 0 : index
    %c0_3 = arith.constant 0 : index
    %c0_4 = arith.constant 0 : index
    %c0_5 = arith.constant 0 : index
    %4 = vector.load %arg2[%c0_2, %c0_3, %c0_4, %c0_5] : memref<1x1x16x8xbf16, #tpu.memory_space<vmem>>, vector<1x1x16x8xbf16>
    %5 = vector.shape_cast %4 : vector<1x1x16x8xbf16> to vector<1x16x8xbf16>
    %6 = arith.extf %5 : vector<1x16x8xbf16> to vector<1x16x8xf32>
    %7 = vector.broadcast %1 : vector<1x1x8xf32> to vector<1x16x8xf32>
    %8 = arith.mulf %6, %7 : vector<1x16x8xf32>
    %9 = vector.broadcast %3 : vector<1x1x8xf32> to vector<1x16x8xf32>
    %10 = arith.addf %8, %9 : vector<1x16x8xf32>
    %cst = arith.constant 0.000000e+00 : f32
    %11 = vector.broadcast %cst : f32 to vector<1x16x8xf32>
    %12 = arith.maximumf %10, %11 : vector<1x16x8xf32>
    %13 = arith.truncf %12 : vector<1x16x8xf32> to vector<1x16x8xbf16>
    %c0_6 = arith.constant 0 : index
    %c0_7 = arith.constant 0 : index
    %c0_8 = arith.constant 0 : index
    %c0_9 = arith.constant 0 : index
    %14 = vector.load %arg3[%c0_6, %c0_7, %c0_8, %c0_9] : memref<1x8x16x8xbf16, #tpu.memory_space<vmem>>, vector<1x8x16x8xbf16>
    %15 = vector.shape_cast %14 : vector<1x8x16x8xbf16> to vector<8x16x8xbf16>
    %16 = arith.extf %15 : vector<8x16x8xbf16> to vector<8x16x8xf32>
    %17 = vector.broadcast %1 : vector<1x1x8xf32> to vector<8x16x8xf32>
    %18 = arith.mulf %16, %17 : vector<8x16x8xf32>
    %19 = vector.broadcast %3 : vector<1x1x8xf32> to vector<8x16x8xf32>
    %20 = arith.addf %18, %19 : vector<8x16x8xf32>
    %cst_10 = arith.constant 0.000000e+00 : f32
    %21 = vector.broadcast %cst_10 : f32 to vector<8x16x8xf32>
    %22 = arith.maximumf %20, %21 : vector<8x16x8xf32>
    %23 = arith.truncf %22 : vector<8x16x8xf32> to vector<8x16x8xbf16>
    %c0_11 = arith.constant 0 : index
    %c0_12 = arith.constant 0 : index
    %c0_13 = arith.constant 0 : index
    %c0_14 = arith.constant 0 : index
    %24 = vector.load %arg4[%c0_11, %c0_12, %c0_13, %c0_14] : memref<1x1x16x8xbf16, #tpu.memory_space<vmem>>, vector<1x1x16x8xbf16>
    %25 = vector.shape_cast %24 : vector<1x1x16x8xbf16> to vector<1x16x8xbf16>
    %26 = arith.extf %25 : vector<1x16x8xbf16> to vector<1x16x8xf32>
    %27 = vector.broadcast %1 : vector<1x1x8xf32> to vector<1x16x8xf32>
    %28 = arith.mulf %26, %27 : vector<1x16x8xf32>
    %29 = vector.broadcast %3 : vector<1x1x8xf32> to vector<1x16x8xf32>
    %30 = arith.addf %28, %29 : vector<1x16x8xf32>
    %cst_15 = arith.constant 0.000000e+00 : f32
    %31 = vector.broadcast %cst_15 : f32 to vector<1x16x8xf32>
    %32 = arith.maximumf %30, %31 : vector<1x16x8xf32>
    %33 = arith.truncf %32 : vector<1x16x8xf32> to vector<1x16x8xbf16>
    %c0_i32 = arith.constant 0 : i32
    %34 = arith.cmpi sgt, %arg1, %c0_i32 : i32
    %35 = arith.extui %34 : i1 to i32
    %36 = arith.sitofp %35 : i32 to f32
    %37 = arith.truncf %36 : f32 to bf16
    %38 = vector.broadcast %37 : bf16 to vector<1x16x8xbf16>
    %39 = arith.mulf %13, %38 : vector<1x16x8xbf16>
    %c1_i32 = arith.constant 1 : i32
    %40 = arith.cmpi slt, %arg1, %c1_i32 : i32
    %41 = arith.extui %40 : i1 to i32
    %42 = arith.sitofp %41 : i32 to f32
    %43 = arith.truncf %42 : f32 to bf16
    %44 = vector.broadcast %43 : bf16 to vector<1x16x8xbf16>
    %45 = arith.mulf %33, %44 : vector<1x16x8xbf16>
    %46 = tpu.concatenate %39, %23, %45 in 0 : vector<1x16x8xbf16>, vector<8x16x8xbf16>, vector<1x16x8xbf16> -> vector<10x16x8xbf16>
    %cst_16 = arith.constant 0.000000e+00 : bf16
    %47 = vector.broadcast %cst_16 : bf16 to vector<10x1x8xbf16>
    %48 = tpu.concatenate %47, %46, %47 in 1 : vector<10x1x8xbf16>, vector<10x16x8xbf16>, vector<10x1x8xbf16> -> vector<10x18x8xbf16>
    %49 = vector.extract_strided_slice %48 {offsets = [0, 0, 0], sizes = [10, 16, 8], strides = [1, 1, 1]} : vector<10x18x8xbf16> to vector<10x16x8xbf16>
    %50 = vector.extract_strided_slice %48 {offsets = [0, 1, 0], sizes = [10, 16, 8], strides = [1, 1, 1]} : vector<10x18x8xbf16> to vector<10x16x8xbf16>
    %51 = vector.extract_strided_slice %48 {offsets = [0, 2, 0], sizes = [10, 16, 8], strides = [1, 1, 1]} : vector<10x18x8xbf16> to vector<10x16x8xbf16>
    %52 = tpu.concatenate %49, %50, %51 in 2 : vector<10x16x8xbf16>, vector<10x16x8xbf16>, vector<10x16x8xbf16> -> vector<10x16x24xbf16>
    %53 = vector.extract_strided_slice %52 {offsets = [0, 0, 0], sizes = [8, 16, 24], strides = [1, 1, 1]} : vector<10x16x24xbf16> to vector<8x16x24xbf16>
    %54 = vector.shape_cast %53 : vector<8x16x24xbf16> to vector<128x24xbf16>
    %55 = vector.extract_strided_slice %52 {offsets = [1, 0, 0], sizes = [8, 16, 24], strides = [1, 1, 1]} : vector<10x16x24xbf16> to vector<8x16x24xbf16>
    %56 = vector.shape_cast %55 : vector<8x16x24xbf16> to vector<128x24xbf16>
    %57 = vector.extract_strided_slice %52 {offsets = [2, 0, 0], sizes = [8, 16, 24], strides = [1, 1, 1]} : vector<10x16x24xbf16> to vector<8x16x24xbf16>
    %58 = vector.shape_cast %57 : vector<8x16x24xbf16> to vector<128x24xbf16>
    %59 = tpu.concatenate %54, %56, %58 in 1 : vector<128x24xbf16>, vector<128x24xbf16>, vector<128x24xbf16> -> vector<128x72xbf16>
    %c0_17 = arith.constant 0 : index
    %c0_18 = arith.constant 0 : index
    %60 = vector.load %arg6[%c0_17, %c0_18] : memref<72x128xbf16, #tpu.memory_space<vmem>>, vector<72x128xbf16>
    %cst_19 = arith.constant dense<0.000000e+00> : vector<128x128xf32>
    %61 = tpu.matmul %59, %60, %cst_19 {dimension_numbers = #tpu.dot_dimension_numbers<[1], [0], [0], [1], [0, 0, 1, 1], [], []>} : vector<128x72xbf16>, vector<72x128xbf16>, vector<128x128xf32> -> vector<128x128xf32>
    %cst_20 = arith.constant dense<0.000000e+00> : vector<128xf32>
    %62 = vector.multi_reduction <add>, %61, %cst_20 [0] : vector<128x128xf32> to vector<128xf32>
    %63 = vector.shape_cast %62 : vector<128xf32> to vector<1x128xf32>
    %64 = arith.mulf %61, %61 : vector<128x128xf32>
    %cst_21 = arith.constant dense<0.000000e+00> : vector<128xf32>
    %65 = vector.multi_reduction <add>, %64, %cst_21 [0] : vector<128x128xf32> to vector<128xf32>
    %66 = vector.shape_cast %65 : vector<128xf32> to vector<1x128xf32>
    %67 = tpu.concatenate %63, %66 in 0 : vector<1x128xf32>, vector<1x128xf32> -> vector<2x128xf32>
    %c0_22 = arith.constant 0 : index
    %c0_23 = arith.constant 0 : index
    %c0_24 = arith.constant 0 : index
    %c0_25 = arith.constant 0 : index
    %68 = vector.load %arg9[%c0_22, %c0_23, %c0_24, %c0_25] : memref<1x1x2x128xf32, #tpu.memory_space<vmem>>, vector<1x1x2x128xf32>
    %69 = vector.shape_cast %68 : vector<1x1x2x128xf32> to vector<2x128xf32>
    %70 = vector.shape_cast %67 : vector<2x128xf32> to vector<1x1x2x128xf32>
    tpu.vector_store %arg9[%c0_22, %c0_23, %c0_24, %c0_25], %70 {strides = array<i32>} : memref<1x1x2x128xf32, #tpu.memory_space<vmem>>, vector<1x1x2x128xf32>,
    %c0_26 = arith.constant 0 : index
    %c0_27 = arith.constant 0 : index
    %71 = vector.load %arg7[%c0_26, %c0_27] : memref<1x128xf32, #tpu.memory_space<vmem>>, vector<1x128xf32>
    %72 = vector.broadcast %71 : vector<1x128xf32> to vector<128x128xf32>
    %73 = arith.addf %61, %72 : vector<128x128xf32>
    %74 = vector.extract_strided_slice %73 {offsets = [0, 0], sizes = [128, 8], strides = [1, 1]} : vector<128x128xf32> to vector<128x8xf32>
    %75 = vector.shape_cast %74 : vector<128x8xf32> to vector<8x16x8xf32>
    %76 = vector.extract_strided_slice %75 {offsets = [0, 0, 0], sizes = [8, 1, 8], strides = [1, 1, 1]} : vector<8x16x8xf32> to vector<8x1x8xf32>
    %77 = vector.shape_cast %76 : vector<8x1x8xf32> to vector<8x8xf32>
    %78 = vector.extract_strided_slice %75 {offsets = [0, 1, 0], sizes = [8, 1, 8], strides = [1, 1, 1]} : vector<8x16x8xf32> to vector<8x1x8xf32>
    %79 = vector.shape_cast %78 : vector<8x1x8xf32> to vector<8x8xf32>
    %80 = vector.extract_strided_slice %75 {offsets = [0, 2, 0], sizes = [8, 1, 8], strides = [1, 1, 1]} : vector<8x16x8xf32> to vector<8x1x8xf32>
    %81 = vector.shape_cast %80 : vector<8x1x8xf32> to vector<8x8xf32>
    %82 = vector.extract_strided_slice %75 {offsets = [0, 3, 0], sizes = [8, 1, 8], strides = [1, 1, 1]} : vector<8x16x8xf32> to vector<8x1x8xf32>
    %83 = vector.shape_cast %82 : vector<8x1x8xf32> to vector<8x8xf32>
    %84 = vector.extract_strided_slice %75 {offsets = [0, 4, 0], sizes = [8, 1, 8], strides = [1, 1, 1]} : vector<8x16x8xf32> to vector<8x1x8xf32>
    %85 = vector.shape_cast %84 : vector<8x1x8xf32> to vector<8x8xf32>
    %86 = vector.extract_strided_slice %75 {offsets = [0, 5, 0], sizes = [8, 1, 8], strides = [1, 1, 1]} : vector<8x16x8xf32> to vector<8x1x8xf32>
    %87 = vector.shape_cast %86 : vector<8x1x8xf32> to vector<8x8xf32>
    %88 = vector.extract_strided_slice %75 {offsets = [0, 6, 0], sizes = [8, 1, 8], strides = [1, 1, 1]} : vector<8x16x8xf32> to vector<8x1x8xf32>
    %89 = vector.shape_cast %88 : vector<8x1x8xf32> to vector<8x8xf32>
    %90 = vector.extract_strided_slice %75 {offsets = [0, 7, 0], sizes = [8, 1, 8], strides = [1, 1, 1]} : vector<8x16x8xf32> to vector<8x1x8xf32>
    %91 = vector.shape_cast %90 : vector<8x1x8xf32> to vector<8x8xf32>
    %92 = vector.extract_strided_slice %75 {offsets = [0, 8, 0], sizes = [8, 1, 8], strides = [1, 1, 1]} : vector<8x16x8xf32> to vector<8x1x8xf32>
    %93 = vector.shape_cast %92 : vector<8x1x8xf32> to vector<8x8xf32>
    %94 = vector.extract_strided_slice %75 {offsets = [0, 9, 0], sizes = [8, 1, 8], strides = [1, 1, 1]} : vector<8x16x8xf32> to vector<8x1x8xf32>
    %95 = vector.shape_cast %94 : vector<8x1x8xf32> to vector<8x8xf32>
    %96 = vector.extract_strided_slice %75 {offsets = [0, 10, 0], sizes = [8, 1, 8], strides = [1, 1, 1]} : vector<8x16x8xf32> to vector<8x1x8xf32>
    %97 = vector.shape_cast %96 : vector<8x1x8xf32> to vector<8x8xf32>
    %98 = vector.extract_strided_slice %75 {offsets = [0, 11, 0], sizes = [8, 1, 8], strides = [1, 1, 1]} : vector<8x16x8xf32> to vector<8x1x8xf32>
    %99 = vector.shape_cast %98 : vector<8x1x8xf32> to vector<8x8xf32>
    %100 = vector.extract_strided_slice %75 {offsets = [0, 12, 0], sizes = [8, 1, 8], strides = [1, 1, 1]} : vector<8x16x8xf32> to vector<8x1x8xf32>
    %101 = vector.shape_cast %100 : vector<8x1x8xf32> to vector<8x8xf32>
    %102 = vector.extract_strided_slice %75 {offsets = [0, 13, 0], sizes = [8, 1, 8], strides = [1, 1, 1]} : vector<8x16x8xf32> to vector<8x1x8xf32>
    %103 = vector.shape_cast %102 : vector<8x1x8xf32> to vector<8x8xf32>
    %104 = vector.extract_strided_slice %75 {offsets = [0, 14, 0], sizes = [8, 1, 8], strides = [1, 1, 1]} : vector<8x16x8xf32> to vector<8x1x8xf32>
    %105 = vector.shape_cast %104 : vector<8x1x8xf32> to vector<8x8xf32>
    %106 = vector.extract_strided_slice %75 {offsets = [0, 15, 0], sizes = [8, 1, 8], strides = [1, 1, 1]} : vector<8x16x8xf32> to vector<8x1x8xf32>
    %107 = vector.shape_cast %106 : vector<8x1x8xf32> to vector<8x8xf32>
    %108 = tpu.concatenate %77, %79, %81, %83, %85, %87, %89, %91, %93, %95, %97, %99, %101, %103, %105, %107 in 1 : vector<8x8xf32>, vector<8x8xf32>, vector<8x8xf32>, vector<8x8xf32>, vector<8x8xf32>, vector<8x8xf32>, vector<8x8xf32>, vector<8x8xf32>, vector<8x8xf32>, vector<8x8xf32>, vector<8x8xf32>, vector<8x8xf32>, vector<8x8xf32>, vector<8x8xf32>, vector<8x8xf32>, vector<8x8xf32> -> vector<8x128xf32>
    %c0_28 = arith.constant 0 : index
    %c0_29 = arith.constant 0 : index
    %c0_30 = arith.constant 0 : index
    %109 = vector.load %arg8[%c0_28, %c0_29, %c0_30] : memref<1x8x128xf32, #tpu.memory_space<vmem>>, vector<1x8x128xf32>
    %110 = vector.shape_cast %109 : vector<1x8x128xf32> to vector<8x128xf32>
    %111 = vector.shape_cast %108 : vector<8x128xf32> to vector<1x8x128xf32>
    tpu.vector_store %arg8[%c0_28, %c0_29, %c0_30], %111 {strides = array<i32>} : memref<1x8x128xf32, #tpu.memory_space<vmem>>, vector<1x8x128xf32>,
    return
  }
  func.func @transform_0(%arg0: i32, %arg1: i32) -> (i32, i32, i32, i32) {
    %c8_i32 = arith.constant 8 : i32
    %0 = arith.muli %arg1, %c8_i32 : i32
    %c1_i32 = arith.constant 1 : i32
    %1 = arith.subi %0, %c1_i32 : i32
    %c0_i32 = arith.constant 0 : i32
    %2 = arith.maxsi %1, %c0_i32 : i32
    %c0_i32_0 = arith.constant 0 : i32
    %c0_i32_1 = arith.constant 0 : i32
    %c0_i32_2 = arith.constant 0 : i32
    return %arg0, %2, %c0_i32_0, %c0_i32_1 : i32, i32, i32, i32
  }
  func.func @transform_1(%arg0: i32, %arg1: i32) -> (i32, i32, i32, i32) {
    %c0_i32 = arith.constant 0 : i32
    %c0_i32_0 = arith.constant 0 : i32
    %c0_i32_1 = arith.constant 0 : i32
    return %arg0, %arg1, %c0_i32, %c0_i32_0 : i32, i32, i32, i32
  }
  func.func @transform_2(%arg0: i32, %arg1: i32) -> (i32, i32, i32, i32) {
    %c1_i32 = arith.constant 1 : i32
    %0 = arith.addi %arg1, %c1_i32 : i32
    %c8_i32 = arith.constant 8 : i32
    %1 = arith.muli %0, %c8_i32 : i32
    %c15_i32 = arith.constant 15 : i32
    %2 = arith.minsi %1, %c15_i32 : i32
    %c0_i32 = arith.constant 0 : i32
    %c0_i32_0 = arith.constant 0 : i32
    %c0_i32_1 = arith.constant 0 : i32
    return %arg0, %2, %c0_i32, %c0_i32_0 : i32, i32, i32, i32
  }
  func.func @transform_3(%arg0: i32, %arg1: i32) -> (i32, i32) {
    %c0_i32 = arith.constant 0 : i32
    %c0_i32_0 = arith.constant 0 : i32
    %c0_i32_1 = arith.constant 0 : i32
    return %c0_i32, %c0_i32_0 : i32, i32
  }
  func.func @transform_4(%arg0: i32, %arg1: i32) -> (i32, i32) {
    %c0_i32 = arith.constant 0 : i32
    %c0_i32_0 = arith.constant 0 : i32
    %c0_i32_1 = arith.constant 0 : i32
    return %c0_i32, %c0_i32_0 : i32, i32
  }
  func.func @transform_5(%arg0: i32, %arg1: i32) -> (i32, i32) {
    %c0_i32 = arith.constant 0 : i32
    %c0_i32_0 = arith.constant 0 : i32
    %c0_i32_1 = arith.constant 0 : i32
    return %c0_i32, %c0_i32_0 : i32, i32
  }
  func.func @transform_6(%arg0: i32, %arg1: i32) -> (i32, i32, i32) {
    %c2_i32 = arith.constant 2 : i32
    %0 = arith.muli %arg0, %c2_i32 : i32
    %1 = arith.addi %0, %arg1 : i32
    %c0_i32 = arith.constant 0 : i32
    %c0_i32_0 = arith.constant 0 : i32
    %c0_i32_1 = arith.constant 0 : i32
    return %1, %c0_i32, %c0_i32_0 : i32, i32, i32
  }
  func.func @transform_7(%arg0: i32, %arg1: i32) -> (i32, i32, i32, i32) {
    %c0_i32 = arith.constant 0 : i32
    %c0_i32_0 = arith.constant 0 : i32
    %c0_i32_1 = arith.constant 0 : i32
    return %arg0, %arg1, %c0_i32, %c0_i32_0 : i32, i32, i32, i32
  }
}

module attributes {stable_mosaic.version = 11 : i64} {
  func.func @_bn_relu_kernel(%arg0: i32, %arg1: memref<32x128xf32, #tpu.memory_space<vmem>>, %arg2: memref<2x128xf32, #tpu.memory_space<vmem>>, %arg3: memref<32x128xf32, #tpu.memory_space<vmem>>) attributes {dimension_semantics = [#tpu.dimension_semantics<parallel>], iteration_bounds = array<i64: 1>, scalar_prefetch = 0 : i64, scratch_operands = 0 : i64, tpu.core_type = #tpu.core_type<tc>, window_params = [{transform_indices = @transform_0, window_bounds = array<i64: 32, 128>}, {pipeline_mode = #tpu.pipeline_mode<synchronous>, transform_indices = @transform_1, window_bounds = array<i64: 2, 128>}, {transform_indices = @transform_2, window_bounds = array<i64: 32, 128>}]} {
    %c0 = arith.constant 0 : index
    %c0_0 = arith.constant 0 : index
    %0 = vector.load %arg1[%c0, %c0_0] : memref<32x128xf32, #tpu.memory_space<vmem>>, vector<32x128xf32>
    %c0_1 = arith.constant 0 : index
    %c0_2 = arith.constant 0 : index
    %1 = vector.load %arg2[%c0_1, %c0_2] : memref<2x128xf32, #tpu.memory_space<vmem>>, vector<1x128xf32>
    %2 = vector.broadcast %1 : vector<1x128xf32> to vector<32x128xf32>
    %3 = arith.mulf %0, %2 : vector<32x128xf32>
    %c1 = arith.constant 1 : index
    %c0_3 = arith.constant 0 : index
    %4 = vector.load %arg2[%c1, %c0_3] : memref<2x128xf32, #tpu.memory_space<vmem>>, vector<1x128xf32>
    %5 = vector.broadcast %4 : vector<1x128xf32> to vector<32x128xf32>
    %6 = arith.addf %3, %5 : vector<32x128xf32>
    %cst = arith.constant 0.000000e+00 : f32
    %7 = vector.broadcast %cst : f32 to vector<32x128xf32>
    %8 = arith.maximumf %6, %7 : vector<32x128xf32>
    %c0_4 = arith.constant 0 : index
    %c0_5 = arith.constant 0 : index
    %9 = vector.load %arg3[%c0_4, %c0_5] : memref<32x128xf32, #tpu.memory_space<vmem>>, vector<32x128xf32>
    tpu.vector_store %arg3[%c0_4, %c0_5], %8 {strides = array<i32>} : memref<32x128xf32, #tpu.memory_space<vmem>>, vector<32x128xf32>,
    return
  }
  func.func @transform_0(%arg0: i32) -> (i32, i32) {
    %c0_i32 = arith.constant 0 : i32
    %c0_i32_0 = arith.constant 0 : i32
    return %arg0, %c0_i32 : i32, i32
  }
  func.func @transform_1(%arg0: i32) -> (i32, i32) {
    %c0_i32 = arith.constant 0 : i32
    %c0_i32_0 = arith.constant 0 : i32
    %c0_i32_1 = arith.constant 0 : i32
    return %c0_i32, %c0_i32_0 : i32, i32
  }
  func.func @transform_2(%arg0: i32) -> (i32, i32) {
    %c0_i32 = arith.constant 0 : i32
    %c0_i32_0 = arith.constant 0 : i32
    return %arg0, %c0_i32 : i32, i32
  }
}

</mosaic_0001>

<bundles_post_ra>
// kernel: tile.17
= control target key start
LH: loop header
LB: loop body
LE: loop exit
PB: predicated region body
PF: predicated region fallthrough
CT: control target
= control target key end

     0   :  { %s28_s0 = inlined_call_operand.vmem [shape: f32[8], index: 0, kind: input, shape index: {}]   ;;  %s29_s1 = inlined_call_operand.vmem [shape: f32[16,8], index: 1, kind: output, shape index: {}]  }
   0x1   :  { %v4_v0 = vld [vmem:[%s28_s0] ss:$0 sm:$0xff] }
   0x2   :  { %5 = vst [vmem:[%s29_s1] sm:$0xff] %v4_v0 }
   0x3   :  { %8 = vst [vmem:[%s29_s1 + $0x8] sm:$0xff] %v4_v0 }

// kernel: tile.19
= control target key start
LH: loop header
LB: loop body
LE: loop exit
PB: predicated region body
PF: predicated region fallthrough
CT: control target
= control target key end

     0   :  { %s131_s10 = smov 120   ;;  %s132_s11 = smov 104   ;;  %vm3_vm0 = vcmask 64512   ;;  %vm9_vm1 = vcmask 1048512   ;;  %vm15_vm2 = vcmask 982912   ;;  %vm21_vm3 = vcmask 917312   ;;  %s207_s0 = inlined_call_operand.vmem [shape: f32[16,8], index: 0, kind: input, shape index: {}]   ;;  %s208_s1 = inlined_call_operand.vmem [shape: f32[1,128], index: 1, kind: output, shape index: {}]  }
   0x1   :  { %v101_v0 = vld [vmem:[%s207_s0 + $0xf] sm:$0x1]   ;;  %v103_v1 = vld [vmem:[%s207_s0 + $0xd] sm:$0x1]   ;;  %v105_v2 = vld [vmem:[%s207_s0 + $0xb] sm:$0x1]  }
   0x2   :  { %7 = vrot.lane.b32.xlu0 %v101_v0, %s131_s10  ;;  %19 = vrot.lane.b32.xlu1 %v103_v1, %s132_s11  ;;  %s133_s14 = smov 88   ;;  %v102_v3 = vld [vmem:[%s207_s0 + $0xe] sm:$0x1]   ;;  %v104_v4 = vld [vmem:[%s207_s0 + $0xc] sm:$0x1]   ;;  %s134_s19 = smov 112  }
   0x3   :  { %31 = vrot.lane.b32.xlu2 %v105_v2, %s133_s14  ;;  %s135_s20 = smov 96   ;;  %v106_v5 = vld [vmem:[%s207_s0 + $0xa] sm:$0x1]   ;;  %s136_s23 = smov 80   ;;  %v107_v6 = vld [vmem:[%s207_s0 + $0x9] sm:$0x1]  }
   0x4   :  { %v108_v7 = vld [vmem:[%s207_s0 + $0x8] sm:$0x1]   ;;  %s137_s28 = smov 72   ;;  %s138_s29 = smov 64   ;;  %v109_v8 = vld [vmem:[%s207_s0 + $0x7] sm:$0x1]  }
   0x5   :  { %s139_s3 = smov 56   ;;  %v110_v9 = vld [vmem:[%s207_s0 + $0x6] sm:$0x1]   ;;  %v111_v10 = vld [vmem:[%s207_s0 + $0x5] sm:$0x1]   ;;  %s140_s8 = smov 48  }
   0x6   :  { %s141_s9 = smov 40   ;;  %v112_v11 = vld [vmem:[%s207_s0 + $0x4] sm:$0x1]   ;;  %s142_s12 = smov 32   ;;  %v113_v12 = vld [vmem:[%s207_s0 + $0x3] sm:$0x1]  }
   0x7   :  { %v114_v13 = vld [vmem:[%s207_s0 + $0x2] sm:$0x1]   ;;  %s143_s17 = smov 24   ;;  %s144_s18 = smov 16   ;;  %v115_v14 = vld [vmem:[%s207_s0 + $0x1] sm:$0x1]  }
   0x8   :  { %s145_s21 = smov 8   ;;  %v2_v15 = vld [vmem:[%s207_s0] sm:$0x1]   ;;  %vm27_vm4 = vcmask 851712   ;;  %vm33_vm5 = vcmask 786112   ;;  %vm39_vm6 = vcmask 720512  }
   0x9   :  { %4 = vst.msk [vmem:[#allocation0] sm:$0x1] %vm3_vm0, %v2_v15   ;;  %vm45_vm7 = vcmask 654912   ;;  %vm51_vm8 = vcmask 589312   ;;  %vm57_vm9 = vcmask 523712   ;;  %vm63_vm10 = vcmask 458112  }
   0xa   :  { %13 = vrot.lane.b32.xlu0 %v102_v3, %s134_s19  ;;  %25 = vrot.lane.b32.xlu1 %v104_v4, %s135_s20  ;;  %vm69_vm11 = vcmask 392512   ;;  %vm75_vm12 = vcmask 326912   ;;  %vm81_vm13 = vcmask 261312   ;;  %vm87_vm14 = vcmask 195712  }
   0xb   :  { %37 = vrot.lane.b32.xlu2 %v106_v5, %s136_s23  ;;  %vm93_vm15 = vcmask 130112  }
  0x12   :  { %43 = vrot.lane.b32.xlu0 %v107_v6, %s137_s28  ;;  %49 = vrot.lane.b32.xlu1 %v108_v7, %s138_s29 }
  0x13   :  { %55 = vrot.lane.b32.xlu2 %v109_v8, %s139_s3 }
  0x1a   :  { %61 = vrot.lane.b32.xlu0 %v110_v9, %s140_s8  ;;  %67 = vrot.lane.b32.xlu1 %v111_v10, %s141_s9 }
  0x1b   :  { %73 = vrot.lane.b32.xlu2 %v112_v11, %s142_s12 }
  0x22   :  { %79 = vrot.lane.b32.xlu0 %v113_v12, %s143_s17  ;;  %85 = vrot.lane.b32.xlu1 %v114_v13, %s144_s18 }
  0x23   :  { %91 = vrot.lane.b32.xlu2 %v115_v14, %s145_s21 }
  0x5d   :  { %v32_v16 = vpop.permute.xlu2 %31  }
  0x65   :  { %v38_v17 = vpop.permute.xlu2 %37  }
  0x6d   :  { %v56_v18 = vpop.permute.xlu2 %55  }
  0x74   :  { %v8_v19 = vpop.permute.xlu0 %7   ;;  %v20_v20 = vpop.permute.xlu1 %19  }
  0x75   :  { %10 = vst.msk [vmem:[#allocation0] sm:$0x1] %vm9_vm1, %v8_v19   ;;  %v74_v21 = vpop.permute.xlu2 %73  }
  0x7c   :  { %v14_v22 = vpop.permute.xlu0 %13   ;;  %v26_v23 = vpop.permute.xlu1 %25  }
  0x7d   :  { %16 = vst.msk [vmem:[#allocation0] sm:$0x1] %vm15_vm2, %v14_v22   ;;  %v92_v24 = vpop.permute.xlu2 %91  }
  0x7e   :  { %22 = vst.msk [vmem:[#allocation0] sm:$0x1] %vm21_vm3, %v20_v20  }
  0x7f   :  { %28 = vst.msk [vmem:[#allocation0] sm:$0x1] %vm27_vm4, %v26_v23  }
  0x80   :  { %34 = vst.msk [vmem:[#allocation0] sm:$0x1] %vm33_vm5, %v32_v16  }
  0x81   :  { %40 = vst.msk [vmem:[#allocation0] sm:$0x1] %vm39_vm6, %v38_v17  }
  0x84   :  { %v44_v25 = vpop.permute.xlu0 %43   ;;  %v50_v26 = vpop.permute.xlu1 %49  }
  0x85   :  { %46 = vst.msk [vmem:[#allocation0] sm:$0x1] %vm45_vm7, %v44_v25  }
  0x86   :  { %52 = vst.msk [vmem:[#allocation0] sm:$0x1] %vm51_vm8, %v50_v26  }
  0x87   :  { %58 = vst.msk [vmem:[#allocation0] sm:$0x1] %vm57_vm9, %v56_v18  }
  0x8c   :  { %v62_v27 = vpop.permute.xlu0 %61   ;;  %v68_v28 = vpop.permute.xlu1 %67  }
  0x8d   :  { %64 = vst.msk [vmem:[#allocation0] sm:$0x1] %vm63_vm10, %v62_v27  }
  0x8e   :  { %70 = vst.msk [vmem:[#allocation0] sm:$0x1] %vm69_vm11, %v68_v28  }
  0x8f   :  { %76 = vst.msk [vmem:[#allocation0] sm:$0x1] %vm75_vm12, %v74_v21  }
  0x94   :  { %v80_v29 = vpop.permute.xlu0 %79   ;;  %v86_v30 = vpop.permute.xlu1 %85  }
  0x95   :  { %82 = vst.msk [vmem:[#allocation0] sm:$0x1] %vm81_vm13, %v80_v29  }
  0x96   :  { %88 = vst.msk [vmem:[#allocation0] sm:$0x1] %vm87_vm14, %v86_v30  }
  0x97   :  { %94 = vst.msk [vmem:[#allocation0] sm:$0x1] %vm93_vm15, %v92_v24  }
  0x9e   :  { %v97_v31 = vld [vmem:[#allocation0] sm:$0x1] }
  0x9f   :  { %100 = vst [vmem:[%s208_s1] sm:$0x1] %v97_v31 }

// kernel: conv_block_forward.5
= control target key start
LH: loop header
LB: loop body
LE: loop exit
PB: predicated region body
PF: predicated region fallthrough
CT: control target
= control target key end

     0   :  { %s86_s0 = inlined_call_operand.vmem [shape: f32[32,128], index: 0, kind: input, shape index: {}]   ;;  %s87_s1 = inlined_call_operand.vmem [shape: f32[2,128], index: 1, kind: input, shape index: {}]   ;;  %s88_s2 = inlined_call_operand.vmem [shape: f32[32,128], index: 2, kind: output, shape index: {}]  }
   0x1   :  { %v11_v0 = vld [vmem:[%s86_s0] sm:$0xff]  ;;  %v12_v3 = vld [vmem:[%s86_s0 + $0x8] sm:$0xff]  ;;  %v13_v6 = vld [vmem:[%s86_s0 + $0x10] sm:$0xff] }
   0x2   :  { %v39_v1 = vld [vmem:[%s87_s1] ss:$0 sm:$0xff]  ;;  %v40_v2 = vld [vmem:[%s87_s1 + $0x1] ss:$0 sm:$0xff]  ;;  %v14_v7 = vld [vmem:[%s86_s0 + $0x18] sm:$0xff] }
   0x3   :  { %v17_v4 = vmul.f32 %v39_v1, %v11_v0  ;;  %v18_v5 = vmul.f32 %v39_v1, %v12_v3  ;;  %v19_v8 = vmul.f32 %v39_v1, %v13_v6  ;;  %v20_v9 = vmul.f32 %v39_v1, %v14_v7 }
   0x5   :  { %v23_v10 = vadd.f32 %v40_v2, %v17_v4  ;;  %v24_v11 = vadd.f32 %v40_v2, %v18_v5  ;;  %v25_v12 = vadd.f32 %v40_v2, %v19_v8  ;;  %v26_v13 = vadd.f32 %v40_v2, %v20_v9 }
   0x7   :  { %v27_v14 = vmax.f32 %v23_v10, 0.0  ;;  %v28_v15 = vmax.f32 %v24_v11, 0.0  ;;  %v29_v16 = vmax.f32 %v25_v12, 0.0  ;;  %v30_v17 = vmax.f32 %v26_v13, 0.0 }
   0x9   :  { %31 = vst [vmem:[%s88_s2] sm:$0xff] %v27_v14 }
   0xa   :  { %32 = vst [vmem:[%s88_s2 + $0x8] sm:$0xff] %v28_v15 }
   0xb   :  { %33 = vst [vmem:[%s88_s2 + $0x10] sm:$0xff] %v29_v16 }
   0xc   :  { %34 = vst [vmem:[%s88_s2 + $0x18] sm:$0xff] %v30_v17 }

// kernel: conv_block_forward.3
= control target key start
LH: loop header
LB: loop body
LE: loop exit
PB: predicated region body
PF: predicated region fallthrough
CT: control target
= control target key end

     0   :  { %s1965_s24 = smov 0   ;;  %s1967_s25 = smov 0   ;;  %s2848_s0 = inlined_call_operand.vmem [shape: bf16[2,16,16,4], index: 0, kind: input, shape index: {}, may-alias: {0,1,2}]   ;;  %s2849_s1 = inlined_call_operand.vmem [shape: bf16[2,16,16,4], index: 1, kind: input, shape index: {}, may-alias: {0,1,2}]   ;;  %s2850_s2 = inlined_call_operand.vmem [shape: bf16[2,16,16,4], index: 2, kind: input, shape index: {}, may-alias: {0,1,2}]   ;;  %s2851_s3 = inlined_call_operand.vmem [shape: f32[2,4], index: 3, kind: input, shape index: {}]   ;;  %s2852_s4 = inlined_call_operand.vmem [shape: bf16[36,128], index: 4, kind: input, shape index: {}]   ;;  %s2853_s5 = inlined_call_operand.vmem [shape: f32[1,128], index: 5, kind: input, shape index: {}]   ;;  %s2854_s6 = inlined_call_operand.vmem [shape: bf16[4,8,128], index: 6, kind: output, shape index: {0}]   ;;  %s2855_s7 = inlined_call_operand.vmem [shape: f32[2,2,2,128], index: 7, kind: output, shape index: {1}]  }
   0x1   :  { %s1969_s26 = smov 0   ;;  %s1971_s27 = smov 0  }
   0x2   :  { %s1973_s3 = smov 0  }
   0x3 LB: > { %s27_s28 = sadd.s32 1, %s1898_s26  ;;  %s30_s29 = sadd.s32 1, %s1902_s27  ;;  %s1906_s3 = sphi %s1973_s3, %s18_s3   ;;  %s1902_s27 = sphi %s1971_s27, %s2883_s27   ;;  %s1898_s26 = sphi %s1969_s26, %s2882_s26   ;;  %s1894_s25 = sphi %s1967_s25, %s2881_s25   ;;  %s1890_s24 = sphi %s1965_s24, %s2880_s24  }
   0x4   : > { %p28_p0 = scmp.ge.s32.totalorder %s27_s28, 2  ;;  %p1699_p1 = scmp.ge.s32.totalorder %s1906_s3, 1 }
   0x5   : > { %p330_p2 = scmp.lt.s32.totalorder %s1906_s3, 5 }
   0x6   : > { %s2885_s28 = smov (%p28_p0, %s27_s28), 0  ;;  %s2887_s29 = smov (!%p28_p0, %s30_s29), %s1902_s27 }
   0x7   : > { %p331_p3 = pnand %p1699_p1, %p330_p2  ;;  %p32_p4 = scmp.ge.s32.totalorder %s2887_s29, 2 }
   0x8   : > { %s2000_s30 = sshll.u32 (!%p331_p3), %s1890_s24, 3  ;;  %p406_p5 = scmp.lt.s32.totalorder (!%p331_p3), %s1894_s25, 1 }
   0x9   : > { %s2889_s29 = smov (%p32_p4, %s2887_s29), 0  ;;  %334 = sbr.rel (%p331_p3) target bundleno = 625 (0x271), region = 44 }
   0xa   : > { %p422_p6 = scmp.lt.s32.totalorder (!%p331_p3), %s2000_s30, 15  ;;  %s1782_s12 = sadd.s32 (!%p331_p3), 8, %s2000_s30 }
   0xb   : > { %p2013_p7 = scmp.lt.s32.totalorder (!%p331_p3), %s1782_s12, 15  ;;  %p457_p8 = scmp.lt.s32.totalorder (!%p331_p3), %s1890_s24, 1 }
   0xc   : > { %s2048_s21 = sadd.s32 (!%p331_p3), 4294967295, %s2000_s30  ;;  %s1908_s14 = smov (!%p331_p3), 8  }
   0xd   : > { %p404_p9 = scmp.gt.s32.totalorder (!%p331_p3), %s2048_s21, 0  ;;  %p1702_p11 = scmp.lt.s32.totalorder (!%p331_p3), %s2048_s21, 15 }
   0xe   : > { %s2005_s8 = scalar_select %p406_p5, %s1894_s25, 1  ;;  %vm672_vm0 = vcmask 1040384   ;;  %vm673_vm1 = vsmask.f32 256  ;;  %vm856_vm3 = vcmask 1046528   ;;  %vm907_vm5 = vcmask 31744  }
   0xf   : > { %s423_s9 = scalar_select %p422_p6, %s2000_s30, 15  ;;  %vm2040_vm2 = vmand %vm672_vm0, %vm673_vm1  ;;  %vm695_vm4 = vsmask.f32 7424  ;;  %vm928_vm6 = vcmask 64512   ;;  %vm1061_vm7 = vcmask 1041408   ;;  %vm1007_vm8 = vcmask 195584  }
  0x10   : > { %s2009_s10 = sshll.u32 %s2005_s8, 5  ;;  %s2891_s12 = smov (!%p2013_p7, %s1782_s12), 15  ;;  %vm990_vm9 = vcmask 97280   ;;  %vm1044_vm10 = vcmask 293888   ;;  %vm1204_vm11 = vcmask 1041409   ;;  %vm1207_vm12 = vcmask 1042434  }
  0x11   : > { %s1711_s11 = sshll.u32 %s423_s9, 1  ;;  %s2893_s12 = smov (!%p2013_p7, %s2891_s12), 15  ;;  %vm1210_vm13 = vcmask 1043459   ;;  %vm1213_vm14 = vcmask 1044484   ;;  %vm1216_vm15 = vcmask 1045509   ;;  %vm1219_vm1 = vcmask 1046534  }
  0x12   : > { %s426_s13 = sadd.s32 %s1711_s11, %s2009_s10  ;;  %s2087_s11 = sshll.u32 %s2893_s12, 1 }
  0x13   : > { %s1713_s15 = sshll.u32 %s426_s13, 2  ;;  %p484_p12 = scmp.gt.s32.totalorder %s1890_s24, 0 }
  0x14   : > { %s2021_s18 = scalar_lea.vmem %s2849_s1, %s1713_s15  ;;  %s440_s15 = sadd.s32 %s2087_s11, %s2009_s10 }
  0x15   : > { %v1789_v0 = vld [vmem:[%s2021_s18 + $0x30] sm:$0xff]  ;;  %v1788_v1 = vld [vmem:[%s2021_s18 + $0x28] sm:$0xff]  ;;  %v1787_v2 = vld [vmem:[%s2021_s18 + $0x20] sm:$0xff]  ;;  %s509_s19 = scalar_select %p457_p8, 1, 0 }
  0x16   : > { %v1783_v3 = vld [vmem:[%s2021_s18] sm:$0xff]  ;;  %v2032_v4 = vld [vmem:[%s2021_s18 + $0x8] sm:$0xff]  ;;  %v2035_v5 = vld [vmem:[%s2021_s18 + $0x38] sm:$0xff]  ;;  %v632_v6 = vshrl.u32 %v1789_v0, 16  ;;  %v635_v7 = vshll.u32 %v1789_v0, 16  ;;  %v625_v8 = vshrl.u32 %v1788_v1, 16 }
  0x17   : > { %v628_v9 = vshll.u32 %v1788_v1, 16  ;;  %v618_v11 = vshrl.u32 %v1787_v2, 16  ;;  %v621_v12 = vshll.u32 %v1787_v2, 16  ;;  %v590_v13 = vshrl.u32 %v1783_v3, 16  ;;  %s2044_s20 = scvt.s32.f32 %s509_s19  ;;  %s2143_s17 = sshll.u32 %s440_s15, 2 }
  0x18   : > { %v634_v14 = vrot.slane %v632_v6, 7  ;;  %v627_v15 = vrot.slane %v625_v8, 7  ;;  %v593_v16 = vshll.u32 %v1783_v3, 16  ;;  %v597_v17 = vshrl.u32 %v2032_v4, 16  ;;  %s405_s12 = scalar_select %p404_p9, %s2048_s21, 0 }
  0x19   : > { %v620_v18 = vrot.slane %v618_v11, 7  ;;  %v592_v19 = vrot.slane %v590_v13, 7  ;;  %v600_v20 = vshll.u32 %v2032_v4, 16  ;;  %v639_v21 = vshrl.u32 %v2035_v5, 16  ;;  %s513_s22 = sshrl.u32 %s2044_s20, 16  ;;  %p512_p10 = scmp.ne.f32.partialorder %s2044_s20, %s2044_s20  ;;  %v1785_v13 = vld [vmem:[%s2021_s18 + $0x10] sm:$0xff] }
  0x1a   : > { %v637_v22 = vor.u32 %v635_v7, %v634_v14  ;;  %v2057_v23 = vsel %vm2040_vm2, %v634_v14, 0  ;;  %v630_v24 = vor.u32 %v628_v9, %v627_v15  ;;  %v691_v25 = vsel %vm2040_vm2, %v627_v15, 0  ;;  %s514_s23 = sand.u32 1, %s513_s22  ;;  %s2897_s12 = smov (!%p1702_p11, %s405_s12), 15 }
  0x1b   : > { %v879_v26 = vrot.slane %v2057_v23, 1  ;;  %v876_v27 = vrot.slane %v691_v25, 1  ;;  %v623_v28 = vor.u32 %v621_v12, %v620_v18  ;;  %v690_v29 = vsel %vm2040_vm2, %v620_v18, 0  ;;  %s515_s30 = sadd.s32 32767, %s514_s23  ;;  %s1707_s16 = sshll.u32 %s2897_s12, 1 }
  0x1c   : > { %v2067_v30 = vsel %vm2040_vm2, 0, %v637_v22  ;;  %v2071_v31 = vsel %vm2040_vm2, 0, %v630_v24  ;;  %v873_v32 = vrot.slane %v690_v29, 1  ;;  %v764_v33 = vshll.u32 %v690_v29, 16  ;;  %s2081_s9 = sadd.s32 %s515_s30, %s2044_s20  ;;  %s2146_s19 = sadd.s32 %s2009_s10, %s1707_s16 }
  0x1d   : > { %v878_v34 = vrot.slane %v2067_v30, 1  ;;  %v875_v35 = vrot.slane %v2071_v31, 1  ;;  %v2078_v36 = vsel %vm2040_vm2, 0, %v623_v28  ;;  %v595_v37 = vor.u32 %v593_v16, %v592_v19  ;;  %s517_s13 = sand.u32 4294901760, %s2081_s9  ;;  %s1909_s20 = smov 4  }
  0x1e   : > { %v872_v38 = vrot.slane %v2078_v36, 1  ;;  %v757_v39 = vshrl.u32 %v2078_v36, 16  ;;  %v759_v40 = vshll.u32 %v2078_v36, 16  ;;  %v642_v41 = vshll.u32 %v2035_v5, 16  ;;  %s2895_s13 = smov (%p512_p10, %s517_s13), 2143289344  ;;  %s442_s23 = scalar_lea.vmem %s2850_s2, %s2143_s17 }
  0x1f   : > { %v880_v42 = vsel %vm856_vm3, %v878_v34, %v879_v26  ;;  %v877_v43 = vsel %vm856_vm3, %v875_v35, %v876_v27  ;;  %v2095_v44 = vsel %vm2040_vm2, 0, %v595_v37  ;;  %v686_v45 = vsel %vm2040_vm2, %v592_v19, 0  ;;  %s520_s21 = sshrl.u32 %s2895_s13, 16  ;;  %s1709_s10 = sshll.u32 %s2146_s19, 2 }
  0x20   : > { %901 = vrot.lane.b32.xlu0 %v880_v42, %s1908_s14  ;;  %899 = vrot.lane.b32.xlu2 %v877_v43, %s1908_s14  ;;  %v874_v46 = vsel %vm856_vm3, %v872_v38, %v873_v32  ;;  %v761_v47 = vrot.slane %v759_v40, 1  ;;  %v860_v48 = vrot.slane %v2095_v44, 1  ;;  %v861_v49 = vrot.slane %v686_v45, 1  ;;  %s521_s30 = sshll.u32 %s520_s21, 16  ;;  %s1910_s19 = smov 12  }
  0x21   : > { %897 = vrot.lane.b32.xlu1 %v874_v46, %s1908_s14  ;;  %v766_v50 = vrot.slane %v764_v33, 1  ;;  %v709_v51 = vshrl.u32 %v2095_v44, 16  ;;  %v711_v52 = vshll.u32 %v2095_v44, 16  ;;  %v716_v53 = vshll.u32 %v686_v45, 16  ;;  %s485_s9 = scalar_select %p484_p12, 1, 0 }
  0x22   : > { %v762_v54 = vor.u32 %v761_v47, %v757_v39  ;;  %v769_v55 = vshrl.u32 %v2071_v31, 16  ;;  %v771_v56 = vshll.u32 %v2071_v31, 16  ;;  %v776_v57 = vshll.u32 %v691_v25, 16 }
  0x23   : > { %v713_v58 = vrot.slane %v711_v52, 1  ;;  %v718_v59 = vrot.slane %v716_v53, 1  ;;  %v599_v60 = vrot.slane %v597_v17, 7  ;;  %v641_v61 = vrot.slane %v639_v21, 7  ;;  %s2197_s11 = scvt.s32.f32 %s485_s9 }
  0x24   : > { %v862_v62 = vsel %vm856_vm3, %v860_v48, %v861_v49  ;;  %v773_v63 = vrot.slane %v771_v56, 1  ;;  %v767_v0 = vsel %vm695_vm4, %v762_v54, %v766_v50  ;;  %v778_v6 = vrot.slane %v776_v57, 1 }
  0x25   : > { %v714_v1 = vor.u32 %v713_v58, %v709_v51  ;;  %v602_v2 = vor.u32 %v600_v20, %v599_v60  ;;  %v644_v3 = vor.u32 %v642_v41, %v641_v61  ;;  %v687_v7 = vsel %vm2040_vm2, %v599_v60, 0  ;;  %v1786_v20 = vld [vmem:[%s2021_s18 + $0x18] sm:$0xff]  ;;  %v1798_v41 = vld [vmem:[%s442_s23] sm:$0xff]   ;;  %s522_s18 = sor.u32 %s521_s30, %s520_s21  ;;  %s489_s13 = sshrl.u32 %s2197_s11, 16 }
  0x26   : > { %v774_v5 = vor.u32 %v773_v63, %v769_v55  ;;  %v2130_v8 = vsel %vm2040_vm2, %v641_v61, 0  ;;  %v864_v17 = vrot.slane %v687_v7, 1  ;;  %v781_v19 = vshrl.u32 %v2067_v30, 16  ;;  %s490_s12 = sand.u32 1, %s489_s13  ;;  %p488_p13 = scmp.ne.f32.partialorder %s2197_s11, %s2197_s11 }
  0x27   : > { %v719_v9 = vsel %vm695_vm4, %v714_v1, %v718_v59  ;;  %v2135_v11 = vsel %vm2040_vm2, 0, %v602_v2  ;;  %v2139_v4 = vsel %vm2040_vm2, 0, %v644_v3  ;;  %v800_v12 = vshll.u32 %v2130_v8, 16  ;;  %s491_s15 = sadd.s32 32767, %s490_s12  ;;  %s1914_s23 = smov 16  }
  0x28   : > { %826 = vrot.lane.b32.xlu0 %v767_v0, %s1909_s20  ;;  %889 = vrot.lane.b32.xlu2 %v862_v62, %s1908_s14  ;;  %v793_v14 = vshrl.u32 %v2139_v4, 16  ;;  %v795_v15 = vshll.u32 %v2139_v4, 16  ;;  %v863_v16 = vrot.slane %v2135_v11, 1  ;;  %v723_v18 = vshll.u32 %v2135_v11, 16  ;;  %s492_s16 = sadd.s32 %s491_s15, %s2197_s11  ;;  %s1915_s30 = smov 32  }
  0x29   : > { %818 = vrot.lane.b32.xlu1 %v719_v9, %s1909_s20  ;;  %v802_v22 = vrot.slane %v800_v12, 1  ;;  %v728_v24 = vshll.u32 %v687_v7, 16  ;;  %v783_v25 = vshll.u32 %v2067_v30, 16  ;;  %v779_v26 = vsel %vm695_vm4, %v774_v5, %v778_v6  ;;  %s493_s17 = sand.u32 4294901760, %s492_s16  ;;  %s1918_s11 = smov 64  }
  0x2a   : > { %v797_v21 = vrot.slane %v795_v15, 1  ;;  %v788_v27 = vshll.u32 %v2057_v23, 16  ;;  %v604_v28 = vshrl.u32 %v1785_v13, 16  ;;  %v607_v29 = vshll.u32 %v1785_v13, 16  ;;  %s2899_s17 = smov (%p488_p13, %s493_s17), 2143289344  ;;  %s1919_s12 = smov 96  }
  0x2b   : > { %v721_v33 = vshrl.u32 %v2135_v11, 16  ;;  %v725_v34 = vrot.slane %v723_v18, 1  ;;  %v785_v35 = vrot.slane %v783_v25, 1  ;;  %v865_v37 = vsel %vm856_vm3, %v863_v16, %v864_v17  ;;  %s496_s21 = sshrl.u32 %s2899_s17, 16 }
  0x2c   : > { %v798_v32 = vor.u32 %v797_v21, %v793_v14  ;;  %v606_v38 = vrot.slane %v604_v28, 7  ;;  %v611_v39 = vshrl.u32 %v1786_v20, 16  ;;  %v614_v40 = vshll.u32 %v1786_v20, 16  ;;  %s497_s22 = sshll.u32 %s496_s21, 16 }
  0x2d   : > { %v730_v43 = vrot.slane %v728_v24, 1  ;;  %v790_v23 = vrot.slane %v788_v27, 1  ;;  %v726_v48 = vor.u32 %v725_v34, %v721_v33  ;;  %v786_v49 = vor.u32 %v785_v35, %v781_v19  ;;  %s498_s9 = sor.u32 %s497_s22, %s496_s21  ;;  %s1912_s22 = smov 40  }
  0x2e   : > { %v803_v42 = vsel %vm695_vm4, %v798_v32, %v802_v22  ;;  %v609_v45 = vor.u32 %v607_v29, %v606_v38  ;;  %v688_v46 = vsel %vm2040_vm2, %v606_v38, 0  ;;  %v613_v47 = vrot.slane %v611_v39, 7  ;;  %s1920_s21 = smov 80  }
  0x2f   : > { %v740_v50 = vshll.u32 %v688_v46, 16  ;;  %v1799_v51 = vunpack.c.l.bf16 %v1798_v41  ;;  %v1800_v54 = vunpack.c.h.bf16 %v1798_v41  ;;  %v523_v55 = vstv %s522_s18  ;;  %s414_s18 = scalar_lea.vmem %s2848_s0, %s1709_s10  ;;  %s1921_s10 = smov 88  }
  0x30   : > { %828 = vrot.lane.b32.xlu0 %v779_v26, %s1909_s20  ;;  %891 = vrot.lane.b32.xlu2 %v865_v37, %s1908_s14  ;;  %v2175_v52 = vsel %vm2040_vm2, 0, %v609_v45  ;;  %v616_v53 = vor.u32 %v614_v40, %v613_v47  ;;  %v689_v59 = vsel %vm2040_vm2, %v613_v47, 0  ;;  %v527_v60 = vunpack.c.l.bf16 %v523_v55 }
  0x31   : > { %832 = vrot.lane.b32.xlu1 %v803_v42, %s1909_s20  ;;  %v733_v56 = vshrl.u32 %v2175_v52, 16  ;;  %v735_v57 = vshll.u32 %v2175_v52, 16  ;;  %v742_v62 = vrot.slane %v740_v50, 1  ;;  %v731_v0 = vsel %vm695_vm4, %v726_v48, %v730_v43 }
  0x32   : > { %v2182_v58 = vsel %vm2040_vm2, 0, %v616_v53  ;;  %v791_v1 = vsel %vm695_vm4, %v786_v49, %v790_v23  ;;  %v528_v2 = vmul.f32 %v1799_v51, %v527_v60  ;;  %v529_v3 = vmul.f32 %v1800_v54, %v527_v60  ;;  %v1794_v49 = vld [vmem:[%s414_s18] sm:$0xff]   ;;  %s1916_s18 = smov 72  }
  0x33   : > { %v737_v61 = vrot.slane %v735_v57, 1  ;;  %v747_v63 = vshll.u32 %v2182_v58, 16  ;;  %v745_v6 = vshrl.u32 %v2182_v58, 16  ;;  %v752_v9 = vshll.u32 %v689_v59, 16 }
  0x34   : > { %v530_v12 = vpack.c.bf16 %v528_v2, %v528_v2  ;;  %v531_v13 = vpack.c.bf16 %v529_v3, %v529_v3  ;;  %v881_v15 = vrot.slane %v2139_v4, 1  ;;  %v882_v16 = vrot.slane %v2130_v8, 1 }
  0x35   : > { %v738_v5 = vor.u32 %v737_v61, %v733_v56  ;;  %v749_v7 = vrot.slane %v747_v63, 1  ;;  %v866_v17 = vrot.slane %v2175_v52, 1  ;;  %v867_v18 = vrot.slane %v688_v46, 1 }
  0x36   : > { %v570_v19 = vunpack.c.l.b16 %v530_v12  ;;  %v571_v20 = vunpack.c.l.b16 %v531_v13  ;;  %v754_v22 = vrot.slane %v752_v9, 1  ;;  %v883_v25 = vsel %vm856_vm3, %v881_v15, %v882_v16 }
  0x37   : > { %v743_v14 = vsel %vm695_vm4, %v738_v5, %v742_v62  ;;  %v750_v21 = vor.u32 %v749_v7, %v745_v6  ;;  %v868_v26 = vsel %vm856_vm3, %v866_v17, %v867_v18  ;;  %v869_v32 = vrot.slane %v2182_v58, 1 }
  0x38   : > { %820 = vrot.lane.b32.xlu0 %v731_v0, %s1909_s20  ;;  %830 = vrot.lane.b32.xlu2 %v791_v1, %s1909_s20  ;;  %v581_v24 = vpack.c.b16 %v571_v20, %v570_v19  ;;  %v870_v33 = vrot.slane %v689_v59, 1  ;;  %v499_v50 = vstv %s498_s9  ;;  %v1795_v51 = vunpack.c.l.bf16 %v1794_v49  ;;  %s458_s9 = scalar_select %p457_p8, %s1890_s24, 1 }
  0x39   : > { %822 = vrot.lane.b32.xlu1 %v743_v14, %s1909_s20  ;;  %v755_v8 = vsel %vm695_vm4, %v750_v21, %v754_v22  ;;  %v1796_v53 = vunpack.c.h.bf16 %v1794_v49  ;;  %v503_v54 = vunpack.c.l.bf16 %v499_v50  ;;  %v1028_v50 = vld [vmem:[%s2852_s4 + $0x10] sm:$0x3] }
  0x3a   : > { %v646_v27 = vshrl.u32 %v581_v24, 16  ;;  %v649_v28 = vshll.u32 %v581_v24, 16  ;;  %v871_v43 = vsel %vm856_vm3, %v869_v32, %v870_v33 }
  0x3b   : > { %v504_v55 = vmul.f32 %v1795_v51, %v503_v54  ;;  %v505_v56 = vmul.f32 %v1796_v53, %v503_v54  ;;  %v1038_v51 = vunpack.c.l.b16 %v1028_v50 }
  0x3c   : > { %v648_v29 = vrot.slane %v646_v27, 7 }
  0x3d   : > { %v506_v57 = vpack.c.bf16 %v504_v55, %v504_v55  ;;  %v507_v59 = vpack.c.bf16 %v505_v56, %v505_v56  ;;  %v1041_v53 = vpack.c.b16 %v1038_v51, %v1038_v51  ;;  %v1791_v55 = vld [vmem:[%s2852_s4] sm:$0xff] }
  0x3e   : > { %v651_v34 = vor.u32 %v649_v28, %v648_v29  ;;  %v694_v35 = vsel %vm2040_vm2, %v648_v29, 0 }
  0x3f   : > { %v812_v37 = vshll.u32 %v694_v35, 16  ;;  %v885_v38 = vrot.slane %v694_v35, 1  ;;  %v552_v60 = vunpack.c.l.b16 %v506_v57  ;;  %v553_v61 = vunpack.c.l.b16 %v507_v59 }
  0x40   : > { %903 = vrot.lane.b32.xlu0 %v883_v25, %s1908_s14  ;;  %893 = vrot.lane.b32.xlu2 %v868_v26, %s1908_s14  ;;  %v2211_v39 = vsel %vm2040_vm2, 0, %v651_v34  ;;  %v1063_v54 = vsel %vm1061_vm7, %v1041_v53, 0  ;;  %vm1498_vm7 = vcmask 457728  }
  0x41   : > { %824 = vrot.lane.b32.xlu1 %v755_v8, %s1909_s20  ;;  %v805_v40 = vshrl.u32 %v2211_v39, 16  ;;  %v807_v41 = vshll.u32 %v2211_v39, 16  ;;  %v884_v42 = vrot.slane %v2211_v39, 1  ;;  %v814_v45 = vrot.slane %v812_v37, 1  ;;  %1802 = vmatpush.bf16.msra.mxu2 %v1063_v54 }
  0x42   : > { %v572_v62 = vpack.c.b16 %v553_v61, %v552_v60  ;;  %1070 = vmatpush.bf16.msra.mxu0 %v1063_v54  ;;  %1803 = vmatpush.bf16.msra.mxu3 %v1063_v54 }
  0x43   : > { %v809_v23 = vrot.slane %v807_v41, 1  ;;  %v886_v46 = vsel %vm856_vm3, %v884_v42, %v885_v38  ;;  %1801 = vmatpush.bf16.msra.mxu1 %v1063_v54 }
  0x44   : > { %v583_v63 = vshrl.u32 %v572_v62, 16  ;;  %v586_v1 = vshll.u32 %v572_v62, 16 }
  0x45   : > { %v810_v47 = vor.u32 %v809_v23, %v805_v40 }
  0x46   : > { %v585_v0 = vrot.slane %v583_v63, 7 }
  0x47   : > { %v815_v48 = vsel %vm695_vm4, %v810_v47, %v814_v45 }
  0x48   : > { %895 = vrot.lane.b32.xlu0 %v871_v43, %s1908_s14  ;;  %905 = vrot.lane.b32.xlu2 %v886_v46, %s1908_s14  ;;  %v588_v2 = vor.u32 %v586_v1, %v585_v0  ;;  %v685_v5 = vsel %vm2040_vm2, %v585_v0, 0 }
  0x49   : > { %834 = vrot.lane.b32.xlu1 %v815_v48, %s1909_s20  ;;  %v858_v7 = vrot.slane %v685_v5, 1  ;;  %v704_v15 = vshll.u32 %v685_v5, 16 }
  0x4a   : > { %v2231_v3 = vsel %vm2040_vm2, 0, %v588_v2  ;;  %vm1222_vm2 = vcmask 1047559  }
  0x4b   : > { %v857_v6 = vrot.slane %v2231_v3, 1  ;;  %v699_v12 = vshll.u32 %v2231_v3, 16  ;;  %v697_v13 = vshrl.u32 %v2231_v3, 16  ;;  %v706_v18 = vrot.slane %v704_v15, 1 }
  0x4d   : > { %v859_v9 = vsel %vm856_vm3, %v857_v6, %v858_v7  ;;  %v701_v14 = vrot.slane %v699_v12, 1  ;;  %vm1492_vm3 = vcmask 261120  }
  0x4f   : > { %v702_v17 = vor.u32 %v701_v14, %v697_v13 }
  0x50   : > { %887 = vrot.lane.b32.xlu2 %v859_v9, %s1908_s14 }
  0x51   : > { %v707_v19 = vsel %vm695_vm4, %v702_v17, %v706_v18  ;;  %vm1494_vm4 = vcmask 326656  }
  0x52   : > { %816 = vrot.lane.b32.xlu0 %v707_v19, %s1909_s20  ;;  %s1911_s20 = smov 24  }
  0x7a   : > { %v900_v16 = vpop.permute.xlu2 %899 }
  0x82   : > { %v890_v10 = vpop.permute.xlu2 %889 }
  0x8a   : > { %v892_v20 = vpop.permute.xlu2 %891 }
  0x92   : > { %v902_v21 = vpop.permute.xlu0 %901  ;;  %v831_v22 = vpop.permute.xlu2 %830 }
  0x93   : > { %v898_v24 = vpop.permute.xlu1 %897  ;;  %v923_v25 = vsel %vm907_vm5, %v2067_v30, %v831_v22 }
  0x94   : > { %v2245_v26 = vsel %vm928_vm6, %v923_v25, %v902_v21 }
  0x95   : > { %969 = vrot.lane.b32.xlu2 %v2245_v26, %s1910_s19 }
  0x9a   : > { %v827_v27 = vpop.permute.xlu0 %826 }
  0x9b   : > { %v919_v28 = vsel %vm907_vm5, %v2078_v36, %v827_v27  ;;  %v819_v8 = vpop.permute.xlu1 %818 }
  0x9c   : > { %v2252_v29 = vsel %vm928_vm6, %v919_v28, %v898_v24  ;;  %v911_v30 = vsel %vm907_vm5, %v2095_v44, %v819_v8  ;;  %v894_v44 = vpop.permute.xlu2 %893 }
  0x9d   : > { %965 = vrot.lane.b32.xlu1 %v2252_v29, %s1910_s19  ;;  %v2259_v33 = vsel %vm928_vm6, %v911_v30, %v890_v10 }
  0xa2   : > { %v829_v32 = vpop.permute.xlu0 %828 }
  0xa3   : > { %v921_v34 = vsel %vm907_vm5, %v2071_v31, %v829_v32  ;;  %v833_v35 = vpop.permute.xlu1 %832 }
  0xa4   : > { %v2264_v36 = vsel %vm928_vm6, %v921_v34, %v900_v16  ;;  %v925_v43 = vsel %vm907_vm5, %v2139_v4, %v833_v35  ;;  %v906_v48 = vpop.permute.xlu2 %905 }
  0xa5   : > { %957 = vrot.lane.b32.xlu1 %v2259_v33, %s1910_s19  ;;  %982 = vrot.lane.b32.xlu0 %v2264_v36, %s1911_s20 }
  0xaa   : > { %v821_v37 = vpop.permute.xlu0 %820 }
  0xab   : > { %v913_v38 = vsel %vm907_vm5, %v2135_v11, %v821_v37  ;;  %v823_v40 = vpop.permute.xlu1 %822 }
  0xac   : > { %v915_v31 = vsel %vm907_vm5, %v2175_v52, %v823_v40  ;;  %v2275_v41 = vsel %vm928_vm6, %v913_v38, %v892_v20  ;;  %v888_v57 = vpop.permute.xlu2 %887 }
  0xad   : > { %v2278_v42 = vsel %vm928_vm6, %v915_v31, %v894_v44  ;;  %974 = vrot.lane.b32.xlu0 %v2275_v41, %s1911_s20 }
  0xae   : > { %961 = vrot.lane.b32.xlu2 %v2278_v42, %s1910_s19 }
  0xb2   : > { %v904_v11 = vpop.permute.xlu0 %903 }
  0xb3   : > { %v946_v23 = vsel %vm928_vm6, %v925_v43, %v904_v11  ;;  %v825_v52 = vpop.permute.xlu1 %824 }
  0xb4   : > { %986 = vrot.lane.b32.xlu1 %v946_v23, %s1911_s20  ;;  %v917_v45 = vsel %vm907_vm5, %v2182_v58, %v825_v52 }
  0xb6   : > { %984 = vrot.lane.b32.xlu2 %v2245_v26, %s1911_s20 }
  0xba   : > { %v896_v46 = vpop.permute.xlu0 %895 }
  0xbb   : > { %v938_v47 = vsel %vm928_vm6, %v917_v45, %v896_v46  ;;  %v835_v4 = vpop.permute.xlu1 %834 }
  0xbc   : > { %967 = vrot.lane.b32.xlu1 %v2264_v36, %s1910_s19  ;;  %978 = vrot.lane.b32.xlu0 %v938_v47, %s1911_s20  ;;  %v927_v58 = vsel %vm907_vm5, %v2211_v39, %v835_v4  ;;  %v1792_v39 = vld [vmem:[%s2852_s4 + $0x8] sm:$0xff] }
  0xbd   : > { %v948_v49 = vsel %vm928_vm6, %v927_v58, %v906_v48  ;;  %1805 = vmatpush.bf16.msra.mxu2 %v1792_v39  ;;  %1071 = vmatpush.bf16.msra.mxu0 %v1792_v39 }
  0xbe   : > { %976 = vrot.lane.b32.xlu2 %v2278_v42, %s1911_s20  ;;  %1806 = vmatpush.bf16.msra.mxu3 %v1792_v39 }
  0xbf   : > { %1804 = vmatpush.bf16.msra.mxu1 %v1792_v39 }
  0xc1   : > { %1808 = vmatpush.bf16.msra.mxu2 %v1791_v55  ;;  %1072 = vmatpush.bf16.msra.mxu0 %v1791_v55 }
  0xc2   : > { %1809 = vmatpush.bf16.msra.mxu3 %v1791_v55 }
  0xc3   : > { %1807 = vmatpush.bf16.msra.mxu1 %v1791_v55 }
  0xc4   : > { %971 = vrot.lane.b32.xlu1 %v946_v23, %s1910_s19  ;;  %959 = vrot.lane.b32.xlu0 %v2275_v41, %s1910_s19  ;;  %v817_v56 = vpop.permute.xlu0 %816 }
  0xc5   : > { %v909_v0 = vsel %vm907_vm5, %v2231_v3, %v817_v56  ;;  %vm1496_vm5 = vcmask 392192  }
  0xc6   : > { %980 = vrot.lane.b32.xlu2 %v2252_v29, %s1911_s20  ;;  %v930_v2 = vsel %vm928_vm6, %v909_v0, %v888_v57 }
  0xcc   : > { %963 = vrot.lane.b32.xlu1 %v938_v47, %s1910_s19  ;;  %988 = vrot.lane.b32.xlu0 %v948_v49, %s1911_s20  ;;  %s1723_s19 = sshll.u32 %s2005_s8, 1 }
  0xcd   : > { %s2730_s8 = sadd.s32 %s1723_s19, %s458_s9 }
  0xce   : > { %s1724_s13 = sshll.u32 %s2730_s8, 1 }
  0xcf   : > { %s462_s17 = scalar_lea.vmem %s2855_s7, %s1724_s13 }
  0xef   : > { %v970_v63 = vpop.permute.xlu2 %969 }
  0xf0   : > { %v1004_v12 = vsel %vm990_vm9, %v2264_v36, %v970_v63 }
 0x108   : > { %v962_v9 = vpop.permute.xlu2 %961 }
 0x109   : > { %v996_v15 = vsel %vm990_vm9, %v2275_v41, %v962_v9 }
 0x10f   : > { %v966_v59 = vpop.permute.xlu1 %965 }
 0x110   : > { %v1000_v60 = vsel %vm990_vm9, %v938_v47, %v966_v59  ;;  %v985_v3 = vpop.permute.xlu2 %984 }
 0x117   : > { %v983_v61 = vpop.permute.xlu0 %982  ;;  %v958_v1 = vpop.permute.xlu1 %957 }
 0x118   : > { %v1017_v62 = vsel %vm1007_vm8, %v1000_v60, %v983_v61  ;;  %v992_v5 = vsel %vm990_vm9, %v930_v2, %v958_v1  ;;  %v977_v20 = vpop.permute.xlu2 %976 }
 0x119   : > { %1769 = vmatmul.msk.bf16.vlgmr.msra.gmra.mxu2 %vm1044_vm10, %v1017_v62 }
 0x11f   : > { %v975_v6 = vpop.permute.xlu0 %974 }
 0x120   : > { %v1009_v7 = vsel %vm1007_vm8, %v992_v5, %v975_v6 }
 0x121   : > { %1765 = vmatmul.msk.bf16.vlgmr.msra.gmra.mxu0 %vm1044_vm10, %v1009_v7 }
 0x126   : > { %v987_v13 = vpop.permute.xlu1 %986 }
 0x127   : > { %v1021_v14 = vsel %vm1007_vm8, %v1004_v12, %v987_v13 }
 0x128   : > { %1771 = vmatmul.msk.bf16.vlgmr.msra.gmra.mxu3 %vm1044_vm10, %v1021_v14 }
 0x12e   : > { %v968_v16 = vpop.permute.xlu1 %967  ;;  %v979_v17 = vpop.permute.xlu0 %978 }
 0x12f   : > { %v1002_v18 = vsel %vm990_vm9, %v2252_v29, %v968_v16  ;;  %v1013_v19 = vsel %vm1007_vm8, %v996_v15, %v979_v17  ;;  %v981_v29 = vpop.permute.xlu2 %980 }
 0x130   : > { %1767 = vmatmul.msk.bf16.vlgmr.msra.gmra.mxu1 %vm1044_vm10, %v1013_v19  ;;  %v1019_v10 = vsel %vm1007_vm8, %v1002_v18, %v985_v3 }
 0x131   : > { %1770 = vmatmul.msk.bf16.gmra.mxu2 %vm1044_vm10, %v1019_v10 }
 0x136   : > { %v972_v21 = vpop.permute.xlu1 %971  ;;  %v960_v22 = vpop.permute.xlu0 %959 }
 0x137   : > { %v994_v24 = vsel %vm990_vm9, %v2259_v33, %v960_v22  ;;  %v1006_v27 = vsel %vm990_vm9, %v2245_v26, %v972_v21  ;;  %v2355_v26 = vld [vmem:[%s2853_s5] ss:$0 sm:$0xff] }
 0x138   : > { %v1011_v25 = vsel %vm1007_vm8, %v994_v24, %v977_v20 }
 0x139   : > { %1766 = vmatmul.msk.bf16.gmra.mxu0 %vm1044_vm10, %v1011_v25 }
 0x13e   : > { %v964_v28 = vpop.permute.xlu1 %963  ;;  %v989_v8 = vpop.permute.xlu0 %988 }
 0x13f   : > { %v998_v30 = vsel %vm990_vm9, %v2278_v42, %v964_v28  ;;  %v1023_v32 = vsel %vm1007_vm8, %v1006_v27, %v989_v8  ;;  %vm1500_vm9 = vcmask 523264  }
 0x140   : > { %1772 = vmatmul.msk.bf16.gmra.mxu3 %vm1044_vm10, %v1023_v32  ;;  %v1015_v34 = vsel %vm1007_vm8, %v998_v30, %v981_v29 }
 0x141   : > { %1768 = vmatmul.msk.bf16.gmra.mxu1 %vm1044_vm10, %v1015_v34  ;;  %vm1504_vm10 = vcmask 654336  }
 0x19c   : > { %v2350_v33 = vpop.f32.mrf.mxu2 }
 0x19d   : > { %v2359_v36 = vadd.f32 %v2355_v26, %v2350_v33  ;;  %v2368_v40 = vmul.f32 %v2350_v33, %v2350_v33 }
 0x19e   : > { %v1074_v35 = vpop.f32.mrf.mxu0 }
 0x19f   : > { %v2362_v37 = vadd.f32 %v2355_v26, %v1074_v35  ;;  %v1135_v31 = vmul.f32 %v1074_v35, %v1074_v35  ;;  %v1300_v41 = vrot.slane %v2359_v36, 1  ;;  %v1265_v42 = vrot.slane %v2359_v36, 7 }
 0x1a0   : > { %v1231_v43 = vrot.slane %v2359_v36, 5  ;;  %v1317_v11 = vrot.slane %v2359_v36, 2 }
 0x1a1   : > { %v1293_v58 = vrot.slane %v2362_v37, 5  ;;  %v1259_v48 = vrot.slane %v2362_v37, 3  ;;  %v1225_v49 = vrot.slane %v2362_v37, 1  ;;  %v1310_v53 = vrot.slane %v2362_v37, 6 }
 0x1a2   : > { %v1242_v54 = vrot.slane %v2362_v37, 2  ;;  %v1276_v39 = vrot.slane %v2362_v37, 4  ;;  %v1327_v59 = vrot.slane %v2362_v37, 7 }
 0x1a4   : > { %v2364_v44 = vpop.f32.mrf.mxu2 }
 0x1a5   : > { %v2376_v23 = vadd.f32 %v2355_v26, %v2364_v44  ;;  %v2399_v55 = vmul.f32 %v2364_v44, %v2364_v44 }
 0x1a6   : > { %v1076_v38 = vpop.f32.mrf.mxu0 }
 0x1a7   : > { %v1136_v52 = vmul.f32 %v1076_v38, %v1076_v38  ;;  %v2383_v4 = vadd.f32 %v2355_v26, %v1076_v38  ;;  %v1114_v56 = vadd.f32 %v1076_v38, %v1074_v35 }
 0x1a9   : > { %v1151_v60 = vadd.f32 %v1136_v52, %v1135_v31  ;;  %v1369_v1 = vrot.slane %v2383_v4, 1 }
 0x1ab   : > { %v2378_v45 = vpop.f32.mrf.mxu3 }
 0x1ac   : > { %v2390_v50 = vadd.f32 %v2355_v26, %v2378_v45  ;;  %v2411_v0 = vmul.f32 %v2378_v45, %v2378_v45 }
 0x1ad   : > { %v2392_v51 = vpop.f32.mrf.mxu1 }
 0x1ae   : > { %v2403_v57 = vadd.f32 %v2355_v26, %v2392_v51  ;;  %v2418_v6 = vmul.f32 %v2392_v51, %v2392_v51  ;;  %v1303_v7 = vrot.slane %v2390_v50, 7  ;;  %v1269_v9 = vrot.slane %v2390_v50, 5 }
 0x1af   : > { %v1235_v12 = vrot.slane %v2390_v50, 3 }
 0x1b0   : > { %v1296_v13 = vrot.slane %v2403_v57, 3  ;;  %v1262_v17 = vrot.slane %v2403_v57, 1  ;;  %v1227_v18 = vrot.slane %v2403_v57, 7  ;;  %v1313_v19 = vrot.slane %v2403_v57, 4 }
 0x1b1   : > { %v1279_v10 = vrot.slane %v2403_v57, 2  ;;  %v1330_v22 = vrot.slane %v2403_v57, 5 }
 0x1b3   : > { %v2427_v16 = vpop.f32.mrf.mxu3 }
 0x1b4   : > { %v2435_v20 = vadd.f32 %v2355_v26, %v2427_v16  ;;  %v2437_v21 = vpop.f32.mrf.mxu2  ;;  %v2444_v27 = vmul.f32 %v2427_v16, %v2427_v16 }
 0x1b5   : > { %v2448_v28 = vmul.f32 %v2437_v21, %v2437_v21  ;;  %v2452_v8 = vadd.f32 %v2355_v26, %v2437_v21  ;;  %v2454_v29 = vpop.f32.mrf.mxu1 }
 0x1b6   : > { %v2459_v32 = vmul.f32 %v2454_v29, %v2454_v29  ;;  %v2463_v34 = vadd.f32 %v2355_v26, %v2454_v29  ;;  %v1079_v35 = vpop.f32.mrf.mxu0 }
 0x1b7   : > { %v1115_v52 = vadd.f32 %v1114_v56, %v1079_v35  ;;  %v1137_v25 = vmul.f32 %v1079_v35, %v1079_v35  ;;  %v2468_v24 = vadd.f32 %v2355_v26, %v1079_v35  ;;  %v1267_v63 = vrot.slane %v2452_v8, 6 }
 0x1b8   : > { %v1233_v5 = vrot.slane %v2452_v8, 4  ;;  %v1319_v2 = vrot.slane %v2452_v8, 1 }
 0x1b9   : > { %v1294_v31 = vrot.slane %v2468_v24, 4  ;;  %v1260_v56 = vrot.slane %v2468_v24, 2  ;;  %v1226_v35 = vsel %vm1204_vm11, %v2468_v24, %v1225_v49  ;;  %v1152_v30 = vadd.f32 %v1151_v60, %v1137_v25 }
 0x1ba   : > { %v1311_v61 = vrot.slane %v2468_v24, 5  ;;  %v1243_v15 = vrot.slane %v2468_v24, 1  ;;  %v1277_v3 = vrot.slane %v2468_v24, 3  ;;  %v1228_v62 = vsel %vm1207_vm12, %v1227_v18, %v1226_v35 }
 0x1bb   : > { %v1295_v47 = vsel %vm1204_vm11, %v1294_v31, %v1293_v58  ;;  %v1261_v14 = vsel %vm1204_vm11, %v1260_v56, %v1259_v48  ;;  %v1328_v49 = vrot.slane %v2468_v24, 6  ;;  %v1371_v35 = vrot.slane %v2463_v34, 7 }
 0x1bc   : > { %v2491_v38 = vpop.f32.mrf.mxu2  ;;  %v1297_v60 = vsel %vm1207_vm12, %v1296_v13, %v1295_v47  ;;  %v1312_v25 = vsel %vm1204_vm11, %v1311_v61, %v1310_v53  ;;  %v1244_v58 = vsel %vm1204_vm11, %v1243_v15, %v1242_v54  ;;  %v1263_v47 = vsel %vm1207_vm12, %v1262_v17, %v1261_v14 }
 0x1bd   : > { %v2503_v48 = vmul.f32 %v2491_v38, %v2491_v38  ;;  %v2507_v18 = vadd.f32 %v2355_v26, %v2491_v38  ;;  %v1314_v13 = vsel %vm1207_vm12, %v1313_v19, %v1312_v25  ;;  %v1245_v54 = vsel %vm1207_vm12, %v2403_v57, %v1244_v58 }
 0x1be   : > { %v1081_v53 = vpop.f32.mrf.mxu0  ;;  %v1089_v61 = vpop.f32.mrf.mxu1  ;;  %v1278_v15 = vsel %vm1204_vm11, %v1277_v3, %v1276_v39  ;;  %v1329_v56 = vsel %vm1204_vm11, %v1328_v49, %v1327_v59 }
 0x1bf   : > { %v1116_v31 = vadd.f32 %v1115_v52, %v1081_v53  ;;  %v1138_v46 = vmul.f32 %v1081_v53, %v1081_v53  ;;  %v2521_v14 = vadd.f32 %v2355_v26, %v1081_v53  ;;  %v1141_v19 = vmul.f32 %v1089_v61, %v1089_v61 }
 0x1c0   : > { %v2525_v25 = vadd.f32 %v2355_v26, %v1089_v61  ;;  %v2530_v39 = vsel %vm1207_vm12, %v1279_v10, %v1278_v15  ;;  %v2533_v59 = vsel %vm1207_vm12, %v1330_v22, %v1329_v56 }
 0x1c1   : > { %v1117_v3 = vadd.f32 %v1116_v31, %v2392_v51  ;;  %v1153_v52 = vadd.f32 %v1152_v30, %v1138_v46  ;;  %v2540_v49 = vsel %vm1204_vm11, %v2521_v14, %v1369_v1  ;;  %v1352_v22 = vrot.slane %v2521_v14, 7 }
 0x1c2   : > { %v1298_v53 = vrot.slane %v2525_v25, 2  ;;  %v1264_v10 = vsel %vm1210_vm13, %v2525_v25, %v1263_v47  ;;  %v1229_v15 = vrot.slane %v2525_v25, 6  ;;  %v1315_v31 = vrot.slane %v2525_v25, 3 }
 0x1c3   : > { %v1154_v51 = vadd.f32 %v1153_v52, %v2418_v6  ;;  %v1118_v46 = vadd.f32 %v1117_v3, %v2454_v29  ;;  %v2550_v30 = vpop.f32.mrf.mxu3  ;;  %v1266_v1 = vsel %vm1213_vm14, %v1265_v42, %v1264_v10  ;;  %v1246_v6 = vrot.slane %v2525_v25, 7 }
 0x1c4   : > { %v2558_v56 = vadd.f32 %v2355_v26, %v2550_v30  ;;  %v1299_v47 = vsel %vm1210_vm13, %v1298_v53, %v1297_v60  ;;  %v1268_v17 = vsel %vm1216_vm15, %v1267_v63, %v1266_v1  ;;  %v2566_v3 = vmul.f32 %v2550_v30, %v2550_v30 }
 0x1c5   : > { %v1119_v52 = vadd.f32 %v1118_v46, %v1089_v61  ;;  %v1155_v29 = vadd.f32 %v1154_v51, %v2459_v32  ;;  %v1301_v42 = vsel %vm1213_vm14, %v1300_v41, %v1299_v47  ;;  %v1230_v61 = vsel %vm1210_vm13, %v1229_v15, %v1228_v62 }
 0x1c6   : > { %v1091_v10 = vpop.f32.mrf.mxu1  ;;  %v1302_v58 = vsel %vm1216_vm15, %v2452_v8, %v1301_v42  ;;  %v1305_v60 = vrot.slane %v2558_v56, 6  ;;  %v1271_v63 = vrot.slane %v2558_v56, 4  ;;  %v1270_v46 = vsel %vm1219_vm1, %v1269_v9, %v1268_v17 }
 0x1c7   : > { %v1156_v53 = vadd.f32 %v1155_v29, %v1141_v19  ;;  %v1120_v32 = vadd.f32 %v1119_v52, %v1091_v10  ;;  %v1142_v51 = vmul.f32 %v1091_v10, %v1091_v10  ;;  %v1304_v41 = vsel %vm1219_vm1, %v1303_v7, %v1302_v58 }
 0x1c8   : > { %v1272_v1 = vsel %vm1222_vm2, %v1271_v63, %v1270_v46  ;;  %v1232_v47 = vsel %vm1213_vm14, %v1231_v43, %v1230_v61  ;;  %v1237_v42 = vrot.slane %v2558_v56, 2  ;;  %v1306_v15 = vsel %vm1222_vm2, %v1305_v60, %v1304_v41 }
 0x1c9   : > { %v1121_v62 = vadd.f32 %v1120_v32, %v2350_v33  ;;  %v1157_v19 = vadd.f32 %v1156_v53, %v1142_v51  ;;  %1273 = vrot.lane.b32.xlu2 %v1272_v1, %s1911_s20  ;;  %v1234_v9 = vsel %vm1216_vm15, %v1233_v5, %v1232_v47  ;;  %1307 = vrot.lane.b32.xlu1 %v1306_v15, %s1912_s22  ;;  %v1322_v17 = vrot.slane %v2558_v56, 7  ;;  %s1917_s20 = smov 56   ;;  %s1922_s22 = smov 104  }
 0x1ca   : > { %v1236_v7 = vsel %vm1219_vm1, %v1235_v12, %v1234_v9  ;;  %v1316_v43 = vsel %vm1210_vm13, %v1315_v31, %v1314_v13  ;;  %v1247_v33 = vsel %vm1210_vm13, %v1246_v6, %v1245_v54  ;;  %v2606_v63 = vadd.f32 %v2355_v26, %v1091_v10 }
 0x1cb   : > { %v1122_v58 = vadd.f32 %v1121_v62, %v2364_v44  ;;  %v1158_v52 = vadd.f32 %v1157_v19, %v2368_v40  ;;  %v1238_v29 = vsel %vm1222_vm2, %v1237_v42, %v1236_v7  ;;  %v1111_v60 = vpop.f32.mrf.mxu3  ;;  %v1318_v5 = vsel %vm1213_vm14, %v1317_v11, %v1316_v43 }
 0x1cc   : > { %1239 = vrot.lane.b32.xlu0 %v1238_v29, %s1908_s14  ;;  %v2610_v12 = vadd.f32 %v2355_v26, %v1111_v60  ;;  %v1320_v44 = vsel %vm1216_vm15, %v1319_v2, %v1318_v5  ;;  %v2859_v40 = vrot.slane %v2359_v36, 6  ;;  %v2860_v6 = vrot.slane %v2452_v8, 5  ;;  %s1913_s14 = smov 48  }
 0x1cd   : > { %v1123_v54 = vadd.f32 %v1122_v58, %v2437_v21  ;;  %v1159_v11 = vadd.f32 %v1158_v52, %v2399_v55  ;;  %v1321_v31 = vsel %vm1219_vm1, %v2390_v50, %v1320_v44  ;;  %v2861_v61 = vrot.slane %v2390_v50, 4 }
 0x1ce   : > { %v1249_v13 = vsel %vm1213_vm14, %v2859_v40, %v1247_v33  ;;  %v1323_v10 = vsel %vm1222_vm2, %v1322_v17, %v1321_v31  ;;  %v1254_v53 = vrot.slane %v2558_v56, 3  ;;  %v1281_v32 = vrot.slane %v2525_v25, 1 }
 0x1cf   : > { %v1251_v26 = vsel %vm1216_vm15, %v2860_v6, %v1249_v13  ;;  %v1160_v21 = vadd.f32 %v1159_v11, %v2448_v28  ;;  %v1124_v55 = vadd.f32 %v1123_v54, %v2491_v38  ;;  %v1288_v51 = vrot.slane %v2558_v56, 5 }
 0x1d0   : > { %v1253_v2 = vsel %vm1219_vm1, %v2861_v61, %v1251_v26  ;;  %v1332_v46 = vrot.slane %v2525_v25, 4  ;;  %v1282_v1 = vsel %vm1210_vm13, %v1281_v32, %v2530_v39  ;;  %v1372_v47 = vsel %vm1207_vm12, %v1371_v35, %v2540_v49 }
 0x1d1   : > { %v1255_v41 = vsel %vm1222_vm2, %v1254_v53, %v1253_v2  ;;  %v1373_v42 = vrot.slane %v2606_v63, 6  ;;  %v1125_v28 = vadd.f32 %v1124_v55, %v2378_v45  ;;  %v1161_v38 = vadd.f32 %v1160_v21, %v2503_v48  ;;  %1324 = vrot.lane.b32.xlu2 %v1323_v10, %s1913_s14  ;;  %s1923_s14 = smov 120  }
 0x1d2   : > { %v1283_v62 = vsel %vm1213_vm14, %v2359_v36, %v1282_v1  ;;  %v1333_v19 = vsel %vm1210_vm13, %v1332_v46, %v2533_v59  ;;  %1256 = vrot.lane.b32.xlu1 %v1255_v41, %s1914_s23  ;;  %v2862_v39 = vrot.slane %v2452_v8, 7  ;;  %v2863_v49 = vrot.slane %v2359_v36, 3  ;;  %s1924_s23 = smov 112  }
 0x1d3   : > { %v1374_v48 = vsel %vm1210_vm13, %v1373_v42, %v1372_v47  ;;  %v1381_v15 = vrot.slane %v2610_v12, 2  ;;  %v1126_v9 = vadd.f32 %v1125_v28, %v2427_v16  ;;  %v1162_v7 = vadd.f32 %v1161_v38, %v2411_v0 }
 0x1d4   : > { %v1285_v35 = vsel %vm1216_vm15, %v2862_v39, %v1283_v62  ;;  %v1335_v45 = vsel %vm1213_vm14, %v2863_v49, %v1333_v19  ;;  %v2864_v59 = vrot.slane %v2390_v50, 6  ;;  %v2865_v17 = vrot.slane %v2452_v8, 2 }
 0x1d5   : > { %v2866_v52 = vrot.slane %v2390_v50, 1  ;;  %v2867_v5 = vrot.slane %v2376_v23, 5  ;;  %v1353_v0 = vsel %vm1204_vm11, %v1352_v22, %v2383_v4  ;;  %v1127_v44 = vadd.f32 %v1126_v9, %v2550_v30 }
 0x1d6   : > { %v1287_v43 = vsel %vm1219_vm1, %v2864_v59, %v1285_v35  ;;  %v1337_v33 = vsel %vm1216_vm15, %v2865_v17, %v1335_v45  ;;  %v1150_v40 = vmul.f32 %v1111_v60, %v1111_v60  ;;  %v1163_v13 = vadd.f32 %v1162_v7, %v2444_v27 }
 0x1d7   : > { %v1289_v58 = vsel %vm1222_vm2, %v1288_v51, %v1287_v43  ;;  %v1339_v29 = vsel %vm1219_vm1, %v2866_v52, %v1337_v33  ;;  %v1376_v16 = vsel %vm1213_vm14, %v2867_v5, %v1374_v48  ;;  %v2868_v54 = vrot.slane %v2507_v18, 4 }
 0x1d8   : > { %1290 = vrot.lane.b32.xlu0 %v1289_v58, %s1915_s30  ;;  %v1340_v31 = vsel %vm1222_vm2, %v2558_v56, %v1339_v29  ;;  %v2869_v6 = vrot.slane %v2435_v20, 3  ;;  %v2870_v22 = vrot.slane %v2463_v34, 6  ;;  %v1356_v10 = vrot.slane %v2606_v63, 5  ;;  %s1721_s30 = sshll.u32 %s1894_s25, 1 }
 0x1d9   : > { %v1378_v11 = vsel %vm1216_vm15, %v2868_v54, %v1376_v16  ;;  %v1128_v27 = vadd.f32 %v1127_v44, %v1111_v60  ;;  %v1164_v61 = vadd.f32 %v1163_v13, %v2566_v3  ;;  %v1360_v53 = vrot.slane %v2507_v18, 3 }
 0x1da   : > { %v1380_v26 = vsel %vm1219_vm1, %v2869_v6, %v1378_v11  ;;  %v1355_v30 = vsel %vm1207_vm12, %v2870_v22, %v1353_v0  ;;  %v1364_v21 = vrot.slane %v2610_v12, 1  ;;  %v1387_v55 = vrot.slane %v2521_v14, 1 }
 0x1db   : > { %v1382_v2 = vsel %vm1222_vm2, %v1381_v15, %v1380_v26  ;;  %v1357_v32 = vsel %vm1210_vm13, %v1356_v10, %v1355_v30  ;;  %v1390_v51 = vrot.slane %v2606_v63, 7  ;;  %v1129_v46 = vrot.slane %v1128_v27, 4 }
 0x1dc   : > { %v1165_v41 = vadd.f32 %v1164_v61, %v1150_v40  ;;  %1383 = vrot.lane.b32.xlu2 %v1382_v2, %s1916_s18  ;;  %v2871_v3 = vrot.slane %v2376_v23, 4  ;;  %v1394_v1 = vrot.slane %v2507_v18, 5  ;;  %v2872_v42 = vrot.slane %v2383_v4, 2  ;;  %s448_s18 = sadd.s32 %s1890_s24, %s1721_s30 }
 0x1dd   : > { %v1396_v38 = vrot.slane %v2435_v20, 4  ;;  %v1421_v62 = vrot.slane %v2521_v14, 3  ;;  %v1130_v19 = vadd.f32 %v1129_v46, %v1128_v27  ;;  %v2873_v35 = vrot.slane %v2435_v20, 2  ;;  %p449_p0 = scmp.lt.s32.totalorder %s448_s18, 3 }
 0x1de   : > { %v1359_v60 = vsel %vm1213_vm14, %v2871_v3, %v1357_v32  ;;  %v1388_v28 = vsel %vm1204_vm11, %v1387_v55, %v2872_v42  ;;  %v1166_v39 = vrot.slane %v1165_v41, 4  ;;  %v2874_v9 = vrot.slane %v2383_v4, 4 }
 0x1df   : > { %v1361_v47 = vsel %vm1216_vm15, %v1360_v53, %v1359_v60  ;;  %v1389_v45 = vsel %vm1207_vm12, %v2463_v34, %v1388_v28  ;;  %v1423_v59 = vrot.slane %v2463_v34, 2  ;;  %v1131_v43 = vrot.slane %v1130_v19, 2  ;;  %s2901_s18 = smov (!%p449_p0, %s448_s18), 3 }
 0x1e0   : > { %v1363_v49 = vsel %vm1219_vm1, %v2873_v35, %v1361_v47  ;;  %v1391_v15 = vsel %vm1210_vm13, %v1390_v51, %v1389_v45  ;;  %v1422_v7 = vsel %vm1204_vm11, %v1421_v62, %v2874_v9  ;;  %v1167_v17 = vadd.f32 %v1166_v39, %v1165_v41  ;;  %1341 = vrot.lane.b32.xlu0 %v1340_v31, %s1917_s20  ;;  %s1722_s9 = sshll.u32 %s2901_s18, 2 }
 0x1e1   : > { %v1365_v48 = vsel %vm1222_vm2, %v1364_v21, %v1363_v49  ;;  %v2875_v33 = vrot.slane %v2376_v23, 6  ;;  %v1425_v52 = vrot.slane %v2606_v63, 1  ;;  %v1398_v5 = vrot.slane %v2610_v12, 3  ;;  %s452_s19 = scalar_lea.vmem %s2854_s6, %s1722_s9 }
 0x1e2   : > { %1366 = vrot.lane.b32.xlu1 %v1365_v48, %s1918_s11  ;;  %v1424_v16 = vsel %vm1207_vm12, %v1423_v59, %v1422_v7  ;;  %v1428_v0 = vrot.slane %v2507_v18, 7  ;;  %v1132_v44 = vadd.f32 %v1131_v43, %v1130_v19  ;;  %v1168_v40 = vrot.slane %v1167_v17, 2 }
 0x1e3   : > { %v1393_v58 = vsel %vm1213_vm14, %v2875_v33, %v1391_v15  ;;  %v1426_v54 = vsel %vm1210_vm13, %v1425_v52, %v1424_v16  ;;  %v1430_v31 = vrot.slane %v2435_v20, 6  ;;  %v1432_v6 = vrot.slane %v2610_v12, 5 }
 0x1e4   : > { %v1395_v29 = vsel %vm1216_vm15, %v1394_v1, %v1393_v58  ;;  %v1427_v11 = vsel %vm1213_vm14, %v2376_v23, %v1426_v54  ;;  %v1404_v26 = vrot.slane %v2521_v14, 2  ;;  %v1133_v22 = vrot.slane %v1132_v44, 1 }
 0x1e5   : > { %v1397_v13 = vsel %vm1219_vm1, %v1396_v38, %v1395_v29  ;;  %v1169_v30 = vadd.f32 %v1168_v40, %v1167_v17  ;;  %v1429_v10 = vsel %vm1216_vm15, %v1428_v0, %v1427_v11  ;;  %v1406_v27 = vrot.slane %v2463_v34, 1 }
 0x1e6   : > { %v1399_v61 = vsel %vm1222_vm2, %v1398_v5, %v1397_v13  ;;  %v1431_v2 = vsel %vm1219_vm1, %v1430_v31, %v1429_v10  ;;  %v2876_v53 = vrot.slane %v2383_v4, 3  ;;  %v1411_v21 = vrot.slane %v2507_v18, 6 }
 0x1e7   : > { %v1170_v55 = vrot.slane %v1169_v30, 1  ;;  %v1433_v51 = vsel %vm1222_vm2, %v1432_v6, %v1431_v2  ;;  %v1413_v41 = vrot.slane %v2435_v20, 5  ;;  %v1134_v3 = vadd.f32 %v1133_v22, %v1132_v44 }
 0x1e8   : > { %v1405_v32 = vsel %vm1204_vm11, %v1404_v26, %v2876_v53  ;;  %1434 = vrot.lane.b32.xlu2 %v1433_v51, %s1919_s12  ;;  %v1415_v1 = vrot.slane %v2610_v12, 4  ;;  %v1438_v47 = vrot.slane %v2521_v14, 4  ;;  %1400 = vrot.lane.b32.xlu0 %v1399_v61, %s1920_s21  ;;  %v2877_v28 = vrot.slane %v2376_v23, 7 }
 0x1e9   : > { %v1407_v46 = vsel %vm1207_vm12, %v1406_v27, %v1405_v32  ;;  %v1171_v42 = vadd.f32 %v1170_v55, %v1169_v30  ;;  %v1440_v62 = vrot.slane %v2463_v34, 3  ;;  %v1442_v19 = vrot.slane %v2606_v63, 2 }
 0x1ea   : > { %v1408_v60 = vsel %vm1210_vm13, %v2606_v63, %v1407_v46  ;;  %v2878_v35 = vrot.slane %v2383_v4, 5  ;;  %v1449_v45 = vrot.slane %v2610_v12, 6  ;;  %v1471_v48 = vrot.slane %v2383_v4, 7 }
 0x1eb   : > { %v1410_v38 = vsel %vm1213_vm14, %v2877_v28, %v1408_v60  ;;  %v1173_v15 = vsel %vm672_vm0, %v1134_v3, %v1171_v42  ;;  %v1472_v59 = vrot.slane %v2521_v14, 6  ;;  %v1474_v33 = vrot.slane %v2463_v34, 5 }
 0x1ec   : > { %v1412_v39 = vsel %vm1216_vm15, %v1411_v21, %v1410_v38  ;;  %v1439_v49 = vsel %vm1204_vm11, %v1438_v47, %v2878_v35  ;;  %1174 = vst [vmem:[%s462_s17] sm:$0x3] %v1173_v15  ;;  %v1476_v58 = vrot.slane %v2606_v63, 4  ;;  %v2879_v52 = vrot.slane %v2376_v23, 1 }
 0x1ed   : > { %v1414_v9 = vsel %vm1219_vm1, %v1413_v41, %v1412_v39  ;;  %v1441_v7 = vsel %vm1207_vm12, %v1440_v62, %v1439_v49  ;;  %v1447_v5 = vrot.slane %v2435_v20, 7  ;;  %v1473_v16 = vsel %vm1204_vm11, %v1472_v59, %v1471_v48 }
 0x1ee   : > { %v1416_v43 = vsel %vm1222_vm2, %v1415_v1, %v1414_v9  ;;  %v1443_v17 = vsel %vm1210_vm13, %v1442_v19, %v1441_v7  ;;  %v1478_v0 = vrot.slane %v2376_v23, 3  ;;  %v1475_v40 = vsel %vm1207_vm12, %v1474_v33, %v1473_v16 }
 0x1ef   : > { %1417 = vrot.lane.b32.xlu1 %v1416_v43, %s1921_s10  ;;  %v1445_v29 = vsel %vm1213_vm14, %v2879_v52, %v1443_v17  ;;  %v1480_v13 = vrot.slane %v2507_v18, 2  ;;  %v1482_v54 = vrot.slane %v2435_v20, 1  ;;  %v1477_v31 = vsel %vm1210_vm13, %v1476_v58, %v1475_v40 }
 0x1f0   : > { %v1446_v44 = vsel %vm1216_vm15, %v2507_v18, %v1445_v29  ;;  %v1454_v6 = vrot.slane %v2383_v4, 6  ;;  %v1455_v26 = vrot.slane %v2521_v14, 5  ;;  %v1479_v30 = vsel %vm1213_vm14, %v1478_v0, %v1477_v31 }
 0x1f1   : > { %v1448_v11 = vsel %vm1219_vm1, %v1447_v5, %v1446_v44  ;;  %v1457_v10 = vrot.slane %v2463_v34, 4  ;;  %v1459_v27 = vrot.slane %v2606_v63, 3  ;;  %v1481_v61 = vsel %vm1216_vm15, %v1480_v13, %v1479_v30 }
 0x1f2   : > { %v1450_v22 = vsel %vm1222_vm2, %v1449_v45, %v1448_v11  ;;  %v1456_v2 = vsel %vm1204_vm11, %v1455_v26, %v1454_v6  ;;  %v1461_v53 = vrot.slane %v2376_v23, 2  ;;  %v1463_v4 = vrot.slane %v2507_v18, 1 }
 0x1f3   : > { %1451 = vrot.lane.b32.xlu0 %v1450_v22, %s1922_s22  ;;  %v1483_v14 = vsel %vm1219_vm1, %v1482_v54, %v1481_v61  ;;  %v1458_v32 = vsel %vm1207_vm12, %v1457_v10, %v1456_v2  ;;  %v1466_v21 = vrot.slane %v2610_v12, 7  ;;  %v1203_v34 = vrot.slane %v2468_v24, 7 }
 0x1f4   : > { %v1484_v63 = vsel %vm1222_vm2, %v2610_v12, %v1483_v14  ;;  %v1460_v55 = vsel %vm1210_vm13, %v1459_v27, %v1458_v32  ;;  %v1206_v51 = vrot.slane %v2403_v57, 6  ;;  %v1209_v46 = vrot.slane %v2525_v25, 5 }
 0x1f5   : > { %1485 = vrot.lane.b32.xlu2 %v1484_v63, %s1923_s14  ;;  %v1462_v23 = vsel %vm1213_vm14, %v1461_v53, %v1460_v55  ;;  %v1205_v18 = vsel %vm1204_vm11, %v1203_v34, %v2362_v37  ;;  %v1212_v57 = vrot.slane %v2359_v36, 4  ;;  %v1215_v60 = vrot.slane %v2452_v8, 3 }
 0x1f6   : > { %v1464_v41 = vsel %vm1216_vm15, %v1463_v4, %v1462_v23  ;;  %v1208_v24 = vsel %vm1207_vm12, %v1206_v51, %v1205_v18  ;;  %v1218_v37 = vrot.slane %v2390_v50, 2  ;;  %vm1489_vm0 = vcmask 130048  }
 0x1f7   : > { %v1465_v12 = vsel %vm1219_vm1, %v2435_v20, %v1464_v41  ;;  %v1211_v3 = vsel %vm1210_vm13, %v1209_v46, %v1208_v24  ;;  %v1221_v20 = vrot.slane %v2558_v56, 1  ;;  %vm1508_vm11 = vcmask 785408  }
 0x1f8   : > { %v1467_v25 = vsel %vm1222_vm2, %v1466_v21, %v1465_v12  ;;  %v1214_v1 = vsel %vm1213_vm14, %v1212_v57, %v1211_v3  ;;  %vm1510_vm12 = vcmask 850944   ;;  %vm1512_vm13 = vcmask 916480  }
 0x1f9   : > { %1468 = vrot.lane.b32.xlu1 %v1467_v25, %s1924_s23  ;;  %v1217_v47 = vsel %vm1216_vm15, %v1215_v60, %v1214_v1  ;;  %vm1514_vm14 = vcmask 982016  }
 0x1fa   : > { %v1220_v42 = vsel %vm1219_vm1, %v1218_v37, %v1217_v47 }
 0x1fb   : > { %v1223_v28 = vsel %vm1222_vm2, %v1221_v20, %v1220_v42 }
 0x223   : > { %v1274_v62 = vpop.permute.xlu2 %1273 }
 0x22b   : > { %v1325_v35 = vpop.permute.xlu2 %1324 }
 0x236   : > { %v1384_v9 = vpop.permute.xlu2 %1383 }
 0x23b   : > { %v1308_v38 = vpop.permute.xlu1 %1307 }
 0x23e   : > { %v1240_v36 = vpop.permute.xlu0 %1239 }
 0x23f   : > { %v1488_v39 = vsel %vm928_vm6, %v1223_v28, %v1240_v36  ;;  %vm1502_vm6 = vcmask 588800  }
 0x242   : > { %v1435_v52 = vpop.permute.xlu2 %1434 }
 0x244   : > { %v1257_v19 = vpop.permute.xlu1 %1256 }
 0x245   : > { %v1490_v49 = vsel %vm1489_vm0, %v1488_v39, %v1257_v19 }
 0x246   : > { %v1491_v50 = vsel %vm1007_vm8, %v1490_v49, %v1274_v62  ;;  %vm1506_vm8 = vcmask 719872  }
 0x24a   : > { %v1291_v8 = vpop.permute.xlu0 %1290 }
 0x24b   : > { %v1493_v45 = vsel %vm1492_vm3, %v1491_v50, %v1291_v8 }
 0x24c   : > { %v1495_v48 = vsel %vm1494_vm4, %v1493_v45, %v1308_v38 }
 0x24d   : > { %v1497_v7 = vsel %vm1496_vm5, %v1495_v48, %v1325_v35 }
 0x24f   : > { %v1486_v13 = vpop.permute.xlu2 %1485 }
 0x252   : > { %v1342_v56 = vpop.permute.xlu0 %1341 }
 0x253   : > { %v1499_v59 = vsel %vm1498_vm7, %v1497_v7, %v1342_v56 }
 0x254   : > { %v1367_v15 = vpop.permute.xlu1 %1366 }
 0x255   : > { %v1501_v17 = vsel %vm1500_vm9, %v1499_v59, %v1367_v15 }
 0x256   : > { %v1503_v33 = vsel %vm1502_vm6, %v1501_v17, %v1384_v9 }
 0x25a   : > { %v1401_v43 = vpop.permute.xlu0 %1400 }
 0x25b   : > { %v1505_v29 = vsel %vm1504_vm10, %v1503_v33, %v1401_v43 }
 0x261   : > { %v1418_v58 = vpop.permute.xlu1 %1417 }
 0x262   : > { %v1507_v5 = vsel %vm1506_vm8, %v1505_v29, %v1418_v58 }
 0x263   : > { %v1509_v0 = vsel %vm1508_vm11, %v1507_v5, %v1435_v52 }
 0x265   : > { %v1452_v16 = vpop.permute.xlu0 %1451 }
 0x266   : > { %v1511_v44 = vsel %vm1510_vm12, %v1509_v0, %v1452_v16 }
 0x26b   : > { %v1469_v40 = vpop.permute.xlu1 %1468 }
 0x26c   : > { %v1513_v54 = vsel %vm1512_vm13, %v1511_v44, %v1469_v40 }
 0x26d   : > { %v1515_v11 = vsel %vm1514_vm14, %v1513_v54, %v1486_v13 }
 0x26e   : > { %v1516_v31 = vpack.c.bf16 %v1515_v11, %v1515_v11 }
 0x270   : > { %1517 = vst [vmem:[%s452_s19] sm:$0xf] %v1516_v31 }
 0x271 PF: > { %s18_s3 = sadd.s32 1, %s1906_s3   ;;  %s2880_s24 = smov %s1898_s26 }
 0x272   : > { %p15_p1 = scmp.ge.s32.totalorder %s18_s3, 6   ;;  %s2881_s25 = smov %s1902_s27 }
 0x273   : > { %s2882_s26 = smov %s2885_s28  ;;  %s2883_s27 = smov %s2889_s29 }
 0x274   :  { %17 = sbr.rel (!%p15_p1) target bundleno = 3 (0x3), region = 92 }

// kernel: conv_block_forward.4
= control target key start
LH: loop header
LB: loop body
LE: loop exit
PB: predicated region body
PF: predicated region fallthrough
CT: control target
= control target key end

     0   :  { %s2094_s24 = smov 0   ;;  %s2096_s25 = smov 0   ;;  %s3072_s0 = inlined_call_operand.vmem [shape: bf16[2,16,16,8], index: 0, kind: input, shape index: {}, may-alias: {0,1,2}]   ;;  %s3073_s1 = inlined_call_operand.vmem [shape: bf16[2,16,16,8], index: 1, kind: input, shape index: {}, may-alias: {0,1,2}]   ;;  %s3074_s2 = inlined_call_operand.vmem [shape: bf16[2,16,16,8], index: 2, kind: input, shape index: {}, may-alias: {0,1,2}]   ;;  %s3075_s3 = inlined_call_operand.vmem [shape: f32[2,8], index: 3, kind: input, shape index: {}]   ;;  %s3076_s4 = inlined_call_operand.vmem [shape: bf16[72,128], index: 4, kind: input, shape index: {}]   ;;  %s3077_s5 = inlined_call_operand.vmem [shape: f32[1,128], index: 5, kind: input, shape index: {}]   ;;  %s3078_s6 = inlined_call_operand.vmem [shape: f32[4,8,128], index: 6, kind: output, shape index: {0}]   ;;  %s3079_s7 = inlined_call_operand.vmem [shape: f32[2,2,2,128], index: 7, kind: output, shape index: {1}]  }
   0x1   :  { %s2098_s26 = smov 0   ;;  %s2100_s27 = smov 0  }
   0x2   :  { %s2102_s28 = smov 0  }
   0x3 LB: > { %s27_s29 = sadd.s32 1, %s2029_s26  ;;  %s30_s30 = sadd.s32 1, %s2033_s27  ;;  %s2037_s28 = sphi %s2102_s28, %s18_s28   ;;  %s2033_s27 = sphi %s2100_s27, %s3118_s27   ;;  %s2029_s26 = sphi %s2098_s26, %s3117_s26   ;;  %s2025_s25 = sphi %s2096_s25, %s3116_s25   ;;  %s2021_s24 = sphi %s2094_s24, %s3115_s24  }
   0x4   : > { %p28_p0 = scmp.ge.s32.totalorder %s27_s29, 2  ;;  %p1815_p1 = scmp.ge.s32.totalorder %s2037_s28, 1 }
   0x5   : > { %p330_p2 = scmp.lt.s32.totalorder %s2037_s28, 5 }
   0x6   : > { %s3120_s29 = smov (%p28_p0, %s27_s29), 0  ;;  %s3122_s30 = smov (!%p28_p0, %s30_s30), %s2033_s27 }
   0x7   : > { %p331_p3 = pnand %p1815_p1, %p330_p2  ;;  %p32_p4 = scmp.ge.s32.totalorder %s3122_s30, 2 }
   0x8   : > { %s2129_s8 = sshll.u32 (!%p331_p3), %s2021_s24, 3  ;;  %p406_p5 = scmp.lt.s32.totalorder (!%p331_p3), %s2025_s25, 1 }
   0x9   : > { %s3124_s30 = smov (%p32_p4, %s3122_s30), 0  ;;  %334 = sbr.rel (%p331_p3) target bundleno = 645 (0x285), region = 44 }
   0xa   : > { %p422_p6 = scmp.lt.s32.totalorder (!%p331_p3), %s2129_s8, 15  ;;  %s2173_s22 = sadd.s32 (!%p331_p3), 4294967295, %s2129_s8 }
   0xb   : > { %p404_p7 = scmp.gt.s32.totalorder (!%p331_p3), %s2173_s22, 0  ;;  %p457_p8 = scmp.lt.s32.totalorder (!%p331_p3), %s2021_s24, 1 }
   0xc   : > { %p1818_p9 = scmp.lt.s32.totalorder (!%p331_p3), %s2173_s22, 15  ;;  %s2039_s19 = smov (!%p331_p3), 16  }
   0xd   : > { %p588_p12 = scmp.gt.s32.totalorder (!%p331_p3), %s2021_s24, 0 }
   0xe   : > { %s2134_s9 = scalar_select %p406_p5, %s2025_s25, 1  ;;  %v2149_v0 = vld [vmem:[%s3075_s3] ss:$0 sm:$0xff]  ;;  %v2157_v4 = vld [vmem:[%s3075_s3 + $0x1] ss:$0 sm:$0xff]  ;;  %vm776_vm0 = vcmask 1040384  }
   0xf   : > { %s423_s10 = scalar_select %p422_p6, %s2129_s8, 15  ;;  %vm777_vm1 = vsmask.f32 256  ;;  %vm960_vm2 = vcmask 1046528   ;;  %vm799_vm4 = vsmask.f32 7424 }
  0x10   : > { %s2138_s11 = sshll.u32 %s2134_s9, 5  ;;  %vm2192_vm3 = vmand %vm776_vm0, %vm777_vm1  ;;  %vm1011_vm5 = vcmask 64512   ;;  %vm1032_vm6 = vcmask 130048   ;;  %vm1181_vm7 = vcmask 1043456   ;;  %vm1111_vm8 = vcmask 392192  }
  0x11   : > { %s1827_s12 = sshll.u32 %s423_s10, 1  ;;  %vm1094_vm9 = vcmask 195584   ;;  %vm1164_vm10 = vcmask 588800   ;;  %vm1324_vm11 = vcmask 1041409   ;;  %vm1327_vm12 = vcmask 1042434  }
  0x12   : > { %s426_s13 = sadd.s32 %s1827_s12, %s2138_s11  ;;  %s1874_s12 = sadd.s32 8, %s2129_s8  ;;  %vm1330_vm13 = vcmask 1043459   ;;  %vm1333_vm14 = vcmask 1044484   ;;  %vm1336_vm15 = vcmask 1045509   ;;  %vm1339_vm1 = vcmask 1046534  }
  0x13   : > { %s1829_s14 = sshll.u32 %s426_s13, 2  ;;  %p2222_p10 = scmp.lt.s32.totalorder %s1874_s12, 15 }
  0x14   : > { %s2144_s17 = scalar_lea.vmem %s3073_s1, %s1829_s14 }
  0x15   : > { %v1924_v1 = vld [vmem:[%s2144_s17 + $0x30] sm:$0xff]   ;;  %v1923_v2 = vld [vmem:[%s2144_s17 + $0x28] sm:$0xff]   ;;  %v1922_v3 = vld [vmem:[%s2144_s17 + $0x20] sm:$0xff]   ;;  %s405_s23 = scalar_select %p404_p7, %s2173_s22, 0 }
  0x16   : > { %v1909_v5 = vunpack.c.l.bf16 %v1924_v1  ;;  %v1910_v6 = vunpack.c.h.bf16 %v1924_v1  ;;  %v1905_v7 = vunpack.c.l.bf16 %v1923_v2  ;;  %v1906_v8 = vunpack.c.h.bf16 %v1923_v2  ;;  %v1925_v9 = vld [vmem:[%s2144_s17 + $0x38] sm:$0xff]   ;;  %v1884_v46 = vld [vmem:[%s2144_s17] sm:$0xff]   ;;  %v2187_v58 = vld [vmem:[%s2144_s17 + $0x8] sm:$0xff]   ;;  %s613_s10 = scalar_select %p457_p8, 1, 0 }
  0x17   : > { %v1901_v10 = vunpack.c.l.bf16 %v1922_v3  ;;  %v1902_v11 = vunpack.c.h.bf16 %v1922_v3  ;;  %v1913_v12 = vunpack.c.l.bf16 %v1925_v9  ;;  %v1914_v13 = vunpack.c.h.bf16 %v1925_v9  ;;  %s3126_s23 = smov (!%p1818_p9, %s405_s23), 15  ;;  %s3128_s12 = smov (!%p2222_p10, %s1874_s12), 15 }
  0x18   : > { %v524_v14 = vmul.f32 %v2149_v0, %v1909_v5  ;;  %v525_v15 = vmul.f32 %v2149_v0, %v1910_v6  ;;  %v522_v16 = vmul.f32 %v2149_v0, %v1905_v7  ;;  %v523_v17 = vmul.f32 %v2149_v0, %v1906_v8  ;;  %s1823_s13 = sshll.u32 %s3126_s23, 1  ;;  %s2211_s14 = scvt.s32.f32 %s613_s10 }
  0x19   : > { %v520_v18 = vmul.f32 %v2149_v0, %v1901_v10  ;;  %v521_v19 = vmul.f32 %v2149_v0, %v1902_v11  ;;  %v526_v20 = vmul.f32 %v2149_v0, %v1913_v12  ;;  %v527_v21 = vmul.f32 %v2149_v0, %v1914_v13  ;;  %s2214_s15 = sadd.s32 %s2138_s11, %s1823_s13  ;;  %s3130_s12 = smov (!%p2222_p10, %s3128_s12), 15 }
  0x1a   : > { %v540_v22 = vadd.f32 %v2157_v4, %v524_v14  ;;  %v541_v23 = vadd.f32 %v2157_v4, %v525_v15  ;;  %v538_v24 = vadd.f32 %v2157_v4, %v522_v16  ;;  %v539_v25 = vadd.f32 %v2157_v4, %v523_v17  ;;  %s617_s18 = sshrl.u32 %s2211_s14, 16  ;;  %s2288_s22 = sshll.u32 %s3130_s12, 1 }
  0x1b   : > { %v536_v26 = vadd.f32 %v2157_v4, %v520_v18  ;;  %v537_v27 = vadd.f32 %v2157_v4, %v521_v19  ;;  %v542_v28 = vadd.f32 %v2157_v4, %v526_v20  ;;  %v543_v29 = vadd.f32 %v2157_v4, %v527_v21  ;;  %s618_s8 = sand.u32 1, %s617_s18  ;;  %p616_p11 = scmp.ne.f32.partialorder %s2211_s14, %s2211_s14 }
  0x1c   : > { %v556_v30 = vmax.f32 %v540_v22, 0.0  ;;  %v557_v31 = vmax.f32 %v541_v23, 0.0  ;;  %v554_v32 = vmax.f32 %v538_v24, 0.0  ;;  %v555_v33 = vmax.f32 %v539_v25, 0.0  ;;  %s619_s20 = sadd.s32 32767, %s618_s8  ;;  %s440_s10 = sadd.s32 %s2288_s22, %s2138_s11 }
  0x1d   : > { %v552_v34 = vmax.f32 %v536_v26, 0.0  ;;  %v553_v35 = vmax.f32 %v537_v27, 0.0  ;;  %v558_v36 = vmax.f32 %v542_v28, 0.0  ;;  %v559_v37 = vmax.f32 %v543_v29, 0.0  ;;  %s2283_s21 = sadd.s32 %s619_s20, %s2211_s14  ;;  %s2313_s11 = sshll.u32 %s440_s10, 2 }
  0x1e   : > { %v572_v38 = vpack.c.bf16 %v556_v30, %v556_v30  ;;  %v573_v39 = vpack.c.bf16 %v557_v31, %v557_v31  ;;  %v570_v40 = vpack.c.bf16 %v554_v32, %v554_v32  ;;  %v571_v41 = vpack.c.bf16 %v555_v33, %v555_v33  ;;  %s621_s23 = sand.u32 4294901760, %s2283_s21  ;;  %s442_s14 = scalar_lea.vmem %s3074_s2, %s2313_s11 }
  0x1f   : > { %v568_v42 = vpack.c.bf16 %v552_v34, %v552_v34  ;;  %v569_v43 = vpack.c.bf16 %v553_v35, %v553_v35  ;;  %v574_v44 = vpack.c.bf16 %v558_v36, %v558_v36  ;;  %v575_v45 = vpack.c.bf16 %v559_v37, %v559_v37  ;;  %s3132_s23 = smov (%p616_p11, %s621_s23), 2143289344  ;;  %s1825_s12 = sshll.u32 %s2214_s15, 2 }
  0x20   : > { %v670_v47 = vunpack.c.l.b16 %v572_v38  ;;  %v671_v48 = vunpack.c.l.b16 %v573_v39  ;;  %v668_v49 = vunpack.c.l.b16 %v570_v40  ;;  %v669_v50 = vunpack.c.l.b16 %v571_v41  ;;  %s624_s16 = sshrl.u32 %s3132_s23, 16 }
  0x21   : > { %v666_v51 = vunpack.c.l.b16 %v568_v42  ;;  %v667_v52 = vunpack.c.l.b16 %v569_v43  ;;  %v672_v53 = vunpack.c.l.b16 %v574_v44  ;;  %v673_v54 = vunpack.c.l.b16 %v575_v45  ;;  %s625_s18 = sshll.u32 %s624_s16, 16 }
  0x22   : > { %v683_v55 = vpack.c.b16 %v671_v48, %v670_v47  ;;  %v682_v56 = vpack.c.b16 %v669_v50, %v668_v49  ;;  %v1885_v57 = vunpack.c.l.bf16 %v1884_v46  ;;  %v1886_v61 = vunpack.c.h.bf16 %v1884_v46  ;;  %s626_s8 = sor.u32 %s625_s18, %s624_s16  ;;  %s414_s18 = scalar_lea.vmem %s3072_s0, %s1825_s12 }
  0x23   : > { %v681_v59 = vpack.c.b16 %v667_v52, %v666_v51  ;;  %v684_v60 = vpack.c.b16 %v673_v54, %v672_v53  ;;  %v1889_v8 = vunpack.c.l.bf16 %v2187_v58  ;;  %v1890_v16 = vunpack.c.h.bf16 %v2187_v58  ;;  %s589_s20 = scalar_select %p588_p12, 1, 0 }
  0x24   : > { %v736_v62 = vshrl.u32 %v683_v55, 16  ;;  %v739_v63 = vshll.u32 %v683_v55, 16  ;;  %v729_v1 = vshrl.u32 %v682_v56, 16  ;;  %v732_v2 = vshll.u32 %v682_v56, 16  ;;  %s2047_s12 = smov 64   ;;  %s2049_s16 = smov 96  }
  0x25   : > { %v722_v5 = vshrl.u32 %v681_v59, 16  ;;  %v725_v6 = vshll.u32 %v681_v59, 16  ;;  %v743_v7 = vshrl.u32 %v684_v60, 16  ;;  %v746_v11 = vshll.u32 %v684_v60, 16  ;;  %s2395_s21 = scvt.s32.f32 %s589_s20 }
  0x26   : > { %v738_v9 = vrot.slane %v736_v62, 7  ;;  %v731_v10 = vrot.slane %v729_v1, 7  ;;  %v512_v12 = vmul.f32 %v2149_v0, %v1885_v57  ;;  %v513_v15 = vmul.f32 %v2149_v0, %v1886_v61 }
  0x27   : > { %v724_v13 = vrot.slane %v722_v5, 7  ;;  %v745_v14 = vrot.slane %v743_v7, 7  ;;  %v514_v36 = vmul.f32 %v2149_v0, %v1889_v8  ;;  %v515_v47 = vmul.f32 %v2149_v0, %v1890_v16  ;;  %s593_s22 = sshrl.u32 %s2395_s21, 16  ;;  %p592_p13 = scmp.ne.f32.partialorder %s2395_s21, %s2395_s21 }
  0x28   : > { %v741_v17 = vor.u32 %v739_v63, %v738_v9  ;;  %v2205_v18 = vsel %vm2192_vm3, %v738_v9, 0  ;;  %v734_v19 = vor.u32 %v732_v2, %v731_v10  ;;  %v2209_v20 = vsel %vm2192_vm3, %v731_v10, 0  ;;  %s594_s23 = sand.u32 1, %s593_s22  ;;  %s2042_s22 = smov 48  }
  0x29   : > { %v983_v21 = vrot.slane %v2205_v18, 1  ;;  %v980_v22 = vrot.slane %v2209_v20, 1  ;;  %v727_v23 = vor.u32 %v725_v6, %v724_v13  ;;  %v794_v24 = vsel %vm2192_vm3, %v724_v13, 0  ;;  %v1920_v13 = vld [vmem:[%s2144_s17 + $0x10] sm:$0xff]   ;;  %s595_s10 = sadd.s32 32767, %s594_s23  ;;  %s2051_s23 = smov 104  }
  0x2a   : > { %v2228_v25 = vsel %vm2192_vm3, 0, %v741_v17  ;;  %v2232_v26 = vsel %vm2192_vm3, 0, %v734_v19  ;;  %v977_v27 = vrot.slane %v794_v24, 1  ;;  %v748_v28 = vor.u32 %v746_v11, %v745_v14  ;;  %s596_s11 = sadd.s32 %s595_s10, %s2395_s21  ;;  %s2041_s21 = smov 24  }
  0x2b   : > { %v982_v29 = vrot.slane %v2228_v25, 1  ;;  %v979_v30 = vrot.slane %v2232_v26, 1  ;;  %v2238_v31 = vsel %vm2192_vm3, 0, %v727_v23  ;;  %v2242_v32 = vsel %vm2192_vm3, %v745_v14, 0  ;;  %s597_s13 = sand.u32 4294901760, %s596_s11  ;;  %s2043_s10 = smov 40  }
  0x2c   : > { %v976_v33 = vrot.slane %v2238_v31, 1  ;;  %v2247_v34 = vsel %vm2192_vm3, 0, %v748_v28  ;;  %v528_v35 = vadd.f32 %v2157_v4, %v512_v12  ;;  %v986_v39 = vrot.slane %v2242_v32, 1  ;;  %s3134_s13 = smov (%p592_p13, %s597_s13), 2143289344  ;;  %s1839_s11 = sshll.u32 %s2134_s9, 1 }
  0x2d   : > { %v984_v37 = vsel %vm960_vm2, %v982_v29, %v983_v21  ;;  %v981_v38 = vsel %vm960_vm2, %v979_v30, %v980_v22  ;;  %v529_v40 = vadd.f32 %v2157_v4, %v513_v15  ;;  %v985_v42 = vrot.slane %v2247_v34, 1 }
  0x2e   : > { %1005 = vrot.lane.b32.xlu0 %v984_v37, %s2039_s19  ;;  %1003 = vrot.lane.b32.xlu2 %v981_v38, %s2039_s19  ;;  %v978_v41 = vsel %vm960_vm2, %v976_v33, %v977_v27  ;;  %v544_v43 = vmax.f32 %v528_v35, 0.0  ;;  %v863_v44 = vshll.u32 %v2238_v31, 16  ;;  %v868_v46 = vshll.u32 %v794_v24, 16 }
  0x2f   : > { %1001 = vrot.lane.b32.xlu1 %v978_v41, %s2039_s19  ;;  %v545_v45 = vmax.f32 %v529_v40, 0.0  ;;  %v861_v49 = vshrl.u32 %v2238_v31, 16  ;;  %v530_v51 = vadd.f32 %v2157_v4, %v514_v36  ;;  %v531_v53 = vadd.f32 %v2157_v4, %v515_v47 }
  0x30   : > { %v560_v48 = vpack.c.bf16 %v544_v43, %v544_v43  ;;  %v865_v50 = vrot.slane %v863_v44, 1  ;;  %v987_v54 = vsel %vm960_vm2, %v985_v42, %v986_v39  ;;  %v899_v57 = vshll.u32 %v2247_v34, 16 }
  0x31   : > { %v561_v52 = vpack.c.bf16 %v545_v45, %v545_v45  ;;  %v546_v56 = vmax.f32 %v530_v51, 0.0  ;;  %v870_v59 = vrot.slane %v868_v46, 1  ;;  %v547_v60 = vmax.f32 %v531_v53, 0.0 }
  0x32   : > { %v658_v55 = vunpack.c.l.b16 %v560_v48  ;;  %v897_v61 = vshrl.u32 %v2247_v34, 16  ;;  %v866_v62 = vor.u32 %v865_v50, %v861_v49  ;;  %v873_v1 = vshrl.u32 %v2232_v26, 16 }
  0x33   : > { %v659_v58 = vunpack.c.l.b16 %v561_v52  ;;  %v562_v63 = vpack.c.bf16 %v546_v56, %v546_v56  ;;  %v875_v2 = vshll.u32 %v2232_v26, 16  ;;  %v563_v6 = vpack.c.bf16 %v547_v60, %v547_v60 }
  0x34   : > { %v904_v7 = vshll.u32 %v2242_v32, 16  ;;  %v880_v8 = vshll.u32 %v2209_v20, 16  ;;  %v901_v10 = vrot.slane %v899_v57, 1  ;;  %v887_v12 = vshll.u32 %v2228_v25, 16  ;;  %v1921_v32 = vld [vmem:[%s2144_s17 + $0x18] sm:$0xff]   ;;  %s2040_s17 = smov 8  }
  0x35   : > { %v677_v5 = vpack.c.b16 %v659_v58, %v658_v55  ;;  %v660_v9 = vunpack.c.l.b16 %v562_v63  ;;  %v877_v11 = vrot.slane %v875_v2, 1  ;;  %v661_v16 = vunpack.c.l.b16 %v563_v6 }
  0x36   : > { %1007 = vrot.lane.b32.xlu0 %v987_v54, %s2039_s19  ;;  %v871_v17 = vsel %vm799_vm4, %v866_v62, %v870_v59  ;;  %v882_v20 = vrot.slane %v880_v8, 1  ;;  %v1893_v23 = vunpack.c.l.bf16 %v1920_v13  ;;  %v1894_v24 = vunpack.c.h.bf16 %v1920_v13 }
  0x37   : > { %v694_v14 = vshrl.u32 %v677_v5, 16  ;;  %v697_v15 = vshll.u32 %v677_v5, 16  ;;  %v878_v19 = vor.u32 %v877_v11, %v873_v1  ;;  %v678_v22 = vpack.c.b16 %v661_v16, %v660_v9  ;;  %v1916_v5 = vld [vmem:[%s442_s14] sm:$0xff]   ;;  %s2048_s14 = smov 80  }
  0x38   : > { %v2296_v27 = vor.u32 %v901_v10, %v897_v61  ;;  %v2298_v28 = vrot.slane %v904_v7, 1  ;;  %v885_v29 = vshrl.u32 %v2228_v25, 16  ;;  %v2301_v30 = vrot.slane %v887_v12, 1 }
  0x39   : > { %v696_v21 = vrot.slane %v694_v14, 7  ;;  %v701_v36 = vshrl.u32 %v678_v22, 16  ;;  %v704_v37 = vshll.u32 %v678_v22, 16  ;;  %v883_v40 = vsel %vm799_vm4, %v878_v19, %v882_v20 }
  0x3a   : > { %v516_v41 = vmul.f32 %v2149_v0, %v1893_v23  ;;  %v517_v44 = vmul.f32 %v2149_v0, %v1894_v24  ;;  %v1897_v45 = vunpack.c.l.bf16 %v1921_v32  ;;  %v1898_v49 = vunpack.c.h.bf16 %v1921_v32 }
  0x3b   : > { %v699_v33 = vor.u32 %v697_v15, %v696_v21  ;;  %v790_v35 = vsel %vm2192_vm3, %v696_v21, 0  ;;  %v703_v43 = vrot.slane %v701_v36, 7  ;;  %v892_v11 = vshll.u32 %v2205_v18, 16 }
  0x3c   : > { %v965_v38 = vrot.slane %v790_v35, 1  ;;  %v820_v39 = vshll.u32 %v790_v35, 16  ;;  %v532_v52 = vadd.f32 %v2157_v4, %v516_v41  ;;  %v533_v53 = vadd.f32 %v2157_v4, %v517_v44 }
  0x3d   : > { %v2317_v42 = vsel %vm2192_vm3, 0, %v699_v33  ;;  %v706_v50 = vor.u32 %v704_v37, %v703_v43  ;;  %v791_v51 = vsel %vm2192_vm3, %v703_v43, 0  ;;  %v518_v61 = vmul.f32 %v2149_v0, %v1897_v45 }
  0x3e   : > { %v964_v46 = vrot.slane %v2317_v42, 1  ;;  %v813_v47 = vshrl.u32 %v2317_v42, 16  ;;  %v815_v48 = vshll.u32 %v2317_v42, 16  ;;  %930 = vrot.lane.b32.xlu0 %v871_v17, %s2040_s17  ;;  %v822_v56 = vrot.slane %v820_v39, 1 }
  0x3f   : > { %v968_v57 = vrot.slane %v791_v51, 1  ;;  %v2337_v58 = vsel %vm2192_vm3, 0, %v706_v50  ;;  %v548_v59 = vmax.f32 %v532_v52, 0.0  ;;  %v549_v60 = vmax.f32 %v533_v53, 0.0 }
  0x40   : > { %v966_v54 = vsel %vm960_vm2, %v964_v46, %v965_v38  ;;  %v817_v55 = vrot.slane %v815_v48, 1  ;;  %v967_v63 = vrot.slane %v2337_v58, 1  ;;  %v827_v1 = vshll.u32 %v2337_v58, 16 }
  0x41   : > { %993 = vrot.lane.b32.xlu2 %v966_v54, %s2039_s19  ;;  %v832_v2 = vshll.u32 %v791_v51, 16  ;;  %v564_v6 = vpack.c.bf16 %v548_v59, %v548_v59  ;;  %v565_v7 = vpack.c.bf16 %v549_v60, %v549_v60  ;;  %v825_v8 = vshrl.u32 %v2337_v58, 16 }
  0x42   : > { %v818_v62 = vor.u32 %v817_v55, %v813_v47  ;;  %v519_v9 = vmul.f32 %v2149_v0, %v1898_v49  ;;  %v829_v12 = vrot.slane %v827_v1, 1  ;;  %v534_v13 = vadd.f32 %v2157_v4, %v518_v61 }
  0x43   : > { %v662_v14 = vunpack.c.l.b16 %v564_v6  ;;  %v663_v15 = vunpack.c.l.b16 %v565_v7  ;;  %v1917_v17 = vunpack.c.l.bf16 %v1916_v5  ;;  %v969_v19 = vsel %vm960_vm2, %v967_v63, %v968_v57 }
  0x44   : > { %v823_v10 = vsel %vm799_vm4, %v818_v62, %v822_v56  ;;  %v535_v16 = vadd.f32 %v2157_v4, %v519_v9  ;;  %v834_v20 = vrot.slane %v832_v2, 1  ;;  %v550_v21 = vmax.f32 %v534_v13, 0.0 }
  0x45   : > { %922 = vrot.lane.b32.xlu1 %v823_v10, %s2040_s17  ;;  %v1918_v22 = vunpack.c.h.bf16 %v1916_v5  ;;  %v679_v18 = vpack.c.b16 %v663_v15, %v662_v14  ;;  %v830_v23 = vor.u32 %v829_v12, %v825_v8  ;;  %v580_v32 = vmul.f32 %v2149_v0, %v1917_v17 }
  0x46   : > { %932 = vrot.lane.b32.xlu0 %v883_v40, %s2040_s17  ;;  %v551_v24 = vmax.f32 %v535_v16, 0.0  ;;  %v907_v33 = vsel %vm799_vm4, %v2296_v27, %v2298_v28  ;;  %v566_v35 = vpack.c.bf16 %v550_v21, %v550_v21  ;;  %v627_v37 = vstv %s626_s8  ;;  %s600_s8 = sshrl.u32 %s3134_s13, 16 }
  0x47   : > { %v581_v36 = vmul.f32 %v2149_v0, %v1918_v22  ;;  %v708_v38 = vshrl.u32 %v679_v18, 16  ;;  %v711_v39 = vshll.u32 %v679_v18, 16  ;;  %v582_v41 = vadd.f32 %v2157_v4, %v580_v32  ;;  %s601_s15 = sshll.u32 %s600_s8, 16 }
  0x48   : > { %v567_v40 = vpack.c.bf16 %v551_v24, %v551_v24  ;;  %v890_v43 = vor.u32 %v2301_v30, %v885_v29  ;;  %v894_v44 = vrot.slane %v892_v11, 1  ;;  %v664_v45 = vunpack.c.l.b16 %v566_v35  ;;  %s602_s20 = sor.u32 %s601_s15, %s600_s8 }
  0x49   : > { %995 = vrot.lane.b32.xlu2 %v969_v19, %s2039_s19  ;;  %v583_v46 = vadd.f32 %v2157_v4, %v581_v36  ;;  %v710_v27 = vrot.slane %v708_v38, 7  ;;  %v835_v28 = vsel %vm799_vm4, %v830_v23, %v834_v20  ;;  %v584_v48 = vmax.f32 %v582_v41, 0.0 }
  0x4a   : > { %v665_v47 = vunpack.c.l.b16 %v567_v40  ;;  %v631_v50 = vunpack.c.l.bf16 %v627_v37  ;;  %v895_v30 = vsel %vm799_vm4, %v890_v43, %v894_v44 }
  0x4b   : > { %v585_v49 = vmax.f32 %v583_v46, 0.0  ;;  %v713_v51 = vor.u32 %v711_v39, %v710_v27  ;;  %v792_v52 = vsel %vm2192_vm3, %v710_v27, 0  ;;  %v586_v29 = vpack.c.bf16 %v584_v48, %v584_v48 }
  0x4c   : > { %v680_v53 = vpack.c.b16 %v665_v47, %v664_v45  ;;  %v844_v54 = vshll.u32 %v792_v52, 16  ;;  %v971_v8 = vrot.slane %v792_v52, 1 }
  0x4d   : > { %936 = vrot.lane.b32.xlu1 %v907_v33, %s2040_s17  ;;  %v587_v55 = vpack.c.bf16 %v585_v49, %v585_v49  ;;  %v2374_v56 = vsel %vm2192_vm3, 0, %v713_v51  ;;  %v629_v60 = vunpack.c.l.bf16 %v586_v29  ;;  %v1880_v29 = vld [vmem:[%s414_s18] sm:$0xff]  }
  0x4e   : > { %924 = vrot.lane.b32.xlu0 %v835_v28, %s2040_s17  ;;  %v715_v57 = vshrl.u32 %v680_v53, 16  ;;  %v718_v59 = vshll.u32 %v680_v53, 16  ;;  %v837_v61 = vshrl.u32 %v2374_v56, 16  ;;  %v839_v62 = vshll.u32 %v2374_v56, 16 }
  0x4f   : > { %v630_v1 = vunpack.c.l.bf16 %v587_v55  ;;  %v632_v2 = vmul.f32 %v631_v50, %v629_v60  ;;  %v846_v6 = vrot.slane %v844_v54, 1  ;;  %v970_v7 = vrot.slane %v2374_v56, 1 }
  0x50   : > { %v717_v63 = vrot.slane %v715_v57, 7  ;;  %v841_v5 = vrot.slane %v839_v62, 1  ;;  %v1882_v54 = vunpack.c.h.bf16 %v1880_v29 }
  0x51   : > { %934 = vrot.lane.b32.xlu2 %v895_v30, %s2040_s17  ;;  %v633_v11 = vmul.f32 %v631_v50, %v630_v1  ;;  %v634_v12 = vpack.c.bf16 %v632_v2, %v632_v2  ;;  %v972_v18 = vsel %vm960_vm2, %v970_v7, %v971_v8  ;;  %v1881_v30 = vunpack.c.l.bf16 %v1880_v29 }
  0x52   : > { %v720_v9 = vor.u32 %v718_v59, %v717_v63  ;;  %v793_v10 = vsel %vm2192_vm3, %v717_v63, 0  ;;  %v842_v13 = vor.u32 %v841_v5, %v837_v61  ;;  %v472_v57 = vmul.f32 %v2149_v0, %v1882_v54 }
  0x53   : > { %v856_v14 = vshll.u32 %v793_v10, 16  ;;  %v974_v16 = vrot.slane %v793_v10, 1  ;;  %v635_v17 = vpack.c.bf16 %v633_v11, %v633_v11  ;;  %v674_v19 = vunpack.c.l.b16 %v634_v12 }
  0x54   : > { %v2387_v15 = vsel %vm2192_vm3, 0, %v720_v9  ;;  %v847_v20 = vsel %vm799_vm4, %v842_v13, %v846_v6  ;;  %v471_v55 = vmul.f32 %v2149_v0, %v1881_v30  ;;  %v475_v60 = vadd.f32 %v2157_v4, %v472_v57 }
  0x55   : > { %v849_v21 = vshrl.u32 %v2387_v15, 16  ;;  %v851_v22 = vshll.u32 %v2387_v15, 16  ;;  %926 = vrot.lane.b32.xlu1 %v847_v20, %s2040_s17  ;;  %v973_v23 = vrot.slane %v2387_v15, 1  ;;  %v675_v24 = vunpack.c.l.b16 %v635_v17 }
  0x56   : > { %v858_v33 = vrot.slane %v856_v14, 1  ;;  %v474_v59 = vadd.f32 %v2157_v4, %v471_v55  ;;  %v477_v62 = vmax.f32 %v475_v60, 0.0  ;;  %v603_v2 = vstv %s602_s20  ;;  %s2050_s20 = smov 88  }
  0x57   : > { %v853_v32 = vrot.slane %v851_v22, 1  ;;  %v975_v35 = vsel %vm960_vm2, %v973_v23, %v974_v16  ;;  %v685_v36 = vpack.c.b16 %v675_v24, %v674_v19  ;;  %v607_v7 = vunpack.c.l.bf16 %v603_v2  ;;  %v1136_v2 = vld [vmem:[%s3076_s4 + $0x20] sm:$0xf] }
  0x58   : > { %999 = vrot.lane.b32.xlu0 %v975_v35, %s2039_s19  ;;  %v476_v61 = vmax.f32 %v474_v59, 0.0  ;;  %v479_v1 = vpack.c.bf16 %v477_v62, %v477_v62 }
  0x59   : > { %997 = vrot.lane.b32.xlu2 %v972_v18, %s2039_s19  ;;  %v854_v37 = vor.u32 %v853_v32, %v849_v21  ;;  %v750_v38 = vshrl.u32 %v685_v36, 16  ;;  %v753_v39 = vshll.u32 %v685_v36, 16 }
  0x5a   : > { %v478_v63 = vpack.c.bf16 %v476_v61, %v476_v61  ;;  %v606_v6 = vunpack.c.l.bf16 %v479_v1 }
  0x5b   : > { %v859_v40 = vsel %vm799_vm4, %v854_v37, %v858_v33  ;;  %v752_v41 = vrot.slane %v750_v38, 7 }
  0x5c   : > { %v605_v5 = vunpack.c.l.bf16 %v478_v63  ;;  %v609_v9 = vmul.f32 %v607_v7, %v606_v6 }
  0x5d   : > { %928 = vrot.lane.b32.xlu1 %v859_v40, %s2040_s17  ;;  %v755_v43 = vor.u32 %v753_v39, %v752_v41  ;;  %v798_v44 = vsel %vm2192_vm3, %v752_v41, 0 }
  0x5e   : > { %v916_v45 = vshll.u32 %v798_v44, 16  ;;  %v989_v46 = vrot.slane %v798_v44, 1  ;;  %v608_v8 = vmul.f32 %v607_v7, %v605_v5  ;;  %v611_v11 = vpack.c.bf16 %v609_v9, %v609_v9  ;;  %v1876_v9 = vld [vmem:[%s3076_s4 + $0x8] sm:$0xff] }
  0x5f   : > { %v2407_v27 = vsel %vm2192_vm3, 0, %v755_v43  ;;  %v1154_v5 = vunpack.c.l.b16 %v1136_v2 }
  0x60   : > { %v909_v28 = vshrl.u32 %v2407_v27, 16  ;;  %v911_v47 = vshll.u32 %v2407_v27, 16  ;;  %v988_v48 = vrot.slane %v2407_v27, 1  ;;  %v918_v50 = vrot.slane %v916_v45, 1 }
  0x61   : > { %v610_v10 = vpack.c.bf16 %v608_v8, %v608_v8  ;;  %v657_v0 = vunpack.c.l.b16 %v611_v11  ;;  %v1159_v6 = vpack.c.b16 %v1154_v5, %v1154_v5  ;;  %v1877_v8 = vld [vmem:[%s3076_s4 + $0x10] sm:$0xff] }
  0x62   : > { %v913_v49 = vrot.slane %v911_v47, 1  ;;  %v990_v51 = vsel %vm960_vm2, %v988_v48, %v989_v46 }
  0x63   : > { %1009 = vrot.lane.b32.xlu2 %v990_v51, %s2039_s19  ;;  %v656_v12 = vunpack.c.l.b16 %v610_v10  ;;  %v1183_v7 = vsel %vm1181_vm7, %v1159_v6, 0  ;;  %v1875_v10 = vld [vmem:[%s3076_s4] sm:$0xff]  ;;  %vm1618_vm7 = vcmask 523264  }
  0x64   : > { %v914_v52 = vor.u32 %v913_v49, %v909_v28  ;;  %1927 = vmatpush.bf16.msra.mxu2 %v1183_v7  ;;  %1188 = vmatpush.bf16.msra.mxu0 %v1183_v7 }
  0x65   : > { %v676_v13 = vpack.c.b16 %v657_v0, %v656_v12  ;;  %1928 = vmatpush.bf16.msra.mxu3 %v1183_v7  ;;  %1926 = vmatpush.bf16.msra.mxu1 %v1183_v7 }
  0x66   : > { %v919_v53 = vsel %vm799_vm4, %v914_v52, %v918_v50 }
  0x67   : > { %938 = vrot.lane.b32.xlu1 %v919_v53, %s2040_s17  ;;  %v687_v14 = vshrl.u32 %v676_v13, 16  ;;  %v690_v16 = vshll.u32 %v676_v13, 16 }
  0x69   : > { %v689_v17 = vrot.slane %v687_v14, 7 }
  0x6b   : > { %v692_v4 = vor.u32 %v690_v16, %v689_v17  ;;  %v789_v19 = vsel %vm2192_vm3, %v689_v17, 0 }
  0x6c   : > { %v962_v20 = vrot.slane %v789_v19, 1  ;;  %v808_v36 = vshll.u32 %v789_v19, 16 }
  0x6d   : > { %v2431_v21 = vsel %vm2192_vm3, 0, %v692_v4  ;;  %vm1613_vm3 = vcmask 326656  }
  0x6e   : > { %v961_v22 = vrot.slane %v2431_v21, 1  ;;  %v803_v32 = vshll.u32 %v2431_v21, 16  ;;  %v801_v33 = vshrl.u32 %v2431_v21, 16  ;;  %v810_v39 = vrot.slane %v808_v36, 1 }
  0x70   : > { %v963_v18 = vsel %vm960_vm2, %v961_v22, %v962_v20  ;;  %v805_v35 = vrot.slane %v803_v32, 1  ;;  %vm1342_vm2 = vcmask 1047559  }
  0x71   : > { %991 = vrot.lane.b32.xlu2 %v963_v18, %s2039_s19 }
  0x72   : > { %v806_v38 = vor.u32 %v805_v35, %v801_v33 }
  0x74   : > { %v811_v40 = vsel %vm799_vm4, %v806_v38, %v810_v39  ;;  %vm1616_vm4 = vcmask 457728  }
  0x75   : > { %920 = vrot.lane.b32.xlu0 %v811_v40, %s2040_s17 }
  0x88   : > { %v1004_v23 = vpop.permute.xlu2 %1003 }
  0x9b   : > { %v994_v24 = vpop.permute.xlu2 %993 }
  0xa0   : > { %v1006_v37 = vpop.permute.xlu0 %1005 }
  0xa1   : > { %v1002_v45 = vpop.permute.xlu1 %1001 }
  0xa3   : > { %v996_v3 = vpop.permute.xlu2 %995 }
  0xa8   : > { %v1008_v41 = vpop.permute.xlu0 %1007 }
  0xab   : > { %v935_v43 = vpop.permute.xlu2 %934 }
  0xac   : > { %v1027_v44 = vsel %vm1011_vm5, %v2228_v25, %v935_v43 }
  0xad   : > { %v2443_v46 = vsel %vm1032_vm6, %v1027_v44, %v1006_v37 }
  0xae   : > { %1073 = vrot.lane.b32.xlu2 %v2443_v46, %s2041_s21 }
  0xb0   : > { %v931_v28 = vpop.permute.xlu0 %930 }
  0xb1   : > { %v1023_v47 = vsel %vm1011_vm5, %v2238_v31, %v931_v28 }
  0xb2   : > { %v2450_v48 = vsel %vm1032_vm6, %v1023_v47, %v1002_v45 }
  0xb3   : > { %1069 = vrot.lane.b32.xlu1 %v2450_v48, %s2041_s21  ;;  %v998_v55 = vpop.permute.xlu2 %997 }
  0xb7   : > { %v923_v49 = vpop.permute.xlu1 %922 }
  0xb8   : > { %v1015_v25 = vsel %vm1011_vm5, %v2317_v42, %v923_v49  ;;  %v933_v50 = vpop.permute.xlu0 %932 }
  0xb9   : > { %v1025_v51 = vsel %vm1011_vm5, %v2232_v26, %v933_v50  ;;  %v2459_v52 = vsel %vm1032_vm6, %v1015_v25, %v994_v24 }
  0xba   : > { %v2462_v53 = vsel %vm1032_vm6, %v1025_v51, %v1004_v23 }
  0xbb   : > { %1061 = vrot.lane.b32.xlu1 %v2459_v52, %s2041_s21  ;;  %1086 = vrot.lane.b32.xlu0 %v2462_v53, %s2042_s22 }
  0xbd   : > { %v1010_v63 = vpop.permute.xlu2 %1009 }
  0xbf   : > { %v937_v31 = vpop.permute.xlu1 %936 }
  0xc0   : > { %v1029_v42 = vsel %vm1011_vm5, %v2247_v34, %v937_v31  ;;  %v925_v29 = vpop.permute.xlu0 %924 }
  0xc1   : > { %v1017_v26 = vsel %vm1011_vm5, %v2337_v58, %v925_v29  ;;  %v1050_v30 = vsel %vm1032_vm6, %v1029_v42, %v1008_v41  ;;  %v2559_v42 = vld [vmem:[%s3077_s5] ss:$0 sm:$0xff] }
  0xc2   : > { %v2474_v54 = vsel %vm1032_vm6, %v1017_v26, %v996_v3 }
  0xc3   : > { %1090 = vrot.lane.b32.xlu1 %v1050_v30, %s2042_s22  ;;  %1078 = vrot.lane.b32.xlu0 %v2474_v54, %s2042_s22 }
  0xc7   : > { %v927_v57 = vpop.permute.xlu1 %926 }
  0xc8   : > { %v1019_v59 = vsel %vm1011_vm5, %v2374_v56, %v927_v57 }
  0xc9   : > { %v2482_v34 = vsel %vm1032_vm6, %v1019_v59, %v998_v55 }
  0xca   : > { %1065 = vrot.lane.b32.xlu2 %v2482_v34, %s2041_s21  ;;  %v1000_v58 = vpop.permute.xlu0 %999 }
  0xcb   : > { %1071 = vrot.lane.b32.xlu1 %v2462_v53, %s2041_s21  ;;  %v992_v11 = vpop.permute.xlu2 %991 }
  0xcf   : > { %v929_v60 = vpop.permute.xlu1 %928 }
  0xd0   : > { %v1021_v61 = vsel %vm1011_vm5, %v2387_v15, %v929_v60 }
  0xd1   : > { %v1042_v62 = vsel %vm1032_vm6, %v1021_v61, %v1000_v58 }
  0xd2   : > { %1088 = vrot.lane.b32.xlu2 %v2443_v46, %s2042_s22  ;;  %1082 = vrot.lane.b32.xlu0 %v1042_v62, %s2042_s22 }
  0xd3   : > { %1075 = vrot.lane.b32.xlu1 %v1050_v30, %s2041_s21 }
  0xd9   : > { %v939_v56 = vpop.permute.xlu1 %938 }
  0xda   : > { %1080 = vrot.lane.b32.xlu2 %v2482_v34, %s2042_s22  ;;  %1063 = vrot.lane.b32.xlu0 %v2474_v54, %s2041_s21  ;;  %v1031_v15 = vsel %vm1011_vm5, %v2407_v27, %v939_v56  ;;  %v1878_v27 = vld [vmem:[%s3076_s4 + $0x18] sm:$0xff] }
  0xdb   : > { %1067 = vrot.lane.b32.xlu1 %v1042_v62, %s2041_s21  ;;  %v1052_v1 = vsel %vm1032_vm6, %v1031_v15, %v1010_v63  ;;  %1930 = vmatpush.bf16.msra.mxu2 %v1878_v27 }
  0xdc   : > { %1189 = vmatpush.bf16.msra.mxu0 %v1878_v27  ;;  %1931 = vmatpush.bf16.msra.mxu3 %v1878_v27 }
  0xdd   : > { %1929 = vmatpush.bf16.msra.mxu1 %v1878_v27 }
  0xdf   : > { %1933 = vmatpush.bf16.msra.mxu2 %v1877_v8 }
  0xe0   : > { %1190 = vmatpush.bf16.msra.mxu0 %v1877_v8  ;;  %1934 = vmatpush.bf16.msra.mxu3 %v1877_v8 }
  0xe1   : > { %1932 = vmatpush.bf16.msra.mxu1 %v1877_v8 }
  0xe2   : > { %1084 = vrot.lane.b32.xlu2 %v2450_v48, %s2042_s22  ;;  %1092 = vrot.lane.b32.xlu0 %v1052_v1, %s2042_s22 }
  0xe3   : > { %1936 = vmatpush.bf16.msra.mxu2 %v1876_v9 }
  0xe4   : > { %1191 = vmatpush.bf16.msra.mxu0 %v1876_v9  ;;  %1937 = vmatpush.bf16.msra.mxu3 %v1876_v9 }
  0xe5   : > { %1935 = vmatpush.bf16.msra.mxu1 %v1876_v9 }
  0xe7   : > { %1939 = vmatpush.bf16.msra.mxu2 %v1875_v10  ;;  %v921_v12 = vpop.permute.xlu0 %920 }
  0xe8   : > { %1192 = vmatpush.bf16.msra.mxu0 %v1875_v10  ;;  %1940 = vmatpush.bf16.msra.mxu3 %v1875_v10  ;;  %v1013_v19 = vsel %vm1011_vm5, %v2431_v21, %v921_v12 }
  0xe9   : > { %1938 = vmatpush.bf16.msra.mxu1 %v1875_v10  ;;  %v1034_v22 = vsel %vm1032_vm6, %v1013_v19, %v992_v11 }
 0x108   : > { %v1074_v13 = vpop.permute.xlu2 %1073 }
 0x109   : > { %v1108_v18 = vsel %vm1094_vm9, %v2462_v53, %v1074_v13 }
 0x124   : > { %v1066_v20 = vpop.permute.xlu2 %1065 }
 0x125   : > { %v1070_v0 = vpop.permute.xlu1 %1069  ;;  %v1100_v3 = vsel %vm1094_vm9, %v2474_v54, %v1066_v20 }
 0x126   : > { %v1104_v14 = vsel %vm1094_vm9, %v1042_v62, %v1070_v0 }
 0x12c   : > { %v1089_v21 = vpop.permute.xlu2 %1088 }
 0x12d   : > { %v1062_v16 = vpop.permute.xlu1 %1061  ;;  %v1087_v17 = vpop.permute.xlu0 %1086 }
 0x12e   : > { %v1121_v4 = vsel %vm1111_vm8, %v1104_v14, %v1087_v17  ;;  %v1096_v23 = vsel %vm1094_vm9, %v1034_v22, %v1062_v16 }
 0x12f   : > { %1861 = vmatmul.msk.bf16.vlgmr.msra.gmra.mxu2 %vm1164_vm10, %v1121_v4 }
 0x134   : > { %v1081_v43 = vpop.permute.xlu2 %1080 }
 0x135   : > { %v1091_v24 = vpop.permute.xlu1 %1090  ;;  %v1079_v32 = vpop.permute.xlu0 %1078 }
 0x136   : > { %v1113_v33 = vsel %vm1111_vm8, %v1096_v23, %v1079_v32  ;;  %v1125_v35 = vsel %vm1111_vm8, %v1108_v18, %v1091_v24 }
 0x137   : > { %1857 = vmatmul.msk.bf16.vlgmr.msra.gmra.mxu0 %vm1164_vm10, %v1113_v33  ;;  %1863 = vmatmul.msk.bf16.vlgmr.msra.gmra.mxu3 %vm1164_vm10, %v1125_v35 }
 0x13c   : > { %v1085_v49 = vpop.permute.xlu2 %1084 }
 0x13d   : > { %v1072_v36 = vpop.permute.xlu1 %1071 }
 0x13e   : > { %v1106_v37 = vsel %vm1094_vm9, %v2450_v48, %v1072_v36 }
 0x13f   : > { %v1123_v38 = vsel %vm1111_vm8, %v1106_v37, %v1089_v21 }
 0x140   : > { %1862 = vmatmul.msk.bf16.gmra.mxu2 %vm1164_vm10, %v1123_v38 }
 0x144   : > { %v1083_v40 = vpop.permute.xlu0 %1082 }
 0x145   : > { %v1076_v39 = vpop.permute.xlu1 %1075  ;;  %v1117_v41 = vsel %vm1111_vm8, %v1100_v3, %v1083_v40 }
 0x146   : > { %1859 = vmatmul.msk.bf16.vlgmr.msra.gmra.mxu1 %vm1164_vm10, %v1117_v41  ;;  %v1110_v50 = vsel %vm1094_vm9, %v2443_v46, %v1076_v39 }
 0x14c   : > { %v1064_v44 = vpop.permute.xlu0 %1063 }
 0x14d   : > { %v1098_v45 = vsel %vm1094_vm9, %v2459_v52, %v1064_v44  ;;  %v1068_v28 = vpop.permute.xlu1 %1067 }
 0x14e   : > { %v1115_v47 = vsel %vm1111_vm8, %v1098_v45, %v1081_v43  ;;  %v1102_v48 = vsel %vm1094_vm9, %v2482_v34, %v1068_v28 }
 0x14f   : > { %1858 = vmatmul.msk.bf16.gmra.mxu0 %vm1164_vm10, %v1115_v47  ;;  %v1119_v25 = vsel %vm1111_vm8, %v1102_v48, %v1085_v49 }
 0x154   : > { %v1093_v51 = vpop.permute.xlu0 %1092 }
 0x155   : > { %v1127_v53 = vsel %vm1111_vm8, %v1110_v50, %v1093_v51 }
 0x156   : > { %1864 = vmatmul.msk.bf16.gmra.mxu3 %vm1164_vm10, %v1127_v53  ;;  %1860 = vmatmul.msk.bf16.gmra.mxu1 %vm1164_vm10, %v1119_v25 }
 0x1b2   : > { %v2554_v52 = vpop.f32.mrf.mxu2 }
 0x1b3   : > { %v2563_v29 = vadd.f32 %v2559_v42, %v2554_v52  ;;  %v2574_v54 = vmul.f32 %v2554_v52, %v2554_v52 }
 0x1b4   : > { %v1194_v31 = vpop.f32.mrf.mxu0 }
 0x1b5   : > { %v2570_v30 = vadd.f32 %v2559_v42, %v1194_v31  ;;  %v1255_v55 = vmul.f32 %v1194_v31, %v1194_v31  ;;  %v1420_v59 = vrot.slane %v2563_v29, 1  ;;  %v1385_v34 = vrot.slane %v2563_v29, 7 }
 0x1b6   : > { %v1351_v60 = vrot.slane %v2563_v29, 5  ;;  %v1437_v61 = vrot.slane %v2563_v29, 2 }
 0x1b7   : > { %v1413_v56 = vrot.slane %v2570_v30, 5  ;;  %v1379_v15 = vrot.slane %v2570_v30, 3  ;;  %v1345_v63 = vrot.slane %v2570_v30, 1  ;;  %v1430_v6 = vrot.slane %v2570_v30, 6 }
 0x1b8   : > { %v1362_v7 = vrot.slane %v2570_v30, 2  ;;  %v1396_v10 = vrot.slane %v2570_v30, 4  ;;  %v1447_v11 = vrot.slane %v2570_v30, 7 }
 0x1ba   : > { %v2565_v46 = vpop.f32.mrf.mxu2  ;;  %v2567_v26 = vpop.f32.mrf.mxu3 }
 0x1bb   : > { %v2580_v58 = vadd.f32 %v2559_v42, %v2567_v26  ;;  %v2596_v27 = vmul.f32 %v2565_v46, %v2565_v46  ;;  %v2600_v8 = vadd.f32 %v2559_v42, %v2565_v46  ;;  %v2608_v12 = vmul.f32 %v2567_v26, %v2567_v26 }
 0x1bc   : > { %v1196_v57 = vpop.f32.mrf.mxu0 }
 0x1bd   : > { %v1256_v2 = vmul.f32 %v1196_v57, %v1196_v57  ;;  %v2590_v5 = vadd.f32 %v2559_v42, %v1196_v57  ;;  %v1234_v0 = vadd.f32 %v1196_v57, %v1194_v31  ;;  %v1423_v14 = vrot.slane %v2580_v58, 7 }
 0x1be   : > { %v1389_v16 = vrot.slane %v2580_v58, 5  ;;  %v1355_v4 = vrot.slane %v2580_v58, 3 }
 0x1bf   : > { %v1271_v22 = vadd.f32 %v1256_v2, %v1255_v55 }
 0x1c2   : > { %v2602_v9 = vpop.f32.mrf.mxu3 }
 0x1c3   : > { %v2610_v13 = vpop.f32.mrf.mxu2  ;;  %v2616_v17 = vadd.f32 %v2559_v42, %v2602_v9  ;;  %v2621_v18 = vpop.f32.mrf.mxu1  ;;  %v2642_v40 = vmul.f32 %v2602_v9, %v2602_v9 }
 0x1c4   : > { %v2625_v23 = vadd.f32 %v2559_v42, %v2610_v13  ;;  %v2635_v37 = vadd.f32 %v2559_v42, %v2621_v18  ;;  %v2646_v41 = vmul.f32 %v2610_v13, %v2610_v13  ;;  %v2652_v45 = vmul.f32 %v2621_v18, %v2621_v18 }
 0x1c6   : > { %v1387_v28 = vrot.slane %v2625_v23, 6  ;;  %v1353_v49 = vrot.slane %v2625_v23, 4  ;;  %v1439_v25 = vrot.slane %v2625_v23, 1  ;;  %v1416_v31 = vrot.slane %v2635_v37, 3 }
 0x1c7   : > { %v1382_v55 = vrot.slane %v2635_v37, 1  ;;  %v1347_v57 = vrot.slane %v2635_v37, 7  ;;  %v1433_v2 = vrot.slane %v2635_v37, 4  ;;  %v1399_v44 = vrot.slane %v2635_v37, 2 }
 0x1c8   : > { %v1450_v39 = vrot.slane %v2635_v37, 5 }
 0x1cb   : > { %v2661_v53 = vpop.f32.mrf.mxu2  ;;  %v2674_v38 = vpop.f32.mrf.mxu1 }
 0x1cc   : > { %v2669_v3 = vadd.f32 %v2559_v42, %v2661_v53  ;;  %v2678_v47 = vmul.f32 %v2661_v53, %v2661_v53  ;;  %v2685_v43 = vmul.f32 %v2674_v38, %v2674_v38  ;;  %v2689_v24 = vadd.f32 %v2559_v42, %v2674_v38  ;;  %v1199_v33 = vpop.f32.mrf.mxu0 }
 0x1cd   : > { %v1235_v20 = vadd.f32 %v1234_v0, %v1199_v33  ;;  %v1257_v21 = vmul.f32 %v1199_v33, %v1199_v33  ;;  %v2694_v35 = vadd.f32 %v2559_v42, %v1199_v33 }
 0x1cf   : > { %v1272_v48 = vadd.f32 %v1271_v22, %v1257_v21  ;;  %v1414_v1 = vrot.slane %v2694_v35, 4  ;;  %v1380_v0 = vrot.slane %v2694_v35, 2  ;;  %v1346_v33 = vsel %vm1324_vm11, %v2694_v35, %v1345_v63 }
 0x1d0   : > { %v1348_v36 = vsel %vm1327_vm12, %v1347_v57, %v1346_v33  ;;  %v1431_v51 = vrot.slane %v2694_v35, 5  ;;  %v1363_v32 = vrot.slane %v2694_v35, 1  ;;  %v1397_v19 = vrot.slane %v2694_v35, 3 }
 0x1d1   : > { %v1415_v22 = vsel %vm1324_vm11, %v1414_v1, %v1413_v56  ;;  %v1381_v21 = vsel %vm1324_vm11, %v1380_v0, %v1379_v15  ;;  %v1448_v50 = vrot.slane %v2694_v35, 6 }
 0x1d2   : > { %v1417_v57 = vsel %vm1327_vm12, %v1416_v31, %v1415_v22  ;;  %v1383_v33 = vsel %vm1327_vm12, %v1382_v55, %v1381_v21  ;;  %v1432_v62 = vsel %vm1324_vm11, %v1431_v51, %v1430_v6  ;;  %v1364_v56 = vsel %vm1324_vm11, %v1363_v32, %v1362_v7 }
 0x1d3   : > { %v1209_v1 = vpop.f32.mrf.mxu1  ;;  %v1434_v15 = vsel %vm1327_vm12, %v1433_v2, %v1432_v62  ;;  %v1365_v0 = vsel %vm1327_vm12, %v2635_v37, %v1364_v56  ;;  %v1398_v31 = vsel %vm1324_vm11, %v1397_v19, %v1396_v10  ;;  %v1449_v55 = vsel %vm1324_vm11, %v1448_v50, %v1447_v11 }
 0x1d4   : > { %v1201_v6 = vpop.f32.mrf.mxu0  ;;  %v1261_v51 = vmul.f32 %v1209_v1, %v1209_v1  ;;  %v2737_v22 = vadd.f32 %v2559_v42, %v1209_v1  ;;  %v2740_v7 = vsel %vm1327_vm12, %v1399_v44, %v1398_v31  ;;  %v2743_v62 = vsel %vm1327_vm12, %v1450_v39, %v1449_v55 }
 0x1d5   : > { %v1236_v32 = vadd.f32 %v1235_v20, %v1201_v6  ;;  %v1258_v2 = vmul.f32 %v1201_v6, %v1201_v6  ;;  %v2746_v21 = vadd.f32 %v2559_v42, %v1201_v6 }
 0x1d6   : > { %v1418_v11 = vrot.slane %v2737_v22, 2  ;;  %v1384_v19 = vsel %vm1330_vm13, %v2737_v22, %v1383_v33  ;;  %v1349_v50 = vrot.slane %v2737_v22, 6  ;;  %v1435_v44 = vrot.slane %v2737_v22, 3 }
 0x1d7   : > { %v1237_v56 = vadd.f32 %v1236_v32, %v2621_v18  ;;  %v1273_v39 = vadd.f32 %v1272_v48, %v1258_v2  ;;  %v1386_v20 = vsel %vm1333_vm14, %v1385_v34, %v1384_v19  ;;  %v1366_v31 = vrot.slane %v2737_v22, 7 }
 0x1d8   : > { %v1419_v55 = vsel %vm1330_vm13, %v1418_v11, %v1417_v57  ;;  %v1388_v6 = vsel %vm1336_vm15, %v1387_v28, %v1386_v20  ;;  %v1350_v33 = vsel %vm1330_vm13, %v1349_v50, %v1348_v36  ;;  %v1436_v10 = vsel %vm1330_vm13, %v1435_v44, %v1434_v15 }
 0x1d9   : > { %v1274_v63 = vadd.f32 %v1273_v39, %v2652_v45  ;;  %v1238_v18 = vadd.f32 %v1237_v56, %v2674_v38  ;;  %v2767_v48 = vpop.f32.mrf.mxu3  ;;  %v1421_v34 = vsel %vm1333_vm14, %v1420_v59, %v1419_v55  ;;  %v1390_v57 = vsel %vm1339_vm1, %v1389_v16, %v1388_v6 }
 0x1da   : > { %v2777_v28 = vmul.f32 %v2767_v48, %v2767_v48  ;;  %v2781_v36 = vadd.f32 %v2559_v42, %v2767_v48  ;;  %v1422_v38 = vsel %vm1336_vm15, %v2625_v23, %v1421_v34  ;;  %v1352_v45 = vsel %vm1333_vm14, %v1351_v60, %v1350_v33 }
 0x1db   : > { %v1239_v59 = vadd.f32 %v1238_v18, %v1209_v1  ;;  %v1275_v15 = vadd.f32 %v1274_v63, %v2685_v43  ;;  %v1211_v32 = vpop.f32.mrf.mxu1  ;;  %v1424_v16 = vsel %vm1339_vm1, %v1423_v14, %v1422_v38  ;;  %v1354_v2 = vsel %vm1336_vm15, %v1353_v49, %v1352_v45 }
 0x1dc   : > { %v1262_v11 = vmul.f32 %v1211_v32, %v1211_v32  ;;  %v2796_v19 = vadd.f32 %v2559_v42, %v1211_v32  ;;  %v1425_v50 = vrot.slane %v2781_v36, 6  ;;  %v1391_v60 = vrot.slane %v2781_v36, 4 }
 0x1dd   : > { %v1276_v1 = vadd.f32 %v1275_v15, %v1261_v51  ;;  %v1240_v44 = vadd.f32 %v1239_v59, %v1211_v32  ;;  %v1356_v43 = vsel %vm1339_vm1, %v1355_v4, %v1354_v2  ;;  %v1357_v14 = vrot.slane %v2781_v36, 2 }
 0x1de   : > { %v1426_v63 = vsel %vm1342_vm2, %v1425_v50, %v1424_v16  ;;  %v1392_v49 = vsel %vm1342_vm2, %v1391_v60, %v1390_v57  ;;  %v1438_v56 = vsel %vm1333_vm14, %v1437_v61, %v1436_v10  ;;  %v1442_v39 = vrot.slane %v2781_v36, 7 }
 0x1df   : > { %v1241_v20 = vadd.f32 %v1240_v44, %v2554_v52  ;;  %v1277_v51 = vadd.f32 %v1276_v1, %v1262_v11  ;;  %1427 = vrot.lane.b32.xlu1 %v1426_v63, %s2043_s10  ;;  %1393 = vrot.lane.b32.xlu2 %v1392_v49, %s2041_s21  ;;  %v1358_v4 = vsel %vm1342_vm2, %v1357_v14, %v1356_v43  ;;  %v1374_v55 = vrot.slane %v2781_v36, 3  ;;  %s458_s21 = scalar_select %p457_p8, %s2021_s24, 1 }
 0x1e0   : > { %1359 = vrot.lane.b32.xlu0 %v1358_v4, %s2040_s17  ;;  %v1440_v6 = vsel %vm1336_vm15, %v1439_v25, %v1438_v56  ;;  %v1367_v61 = vsel %vm1330_vm13, %v1366_v31, %v1365_v0  ;;  %v1401_v10 = vrot.slane %v2737_v22, 1  ;;  %v1408_v52 = vrot.slane %v2781_v36, 5  ;;  %s2044_s17 = smov 32   ;;  %s2052_s10 = smov 120  }
 0x1e1   : > { %v1242_v33 = vadd.f32 %v1241_v20, %v2565_v46  ;;  %v1278_v18 = vadd.f32 %v1277_v51, %v2574_v54  ;;  %v1231_v34 = vpop.f32.mrf.mxu3  ;;  %v1441_v57 = vsel %vm1339_vm1, %v2580_v58, %v1440_v6  ;;  %v3083_v38 = vrot.slane %v2563_v29, 6  ;;  %s2951_s9 = sadd.s32 %s1839_s11, %s458_s21 }
 0x1e2   : > { %v1270_v59 = vmul.f32 %v1231_v34, %v1231_v34  ;;  %v2829_v25 = vadd.f32 %v2559_v42, %v1231_v34  ;;  %v1443_v0 = vsel %vm1342_vm2, %v1442_v39, %v1441_v57  ;;  %v3084_v31 = vrot.slane %v2625_v23, 5  ;;  %s1840_s13 = sshll.u32 %s2951_s9, 1 }
 0x1e3   : > { %v1369_v45 = vsel %vm1333_vm14, %v3083_v38, %v1367_v61  ;;  %v1243_v54 = vadd.f32 %v1242_v33, %v2610_v13  ;;  %v1279_v15 = vadd.f32 %v1278_v18, %v2596_v27  ;;  %v3085_v32 = vrot.slane %v2580_v58, 4  ;;  %s462_s15 = scalar_lea.vmem %s3079_s7, %s1840_s13 }
 0x1e4   : > { %v1371_v46 = vsel %vm1336_vm15, %v3084_v31, %v1369_v45  ;;  %v1402_v2 = vsel %vm1330_vm13, %v1401_v10, %v2740_v7  ;;  %v1452_v50 = vrot.slane %v2737_v22, 4  ;;  %v3086_v60 = vrot.slane %v2590_v5, 1 }
 0x1e5   : > { %v1373_v16 = vsel %vm1339_vm1, %v3085_v32, %v1371_v46  ;;  %v1403_v11 = vsel %vm1333_vm14, %v2563_v29, %v1402_v2  ;;  %v1280_v27 = vadd.f32 %v1279_v15, %v2646_v41  ;;  %v1244_v1 = vadd.f32 %v1243_v54, %v2661_v53 }
 0x1e6   : > { %v1375_v42 = vsel %vm1342_vm2, %v1374_v55, %v1373_v16  ;;  %v1490_v13 = vsel %vm1324_vm11, %v2746_v21, %v3086_v60  ;;  %v3087_v44 = vrot.slane %v2625_v23, 7  ;;  %v3088_v43 = vrot.slane %v2689_v24, 7 }
 0x1e7   : > { %v3089_v63 = vrot.slane %v2580_v58, 6  ;;  %v1453_v56 = vsel %vm1330_vm13, %v1452_v50, %v2743_v62  ;;  %v1493_v39 = vrot.slane %v2796_v19, 6  ;;  %v1501_v41 = vrot.slane %v2829_v25, 2  ;;  %1444 = vrot.lane.b32.xlu2 %v1443_v0, %s2042_s22  ;;  %1376 = vrot.lane.b32.xlu1 %v1375_v42, %s2039_s19  ;;  %s2045_s19 = smov 72   ;;  %s2046_s22 = smov 56  }
 0x1e8   : > { %v1405_v7 = vsel %vm1336_vm15, %v3087_v44, %v1403_v11  ;;  %v1492_v14 = vsel %vm1327_vm12, %v3088_v43, %v1490_v13  ;;  %v1245_v53 = vadd.f32 %v1244_v1, %v2567_v26  ;;  %v1281_v20 = vadd.f32 %v1280_v27, %v2678_v47 }
 0x1e9   : > { %v1407_v49 = vsel %vm1339_vm1, %v3089_v63, %v1405_v7  ;;  %v1472_v4 = vrot.slane %v2746_v21, 7  ;;  %v3090_v62 = vrot.slane %v2563_v29, 3  ;;  %v1494_v6 = vsel %vm1330_vm13, %v1493_v39, %v1492_v14 }
 0x1ea   : > { %v1409_v51 = vsel %vm1342_vm2, %v1408_v52, %v1407_v49  ;;  %v1476_v26 = vrot.slane %v2796_v19, 5  ;;  %v1484_v47 = vrot.slane %v2829_v25, 1  ;;  %v1246_v61 = vadd.f32 %v1245_v53, %v2602_v9 }
 0x1eb   : > { %1410 = vrot.lane.b32.xlu0 %v1409_v51, %s2044_s17  ;;  %v1455_v55 = vsel %vm1333_vm14, %v3090_v62, %v1453_v56  ;;  %v1282_v10 = vadd.f32 %v1281_v20, %v2608_v12  ;;  %v3091_v52 = vrot.slane %v2625_v23, 2  ;;  %v3092_v18 = vrot.slane %v2600_v8, 5  ;;  %s2053_s17 = smov 112  }
 0x1ec   : > { %v3093_v38 = vrot.slane %v2580_v58, 1  ;;  %v3094_v0 = vrot.slane %v2669_v3, 4  ;;  %v1473_v9 = vsel %vm1324_vm11, %v1472_v4, %v2590_v5  ;;  %v1507_v12 = vrot.slane %v2746_v21, 1 }
 0x1ed   : > { %v1457_v33 = vsel %vm1336_vm15, %v3091_v52, %v1455_v55  ;;  %v1496_v57 = vsel %vm1333_vm14, %v3092_v18, %v1494_v6  ;;  %v1247_v46 = vadd.f32 %v1246_v61, %v2767_v48  ;;  %v1283_v54 = vadd.f32 %v1282_v10, %v2642_v40 }
 0x1ee   : > { %v1459_v45 = vsel %vm1339_vm1, %v3093_v38, %v1457_v33  ;;  %v1498_v31 = vsel %vm1336_vm15, %v3094_v0, %v1496_v57  ;;  %v3095_v32 = vrot.slane %v2616_v17, 3  ;;  %v3096_v42 = vrot.slane %v2689_v24, 6 }
 0x1ef   : > { %v1460_v15 = vsel %vm1342_vm2, %v2781_v36, %v1459_v45  ;;  %v3097_v50 = vrot.slane %v2590_v5, 2  ;;  %v1510_v40 = vrot.slane %v2796_v19, 7  ;;  %v1248_v48 = vadd.f32 %v1247_v46, %v1231_v34 }
 0x1f0   : > { %v1500_v16 = vsel %vm1339_vm1, %v3095_v32, %v1498_v31  ;;  %v1475_v11 = vsel %vm1327_vm12, %v3096_v42, %v1473_v9  ;;  %v1284_v13 = vadd.f32 %v1283_v54, %v2777_v28  ;;  %v3098_v44 = vrot.slane %v2600_v8, 4 }
 0x1f1   : > { %v1502_v2 = vsel %vm1342_vm2, %v1501_v41, %v1500_v16  ;;  %v1508_v60 = vsel %vm1324_vm11, %v1507_v12, %v3097_v50  ;;  %v1477_v27 = vsel %vm1330_vm13, %v1476_v26, %v1475_v11  ;;  %v1518_v14 = vrot.slane %v2829_v25, 3 }
 0x1f2   : > { %v1509_v1 = vsel %vm1327_vm12, %v2689_v24, %v1508_v60  ;;  %v1479_v7 = vsel %vm1333_vm14, %v3098_v44, %v1477_v27  ;;  %v1541_v63 = vrot.slane %v2746_v21, 3  ;;  %v1249_v49 = vrot.slane %v1248_v48, 4  ;;  %1503 = vrot.lane.b32.xlu2 %v1502_v2, %s2045_s19  ;;  %s1837_s19 = sshll.u32 %s2025_s25, 1 }
 0x1f3   : > { %v1511_v43 = vsel %vm1330_vm13, %v1510_v40, %v1509_v1  ;;  %v1285_v34 = vadd.f32 %v1284_v13, %v1270_v59  ;;  %v3099_v28 = vrot.slane %v2669_v3, 3  ;;  %v3100_v39 = vrot.slane %v2600_v8, 6  ;;  %1461 = vrot.lane.b32.xlu0 %v1460_v15, %s2046_s22  ;;  %s448_s21 = sadd.s32 %s2021_s24, %s1837_s19 }
 0x1f4   : > { %v3101_v53 = vrot.slane %v2616_v17, 2  ;;  %v3102_v59 = vrot.slane %v2669_v3, 5  ;;  %v3103_v4 = vrot.slane %v2590_v5, 4  ;;  %v1545_v55 = vrot.slane %v2796_v19, 1  ;;  %p449_p0 = scmp.lt.s32.totalorder %s448_s21, 3 }
 0x1f5   : > { %v1481_v56 = vsel %vm1336_vm15, %v3099_v28, %v1479_v7  ;;  %v1513_v41 = vsel %vm1333_vm14, %v3100_v39, %v1511_v43  ;;  %v1250_v6 = vadd.f32 %v1249_v49, %v1248_v48  ;;  %v1286_v26 = vrot.slane %v1285_v34, 4 }
 0x1f6   : > { %v1483_v20 = vsel %vm1339_vm1, %v3101_v53, %v1481_v56  ;;  %v1515_v51 = vsel %vm1336_vm15, %v3102_v59, %v1513_v41  ;;  %v1542_v62 = vsel %vm1324_vm11, %v1541_v63, %v3103_v4  ;;  %v3104_v10 = vrot.slane %v2616_v17, 4  ;;  %s3136_s21 = smov (!%p449_p0, %s448_s21), 3 }
 0x1f7   : > { %v1485_v61 = vsel %vm1342_vm2, %v1484_v47, %v1483_v20  ;;  %v3105_v18 = vrot.slane %v2689_v24, 2  ;;  %v1552_v38 = vrot.slane %v2829_v25, 5  ;;  %v1524_v45 = vrot.slane %v2746_v21, 2  ;;  %s1838_s25 = sshll.u32 %s3136_s21, 3 }
 0x1f8   : > { %v1517_v52 = vsel %vm1339_vm1, %v3104_v10, %v1515_v51  ;;  %1486 = vrot.lane.b32.xlu1 %v1485_v61, %s2047_s12  ;;  %v1251_v0 = vrot.slane %v1250_v6, 2  ;;  %v1287_v31 = vadd.f32 %v1286_v26, %v1285_v34  ;;  %v1535_v9 = vrot.slane %v2829_v25, 4  ;;  %s452_s11 = scalar_lea.vmem %s3078_s6, %s1838_s25 }
 0x1f9   : > { %v1519_v33 = vsel %vm1342_vm2, %v1518_v14, %v1517_v52  ;;  %v1544_v57 = vsel %vm1327_vm12, %v3105_v18, %v1542_v62  ;;  %v3106_v46 = vrot.slane %v2590_v5, 3  ;;  %v1558_v15 = vrot.slane %v2746_v21, 4 }
 0x1fa   : > { %v1546_v47 = vsel %vm1330_vm13, %v1545_v55, %v1544_v57  ;;  %v1560_v32 = vrot.slane %v2689_v24, 3  ;;  %v1252_v16 = vadd.f32 %v1251_v0, %v1250_v6  ;;  %v1288_v2 = vrot.slane %v1287_v31, 2 }
 0x1fb   : > { %v1547_v12 = vsel %vm1333_vm14, %v2600_v8, %v1546_v47  ;;  %v1525_v54 = vsel %vm1324_vm11, %v1524_v45, %v3106_v46  ;;  %v3107_v42 = vrot.slane %v2669_v3, 7  ;;  %v3108_v50 = vrot.slane %v2689_v24, 1  ;;  %1520 = vrot.lane.b32.xlu0 %v1519_v33, %s2048_s14 }
 0x1fc   : > { %v3109_v40 = vrot.slane %v2616_v17, 6  ;;  %v3110_v27 = vrot.slane %v2590_v5, 5  ;;  %v1562_v44 = vrot.slane %v2796_v19, 2  ;;  %v1253_v7 = vrot.slane %v1252_v16, 1 }
 0x1fd   : > { %v1549_v11 = vsel %vm1336_vm15, %v3107_v42, %v1547_v12  ;;  %v1527_v60 = vsel %vm1327_vm12, %v3108_v50, %v1525_v54  ;;  %v1289_v43 = vadd.f32 %v1288_v2, %v1287_v31  ;;  %v3111_v63 = vrot.slane %v2600_v8, 7 }
 0x1fe   : > { %v1551_v48 = vsel %vm1339_vm1, %v3109_v40, %v1549_v11  ;;  %v1528_v13 = vsel %vm1330_vm13, %v2796_v19, %v1527_v60  ;;  %v1559_v1 = vsel %vm1324_vm11, %v1558_v15, %v3110_v27  ;;  %v3112_v34 = vrot.slane %v2669_v3, 6 }
 0x1ff   : > { %v1553_v14 = vsel %vm1342_vm2, %v1552_v38, %v1551_v48  ;;  %v1530_v49 = vsel %vm1333_vm14, %v3111_v63, %v1528_v13  ;;  %v1561_v56 = vsel %vm1327_vm12, %v1560_v32, %v1559_v1  ;;  %v1567_v39 = vrot.slane %v2616_v17, 7 }
 0x200   : > { %1554 = vrot.lane.b32.xlu2 %v1553_v14, %s2049_s16  ;;  %v1532_v28 = vsel %vm1336_vm15, %v3112_v34, %v1530_v49  ;;  %v1569_v41 = vrot.slane %v2829_v25, 6  ;;  %v1254_v53 = vadd.f32 %v1253_v7, %v1252_v16  ;;  %v1290_v20 = vrot.slane %v1289_v43, 1 }
 0x201   : > { %v3113_v59 = vrot.slane %v2616_v17, 5  ;;  %v1563_v4 = vsel %vm1330_vm13, %v1562_v44, %v1561_v56  ;;  %v3114_v55 = vrot.slane %v2600_v8, 1  ;;  %v1591_v26 = vrot.slane %v2590_v5, 7 }
 0x202   : > { %v1592_v61 = vrot.slane %v2746_v21, 6  ;;  %v1291_v10 = vadd.f32 %v1290_v20, %v1289_v43  ;;  %v1594_v33 = vrot.slane %v2689_v24, 5  ;;  %v1596_v18 = vrot.slane %v2796_v19, 4 }
 0x203   : > { %v1534_v51 = vsel %vm1339_vm1, %v3113_v59, %v1532_v28  ;;  %v1565_v6 = vsel %vm1333_vm14, %v3114_v55, %v1563_v4  ;;  %v1598_v45 = vrot.slane %v2600_v8, 3  ;;  %v1602_v46 = vrot.slane %v2616_v17, 1 }
 0x204   : > { %v1536_v62 = vsel %vm1342_vm2, %v1535_v9, %v1534_v51  ;;  %v1566_v52 = vsel %vm1336_vm15, %v2669_v3, %v1565_v6  ;;  %v1593_v38 = vsel %vm1324_vm11, %v1592_v61, %v1591_v26  ;;  %v1293_v0 = vsel %vm776_vm0, %v1254_v53, %v1291_v10 }
 0x205   : > { %1537 = vrot.lane.b32.xlu1 %v1536_v62, %s2050_s20  ;;  %v1568_v57 = vsel %vm1339_vm1, %v1567_v39, %v1566_v52  ;;  %v1595_v47 = vsel %vm1327_vm12, %v1594_v33, %v1593_v38  ;;  %v1600_v9 = vrot.slane %v2669_v3, 2  ;;  %1294 = vst [vmem:[%s462_s15] sm:$0x3] %v1293_v0  ;;  %v1574_v54 = vrot.slane %v2590_v5, 6 }
 0x206   : > { %v1570_v31 = vsel %vm1342_vm2, %v1569_v41, %v1568_v57  ;;  %v1597_v12 = vsel %vm1330_vm13, %v1596_v18, %v1595_v47  ;;  %v1575_v15 = vrot.slane %v2746_v21, 5  ;;  %v1577_v16 = vrot.slane %v2689_v24, 4 }
 0x207   : > { %v1599_v32 = vsel %vm1333_vm14, %v1598_v45, %v1597_v12  ;;  %v1579_v2 = vrot.slane %v2796_v19, 3  ;;  %v1581_v42 = vrot.slane %v2600_v8, 2  ;;  %1571 = vrot.lane.b32.xlu0 %v1570_v31, %s2051_s23  ;;  %v1583_v60 = vrot.slane %v2669_v3, 1 }
 0x208   : > { %v1601_v11 = vsel %vm1336_vm15, %v1600_v9, %v1599_v32  ;;  %v1576_v50 = vsel %vm1324_vm11, %v1575_v15, %v1574_v54  ;;  %v1323_v5 = vrot.slane %v2694_v35, 7  ;;  %v1326_v24 = vrot.slane %v2635_v37, 6 }
 0x209   : > { %v1603_v21 = vsel %vm1339_vm1, %v1602_v46, %v1601_v11  ;;  %v1578_v40 = vsel %vm1327_vm12, %v1577_v16, %v1576_v50  ;;  %v1329_v19 = vrot.slane %v2737_v22, 5  ;;  %v1586_v13 = vrot.slane %v2829_v25, 7 }
 0x20a   : > { %v1604_v8 = vsel %vm1342_vm2, %v2829_v25, %v1603_v21  ;;  %v1580_v48 = vsel %vm1330_vm13, %v1579_v2, %v1578_v40  ;;  %v1325_v3 = vsel %vm1324_vm11, %v1323_v5, %v2570_v30  ;;  %v1332_v37 = vrot.slane %v2563_v29, 4 }
 0x20b   : > { %1605 = vrot.lane.b32.xlu2 %v1604_v8, %s2052_s10  ;;  %v1582_v35 = vsel %vm1333_vm14, %v1581_v42, %v1580_v48  ;;  %v1328_v27 = vsel %vm1327_vm12, %v1326_v24, %v1325_v3  ;;  %v1335_v44 = vrot.slane %v2625_v23, 3  ;;  %v1341_v7 = vrot.slane %v2781_v36, 1 }
 0x20c   : > { %v1584_v22 = vsel %vm1336_vm15, %v1583_v60, %v1582_v35  ;;  %v1331_v1 = vsel %vm1330_vm13, %v1329_v19, %v1328_v27  ;;  %v1338_v43 = vrot.slane %v2580_v58, 2  ;;  %vm1611_vm0 = vcmask 261120  }
 0x20d   : > { %v1585_v25 = vsel %vm1339_vm1, %v2616_v17, %v1584_v22  ;;  %v1334_v30 = vsel %vm1333_vm14, %v1332_v37, %v1331_v1  ;;  %vm1627_vm11 = vcmask 850944   ;;  %vm1631_vm12 = vcmask 982016  }
 0x20e   : > { %v1587_v14 = vsel %vm1342_vm2, %v1586_v13, %v1585_v25  ;;  %v1337_v63 = vsel %vm1336_vm15, %v1335_v44, %v1334_v30 }
 0x20f   : > { %1588 = vrot.lane.b32.xlu1 %v1587_v14, %s2053_s17  ;;  %v1340_v29 = vsel %vm1339_vm1, %v1338_v43, %v1337_v63 }
 0x210   : > { %v1343_v49 = vsel %vm1342_vm2, %v1341_v7, %v1340_v29 }
 0x239   : > { %v1394_v34 = vpop.permute.xlu2 %1393 }
 0x241   : > { %v1445_v39 = vpop.permute.xlu2 %1444 }
 0x24c   : > { %v1504_v4 = vpop.permute.xlu2 %1503 }
 0x251   : > { %v1428_v23 = vpop.permute.xlu1 %1427 }
 0x252   : > { %v1360_v36 = vpop.permute.xlu0 %1359 }
 0x253   : > { %v1608_v56 = vsel %vm1011_vm5, %v1343_v49, %v1360_v36  ;;  %vm1621_vm5 = vcmask 654336  }
 0x259   : > { %v1377_v28 = vpop.permute.xlu1 %1376 }
 0x25a   : > { %v1609_v58 = vsel %vm1032_vm6, %v1608_v56, %v1377_v28  ;;  %v1555_v52 = vpop.permute.xlu2 %1554  ;;  %vm1623_vm6 = vcmask 719872  }
 0x25b   : > { %v1610_v41 = vsel %vm1094_vm9, %v1609_v58, %v1394_v34  ;;  %vm1625_vm9 = vcmask 785408  }
 0x25d   : > { %v1411_v17 = vpop.permute.xlu0 %1410 }
 0x25e   : > { %v1612_v53 = vsel %vm1611_vm0, %v1610_v41, %v1411_v17 }
 0x25f   : > { %v1614_v59 = vsel %vm1613_vm3, %v1612_v53, %v1428_v23 }
 0x260   : > { %v1615_v62 = vsel %vm1111_vm8, %v1614_v59, %v1445_v39  ;;  %vm1629_vm8 = vcmask 916480  }
 0x265   : > { %v1462_v20 = vpop.permute.xlu0 %1461  ;;  %v1606_v31 = vpop.permute.xlu2 %1605 }
 0x266   : > { %v1617_v55 = vsel %vm1616_vm4, %v1615_v62, %v1462_v20 }
 0x26a   : > { %v1487_v51 = vpop.permute.xlu1 %1486 }
 0x26b   : > { %v1619_v26 = vsel %vm1618_vm7, %v1617_v55, %v1487_v51 }
 0x26c   : > { %v1620_v61 = vsel %vm1164_vm10, %v1619_v26, %v1504_v4 }
 0x26d   : > { %v1521_v6 = vpop.permute.xlu0 %1520 }
 0x26e   : > { %v1622_v33 = vsel %vm1621_vm5, %v1620_v61, %v1521_v6 }
 0x277   : > { %v1538_v10 = vpop.permute.xlu1 %1537 }
 0x278   : > { %v1624_v18 = vsel %vm1623_vm6, %v1622_v33, %v1538_v10 }
 0x279   : > { %v1572_v57 = vpop.permute.xlu0 %1571  ;;  %v1626_v38 = vsel %vm1625_vm9, %v1624_v18, %v1555_v52 }
 0x27a   : > { %v1628_v45 = vsel %vm1627_vm11, %v1626_v38, %v1572_v57 }
 0x281   : > { %v1589_v0 = vpop.permute.xlu1 %1588 }
 0x282   : > { %v1630_v47 = vsel %vm1629_vm8, %v1628_v45, %v1589_v0 }
 0x283   : > { %v1632_v9 = vsel %vm1631_vm12, %v1630_v47, %v1606_v31 }
 0x284   : > { %1633 = vst [vmem:[%s452_s11] sm:$0xff] %v1632_v9 }
 0x285 PF: > { %s18_s28 = sadd.s32 1, %s2037_s28   ;;  %s3115_s24 = smov %s2029_s26 }
 0x286   : > { %p15_p1 = scmp.ge.s32.totalorder %s18_s28, 6   ;;  %s3116_s25 = smov %s2033_s27 }
 0x287   : > { %s3117_s26 = smov %s3120_s29  ;;  %s3118_s27 = smov %s3124_s30 }
 0x288   :  { %17 = sbr.rel (!%p15_p1) target bundleno = 3 (0x3), region = 92 }

</bundles_post_ra>
